<compile_context>
chip_gen: v7x
topology: tpu7x:2x2x1
jax: 0.10.0
libtpu: 0.0.40
codegen_flags: <defaults>
</compile_context>

<pallas_src>
import numpy as np
import jax
import jax.numpy as jnp
from jax.experimental import pallas as pl
from jax.experimental.pallas import tpu as pltpu

# ----------------------- model hyper-parameters (small) -----------------------
D_MODEL = 32        # d_model
N_HEAD = 4          # nhead
DIM_FF = 64         # dim_feedforward
NUM_ENC = 2         # num_encoder_layers
NUM_DEC = 2         # num_decoder_layers
IN_CH = 3           # input_channels
TGT_LEN = 100       # torch.zeros(100, d_model) in the reference
TGT_ROWS = 8        # decoder computed on 8 identical rows (exact, see header)
HS_LANES = 128      # lane-dense hs output width (host slices [:, :100])
# NOTE: in the reference MHA, d_k / d_v default to d_model (NOT d_model // n_head),
# so each head has width d_model and the projections are (d_model, n_head*d_model).
D_K = D_MODEL
D_V = D_MODEL
HD = N_HEAD * D_K   # 128
TEMP = float(D_K) ** 0.5
LN_EPS = 1e-5
LANE = 128


# -------------------- packed weight-slab layout (static offsets) --------------------
def _build_layout():
    layout = {}
    row = 0

    def add(name, r, c):
        nonlocal row
        layout[name] = (row, r, c)
        row += -(-r // 8) * 8          # keep every entry sublane(8)-aligned

    add("emb_w", IN_CH, D_MODEL)
    add("emb_b", 1, D_MODEL)
    add("dec_norm", 2, D_MODEL)
    for l in range(NUM_ENC):
        add(f"enc{l}_A", D_MODEL, HD)      # folded Wq @ Wk^T / sqrt(d_k), head-concat
        add(f"enc{l}_Wv", D_MODEL, HD)
        add(f"enc{l}_Wf", HD, D_MODEL)
        add(f"enc{l}_W1", D_MODEL, DIM_FF)
        add(f"enc{l}_b1", 1, DIM_FF)
        add(f"enc{l}_W2", DIM_FF, D_MODEL)
        add(f"enc{l}_b2", 1, D_MODEL)
        add(f"enc{l}_ln", 4, D_MODEL)      # ln1_g, ln1_b, ln2_g, ln2_b
    for l in range(NUM_DEC):
        add(f"dec{l}_sa_A", D_MODEL, HD)
        add(f"dec{l}_sa_Wv", D_MODEL, HD)
        add(f"dec{l}_sa_Wf", HD, D_MODEL)
        add(f"dec{l}_ca_A", D_MODEL, HD)
        add(f"dec{l}_ca_Wv", D_MODEL, HD)
        add(f"dec{l}_ca_Wf", HD, D_MODEL)
        add(f"dec{l}_W1", D_MODEL, DIM_FF)
        add(f"dec{l}_b1", 1, DIM_FF)
        add(f"dec{l}_W2", DIM_FF, D_MODEL)
        add(f"dec{l}_b2", 1, D_MODEL)
        add(f"dec{l}_ln", 6, D_MODEL)      # ln1..ln3 g/b
    return layout, row


_LAYOUT, _SLAB_ROWS = _build_layout()


# ------------------------------ fused Pallas kernel -----------------------------
def _transformer_kernel(data_ref, w_ref, hs_ref, mem_ref, obuf_ref):
    L = data_ref.shape[0]                   # encoder sequence length (bs*h*w)
    C = data_ref.shape[1] - D_MODEL         # input channels

    def w(name):
        r, nr, nc = _LAYOUT[name]
        return w_ref[r:r + nr, 0:nc]        # static slice of the packed slab (free)

    def softmax(s):
        s = s - jnp.max(s, axis=-1, keepdims=True)
        p = jnp.exp(s)
        return p * pl.reciprocal(jnp.sum(p, axis=-1, keepdims=True), approx=False)

    def ln(z, g, b):
        mu = jnp.mean(z, axis=-1, keepdims=True)
        var = jnp.mean((z - mu) ** 2, axis=-1, keepdims=True)
        return (z - mu) * jax.lax.rsqrt(var + LN_EPS) * g + b

    def add_ln(x, y, g, b):
        return ln(x + y, g, b)

    def attention(q_in, kv, A, Wv, Wf):
        # A_h = Wq_h @ Wk_h^T / sqrt(d_k) folded at init (exact, no biases), so
        # scores_h = (q_in @ A_h) @ kv^T.  q_in: (Lq, d_model), kv: (Lk, d_model).
        Lq = q_in.shape[0]
        qa = jnp.dot(q_in, A, preferred_element_type=jnp.float32)      # (Lq, HD)
        v = jnp.dot(kv, Wv, preferred_element_type=jnp.float32)        # (Lk, HD)
        for h in range(N_HEAD):                                        # static unroll
            s = jax.lax.dot_general(qa[:, h * D_K:(h + 1) * D_K], kv,
                                    (((1,), (1,)), ((), ())),
                                    preferred_element_type=jnp.float32)  # (Lq, Lk)
            p = softmax(s)
            # head output lands directly in its lane slice (no cross-lane concat)
            obuf_ref[0:Lq, h * D_V:(h + 1) * D_V] = jnp.dot(
                p, v[:, h * D_V:(h + 1) * D_V], preferred_element_type=jnp.float32)
        o = obuf_ref[0:Lq, :]                                          # (Lq, HD)
        out = jnp.dot(o, Wf, preferred_element_type=jnp.float32)       # one K=128 matmul
        # TODO(synk): reference layer_norm = nn.utils.spectral_norm(tensor) is invalid -> identity.
        return out + q_in                                              # residual inside MHA (as in ref)

    def ffn(x, W1, b1, W2, b2):
        hdn = jnp.maximum(jnp.dot(x, W1, preferred_element_type=jnp.float32) + b1, 0.0)
        return jnp.dot(hdn, W2, preferred_element_type=jnp.float32) + b2

    data = data_ref[...]
    sig = data[:, 0:D_MODEL]                                           # (L, d_model)

    # embedding_conv: Conv2d(1, d_model, kernel=(1,c), stride=(1,c)) == per-pixel
    # linear over channels + relu.  K=3, so do it as 3 VPU broadcast FMAs (no MXU).
    embw = w("emb_w")                                                  # (C, d_model)
    src = jnp.broadcast_to(w("emb_b"), (L, D_MODEL))
    for ch in range(C):
        src = src + data[:, D_MODEL + ch:D_MODEL + ch + 1] * embw[ch:ch + 1, :]
    src = jnp.maximum(src, 0.0)                                        # (L, d_model)

    # ---------------- encoder ----------------
    memory = src
    for l in range(NUM_ENC):
        lnp = w(f"enc{l}_ln")                                          # (4, d_model)
        x0 = memory + sig                  # add_timing_signal mutates src in the reference
        a = attention(x0, x0, w(f"enc{l}_A"), w(f"enc{l}_Wv"), w(f"enc{l}_Wf"))
        y = add_ln(x0, a, lnp[0:1], lnp[1:2])
        f = ffn(y, w(f"enc{l}_W1"), w(f"enc{l}_b1"), w(f"enc{l}_W2"), w(f"enc{l}_b2"))
        memory = add_ln(y, f, lnp[2:3], lnp[3:4])

    # ---------------- decoder ----------------
    # tgt = zeros(100, d_model).  Every decoder op is row-uniform (no mask, no tgt
    # timing signal), so 8 identical rows give the exact per-row result of 100 rows.
    tgt = jnp.zeros((TGT_ROWS, D_MODEL), jnp.float32)
    mem_mut = memory                       # reference mutates memory in place each decoder layer
    for l in range(NUM_DEC):
        lnp = w(f"dec{l}_ln")                                          # (6, d_model)
        # TODO(synk): reference add_timing_signal on 2-D tgt divides by zero; treated as identity.
        a = attention(tgt, tgt, w(f"dec{l}_sa_A"), w(f"dec{l}_sa_Wv"), w(f"dec{l}_sa_Wf"))
        t = add_ln(tgt, a, lnp[0:1], lnp[1:2])
        mem_mut = mem_mut + sig            # in-place `memory += signal` in the reference
        ca = attention(t, mem_mut, w(f"dec{l}_ca_A"), w(f"dec{l}_ca_Wv"), w(f"dec{l}_ca_Wf"))
        t = add_ln(t, ca, lnp[2:3], lnp[3:4])
        f = ffn(t, w(f"dec{l}_W1"), w(f"dec{l}_b1"), w(f"dec{l}_W2"), w(f"dec{l}_b2"))
        tgt = add_ln(t, f, lnp[4:5], lnp[5:6])

    dn = w("dec_norm")                                                 # (2, d_model)
    hs8 = ln(tgt, dn[0:1], dn[1:2])                                    # (8, d_model), identical rows

    # Emit hs already transposed and lane-dense: (d_model, 128); host slices [:, :100].
    # Lane->sublane move via diag(hs_row) @ ones (MXU path; exact — only zeros are added).
    hs_row = hs8[0:1, :]                                               # (1, d_model)
    rr = jax.lax.broadcasted_iota(jnp.int32, (D_MODEL, D_MODEL), 0)
    cc = jax.lax.broadcasted_iota(jnp.int32, (D_MODEL, D_MODEL), 1)
    diag = jnp.where(rr == cc, jnp.broadcast_to(hs_row, (D_MODEL, D_MODEL)), 0.0)
    hs_ref[...] = jnp.dot(diag, jnp.ones((D_MODEL, HS_LANES), jnp.float32),
                          preferred_element_type=jnp.float32)
    mem_ref[...] = mem_mut                                             # mutated encoder memory, as in ref


# ------------------------------- kernel wrapper --------------------------------
def _vmem():
    return pl.BlockSpec(memory_space=pltpu.MemorySpace.VMEM)


@jax.jit
def transformer_forward(x, w_slab):
    bs, c, h, w = x.shape  # NCHW, like PyTorch
    # (The reference's residual broadcasting is only shape-consistent for bs==1, h==1.)
    seq_len = bs * h * w
    x_flat = jnp.transpose(x, (0, 2, 3, 1)).reshape(seq_len, c)
    sig = timing_signal_4d((bs, h, w, D_MODEL)).reshape(seq_len, D_MODEL)
    data = jnp.concatenate([sig, x_flat], axis=1)                 # single packed data slab

    hs_t, mem = pl.pallas_call(
        _transformer_kernel,
        out_shape=(jax.ShapeDtypeStruct((D_MODEL, HS_LANES), jnp.float32),
                   jax.ShapeDtypeStruct((seq_len, D_MODEL), jnp.float32)),
        in_specs=[_vmem(), _vmem()],
        out_specs=(_vmem(), _vmem()),
        scratch_shapes=[pltpu.VMEM((max(seq_len, TGT_ROWS), HD), jnp.float32)],
    )(data, w_slab)

    # TODO(synk): reference returns hs.transpose(1,2) on a 2-D tensor and
    # memory.permute(1,2,0).view(bs,c,h,w) on a 4-D tensor (both invalid in PyTorch);
    # we return (1, d_model, 100) and the (bs, h, w, d_model) memory instead.
    hs_out = hs_t[:, :TGT_LEN][None]                 # (1, d_model, TGT_LEN)
    memory_out = mem.reshape(bs, h, w, D_MODEL)      # encoder memory (mutated, as in ref)
    return hs_out, memory_out


# ------------------------------ timing signal (glue) ---------------------------
def timing_signal_4d(shape, min_ts=1.0, max_ts=10000.0):
    """add_timing_signal for a (bs, h, w, d_model) tensor (num_dims == 2)."""
    _, _, _, d = shape
    num_dims = 2
    nts = d // (num_dims * 2)
    log_inc = np.log(max_ts / min_ts) / (nts - 1)
    inv = min_ts * jnp.exp(jnp.arange(nts, dtype=jnp.float32) * -log_inc)
    total = jnp.zeros(shape, jnp.float32)
    for dim in range(num_dims):
        length = shape[dim + 1]
        pos = jnp.arange(length, dtype=jnp.float32)
        scaled = pos[:, None] * inv[None, :]
        sigd = jnp.concatenate([jnp.sin(scaled), jnp.cos(scaled)], axis=1)
        prepad = dim * 2 * nts
        postpad = d - (dim + 1) * 2 * nts
        sigd = jnp.pad(sigd, ((0, 0), (prepad, postpad)))
        sigd = sigd.reshape((1, length, 1, d) if dim == 0 else (1, 1, length, d))
        total = total + sigd
    return total


# ----------------------------- parameter creation ------------------------------
def _xavier(key, shape, fan_in, fan_out):
    lim = float(np.sqrt(6.0 / (fan_in + fan_out)))
    return np.asarray(jax.random.uniform(key, shape, jnp.float32, -lim, lim))


def init_params(key):
    keys = iter(jax.random.split(key, 64))
    nx = lambda: next(keys)
    slab = np.zeros((_SLAB_ROWS, LANE), np.float32)

    def put(name, mat):
        r, nr, nc = _LAYOUT[name]
        slab[r:r + nr, :nc] = np.asarray(mat, np.float32).reshape(nr, nc)

    def fold_qk(wq, wk):
        # A_h = Wq_h @ Wk_h^T / sqrt(d_k), exact algebraic fold (no bias), head-concat.
        return np.concatenate(
            [wq[:, h * D_K:(h + 1) * D_K] @ wk[:, h * D_K:(h + 1) * D_K].T / TEMP
             for h in range(N_HEAD)], axis=1)

    ones = np.ones(D_MODEL, np.float32)
    zeros = np.zeros(D_MODEL, np.float32)

    put("emb_w", _xavier(nx(), (IN_CH, D_MODEL), IN_CH, D_MODEL))
    put("emb_b", np.zeros((1, D_MODEL)))
    put("dec_norm", np.stack([ones, zeros]))

    for l in range(NUM_ENC):
        wq = _xavier(nx(), (D_MODEL, HD), D_MODEL, HD)
        wk = _xavier(nx(), (D_MODEL, HD), D_MODEL, HD)
        put(f"enc{l}_A", fold_qk(wq, wk))
        put(f"enc{l}_Wv", _xavier(nx(), (D_MODEL, HD), D_MODEL, HD))
        put(f"enc{l}_Wf", _xavier(nx(), (HD, D_MODEL), HD, D_MODEL))
        put(f"enc{l}_W1", _xavier(nx(), (D_MODEL, DIM_FF), D_MODEL, DIM_FF))
        put(f"enc{l}_b1", np.zeros((1, DIM_FF)))
        put(f"enc{l}_W2", _xavier(nx(), (DIM_FF, D_MODEL), DIM_FF, D_MODEL))
        put(f"enc{l}_b2", np.zeros((1, D_MODEL)))
        put(f"enc{l}_ln", np.stack([ones, zeros, ones, zeros]))

    for l in range(NUM_DEC):
        wq = _xavier(nx(), (D_MODEL, HD), D_MODEL, HD)
        wk = _xavier(nx(), (D_MODEL, HD), D_MODEL, HD)
        put(f"dec{l}_sa_A", fold_qk(wq, wk))
        put(f"dec{l}_sa_Wv", _xavier(nx(), (D_MODEL, HD), D_MODEL, HD))
        put(f"dec{l}_sa_Wf", _xavier(nx(), (HD, D_MODEL), HD, D_MODEL))
        wq = _xavier(nx(), (D_MODEL, HD), D_MODEL, HD)
        wk = _xavier(nx(), (D_MODEL, HD), D_MODEL, HD)
        put(f"dec{l}_ca_A", fold_qk(wq, wk))
        put(f"dec{l}_ca_Wv", _xavier(nx(), (D_MODEL, HD), D_MODEL, HD))
        put(f"dec{l}_ca_Wf", _xavier(nx(), (HD, D_MODEL), HD, D_MODEL))
        put(f"dec{l}_W1", _xavier(nx(), (D_MODEL, DIM_FF), D_MODEL, DIM_FF))
        put(f"dec{l}_b1", np.zeros((1, DIM_FF)))
        put(f"dec{l}_W2", _xavier(nx(), (DIM_FF, D_MODEL), DIM_FF, D_MODEL))
        put(f"dec{l}_b2", np.zeros((1, D_MODEL)))
        put(f"dec{l}_ln", np.stack([ones, zeros, ones, zeros, ones, zeros]))

    return jnp.asarray(slab)


# ------------------------------------ main --------------------------------------
if __name__ == "__main__":
    key = jax.random.PRNGKey(0)
    pkey, xkey = jax.random.split(key)
    w_slab = init_params(pkey)
    # bs=1, c=3, h=1, w=16  (bs==h==1 is the only shape-consistent case for the reference)
    x = jax.random.normal(xkey, (1, IN_CH, 1, 16), jnp.float32)
    hs, memory = transformer_forward(x, w_slab)
    jax.block_until_ready((hs, memory))
    assert hs.shape == (1, D_MODEL, TGT_LEN) and memory.shape == (1, 1, 16, D_MODEL)
    print("KERNEL_OK")
</pallas_src>

<mosaic_0001>
module attributes {stable_mosaic.version = 11 : i64} {
  func.func @_transformer_kernel(%arg0: memref<16x35xf32, #tpu.memory_space<vmem>>, %arg1: memref<1656x128xf32, #tpu.memory_space<vmem>>, %arg2: memref<32x128xf32, #tpu.memory_space<vmem>>, %arg3: memref<16x32xf32, #tpu.memory_space<vmem>>, %arg4: memref<16x128xf32, #tpu.memory_space<vmem>>) attributes {dimension_semantics = [], scalar_prefetch = 0 : i64, scratch_operands = 1 : i64, tpu.core_type = #tpu.core_type<tc>} {
    %c0 = arith.constant 0 : index
    %c0_0 = arith.constant 0 : index
    %0 = vector.load %arg0[%c0, %c0_0] : memref<16x35xf32, #tpu.memory_space<vmem>>, vector<16x35xf32>
    %1 = vector.extract_strided_slice %0 {offsets = [0, 0], sizes = [16, 32], strides = [1, 1]} : vector<16x35xf32> to vector<16x32xf32>
    %c0_1 = arith.constant 0 : index
    %c0_2 = arith.constant 0 : index
    %2 = vector.load %arg1[%c0_1, %c0_2] : memref<1656x128xf32, #tpu.memory_space<vmem>>, vector<3x32xf32>
    %c8 = arith.constant 8 : index
    %c0_3 = arith.constant 0 : index
    %3 = vector.load %arg1[%c8, %c0_3] : memref<1656x128xf32, #tpu.memory_space<vmem>>, vector<1x32xf32>
    %4 = vector.shape_cast %3 : vector<1x32xf32> to vector<1x32xf32>
    %5 = vector.broadcast %4 : vector<1x32xf32> to vector<16x32xf32>
    %6 = vector.extract_strided_slice %0 {offsets = [0, 32], sizes = [16, 1], strides = [1, 1]} : vector<16x35xf32> to vector<16x1xf32>
    %7 = vector.extract_strided_slice %2 {offsets = [0, 0], sizes = [1, 32], strides = [1, 1]} : vector<3x32xf32> to vector<1x32xf32>
    %8 = vector.broadcast %6 : vector<16x1xf32> to vector<16x32xf32>
    %9 = vector.broadcast %7 : vector<1x32xf32> to vector<16x32xf32>
    %10 = arith.mulf %8, %9 : vector<16x32xf32>
    %11 = arith.addf %5, %10 : vector<16x32xf32>
    %12 = vector.extract_strided_slice %0 {offsets = [0, 33], sizes = [16, 1], strides = [1, 1]} : vector<16x35xf32> to vector<16x1xf32>
    %13 = vector.extract_strided_slice %2 {offsets = [1, 0], sizes = [1, 32], strides = [1, 1]} : vector<3x32xf32> to vector<1x32xf32>
    %14 = vector.broadcast %12 : vector<16x1xf32> to vector<16x32xf32>
    %15 = vector.broadcast %13 : vector<1x32xf32> to vector<16x32xf32>
    %16 = arith.mulf %14, %15 : vector<16x32xf32>
    %17 = arith.addf %11, %16 : vector<16x32xf32>
    %18 = vector.extract_strided_slice %0 {offsets = [0, 34], sizes = [16, 1], strides = [1, 1]} : vector<16x35xf32> to vector<16x1xf32>
    %19 = vector.extract_strided_slice %2 {offsets = [2, 0], sizes = [1, 32], strides = [1, 1]} : vector<3x32xf32> to vector<1x32xf32>
    %20 = vector.broadcast %18 : vector<16x1xf32> to vector<16x32xf32>
    %21 = vector.broadcast %19 : vector<1x32xf32> to vector<16x32xf32>
    %22 = arith.mulf %20, %21 : vector<16x32xf32>
    %23 = arith.addf %17, %22 : vector<16x32xf32>
    %cst = arith.constant 0.000000e+00 : f32
    %24 = vector.broadcast %cst : f32 to vector<16x32xf32>
    %25 = arith.maximumf %23, %24 : vector<16x32xf32>
    %c328 = arith.constant 328 : index
    %c0_4 = arith.constant 0 : index
    %26 = vector.load %arg1[%c328, %c0_4] : memref<1656x128xf32, #tpu.memory_space<vmem>>, vector<4x32xf32>
    %27 = arith.addf %25, %1 : vector<16x32xf32>
    %c24 = arith.constant 24 : index
    %c0_5 = arith.constant 0 : index
    %28 = vector.load %arg1[%c24, %c0_5] : memref<1656x128xf32, #tpu.memory_space<vmem>>, vector<32x128xf32>
    %c56 = arith.constant 56 : index
    %c0_6 = arith.constant 0 : index
    %29 = vector.load %arg1[%c56, %c0_6] : memref<1656x128xf32, #tpu.memory_space<vmem>>, vector<32x128xf32>
    %c88 = arith.constant 88 : index
    %c0_7 = arith.constant 0 : index
    %30 = vector.load %arg1[%c88, %c0_7] : memref<1656x128xf32, #tpu.memory_space<vmem>>, vector<128x32xf32>
    %cst_8 = arith.constant dense<0.000000e+00> : vector<16x128xf32>
    %31 = tpu.matmul %27, %28, %cst_8 {dimension_numbers = #tpu.dot_dimension_numbers<[1], [0], [0], [1], [0, 0, 1, 1], [], []>} : vector<16x32xf32>, vector<32x128xf32>, vector<16x128xf32> -> vector<16x128xf32>
    %cst_9 = arith.constant dense<0.000000e+00> : vector<16x128xf32>
    %32 = tpu.matmul %27, %29, %cst_9 {dimension_numbers = #tpu.dot_dimension_numbers<[1], [0], [0], [1], [0, 0, 1, 1], [], []>} : vector<16x32xf32>, vector<32x128xf32>, vector<16x128xf32> -> vector<16x128xf32>
    %33 = vector.extract_strided_slice %31 {offsets = [0, 0], sizes = [16, 32], strides = [1, 1]} : vector<16x128xf32> to vector<16x32xf32>
    %cst_10 = arith.constant dense<0.000000e+00> : vector<16x16xf32>
    %34 = tpu.matmul %33, %27, %cst_10 {dimension_numbers = #tpu.dot_dimension_numbers<[1], [1], [0], [0], [0, 0, 1, 0], [], []>} : vector<16x32xf32>, vector<16x32xf32>, vector<16x16xf32> -> vector<16x16xf32>
    %cst_11 = arith.constant dense<0xFF800000> : vector<16xf32>
    %35 = vector.multi_reduction <maximumf>, %34, %cst_11 [1] : vector<16x16xf32> to vector<16xf32>
    %36 = vector.shape_cast %35 : vector<16xf32> to vector<16x1xf32>
    %37 = vector.broadcast %36 : vector<16x1xf32> to vector<16x16xf32>
    %38 = arith.subf %34, %37 : vector<16x16xf32>
    %39 = math.exp %38 : vector<16x16xf32>
    %cst_12 = arith.constant dense<0.000000e+00> : vector<16xf32>
    %40 = vector.multi_reduction <add>, %39, %cst_12 [1] : vector<16x16xf32> to vector<16xf32>
    %41 = vector.shape_cast %40 : vector<16xf32> to vector<16x1xf32>
    %42 = tpu.reciprocal %41 : vector<16x1xf32> -> vector<16x1xf32>
    %43 = vector.broadcast %42 : vector<16x1xf32> to vector<16x16xf32>
    %44 = arith.mulf %39, %43 : vector<16x16xf32>
    %45 = vector.extract_strided_slice %32 {offsets = [0, 0], sizes = [16, 32], strides = [1, 1]} : vector<16x128xf32> to vector<16x32xf32>
    %cst_13 = arith.constant dense<0.000000e+00> : vector<16x32xf32>
    %46 = tpu.matmul %44, %45, %cst_13 {dimension_numbers = #tpu.dot_dimension_numbers<[1], [0], [0], [1], [0, 0, 1, 1], [], []>} : vector<16x16xf32>, vector<16x32xf32>, vector<16x32xf32> -> vector<16x32xf32>
    %c0_14 = arith.constant 0 : index
    %c0_15 = arith.constant 0 : index
    %47 = vector.load %arg4[%c0_14, %c0_15] : memref<16x128xf32, #tpu.memory_space<vmem>>, vector<16x32xf32>
    tpu.vector_store %arg4[%c0_14, %c0_15], %46 {strides = array<i32>} : memref<16x128xf32, #tpu.memory_space<vmem>>, vector<16x32xf32>,
    %48 = vector.extract_strided_slice %31 {offsets = [0, 32], sizes = [16, 32], strides = [1, 1]} : vector<16x128xf32> to vector<16x32xf32>
    %cst_16 = arith.constant dense<0.000000e+00> : vector<16x16xf32>
    %49 = tpu.matmul %48, %27, %cst_16 {dimension_numbers = #tpu.dot_dimension_numbers<[1], [1], [0], [0], [0, 0, 1, 0], [], []>} : vector<16x32xf32>, vector<16x32xf32>, vector<16x16xf32> -> vector<16x16xf32>
    %cst_17 = arith.constant dense<0xFF800000> : vector<16xf32>
    %50 = vector.multi_reduction <maximumf>, %49, %cst_17 [1] : vector<16x16xf32> to vector<16xf32>
    %51 = vector.shape_cast %50 : vector<16xf32> to vector<16x1xf32>
    %52 = vector.broadcast %51 : vector<16x1xf32> to vector<16x16xf32>
    %53 = arith.subf %49, %52 : vector<16x16xf32>
    %54 = math.exp %53 : vector<16x16xf32>
    %cst_18 = arith.constant dense<0.000000e+00> : vector<16xf32>
    %55 = vector.multi_reduction <add>, %54, %cst_18 [1] : vector<16x16xf32> to vector<16xf32>
    %56 = vector.shape_cast %55 : vector<16xf32> to vector<16x1xf32>
    %57 = tpu.reciprocal %56 : vector<16x1xf32> -> vector<16x1xf32>
    %58 = vector.broadcast %57 : vector<16x1xf32> to vector<16x16xf32>
    %59 = arith.mulf %54, %58 : vector<16x16xf32>
    %60 = vector.extract_strided_slice %32 {offsets = [0, 32], sizes = [16, 32], strides = [1, 1]} : vector<16x128xf32> to vector<16x32xf32>
    %cst_19 = arith.constant dense<0.000000e+00> : vector<16x32xf32>
    %61 = tpu.matmul %59, %60, %cst_19 {dimension_numbers = #tpu.dot_dimension_numbers<[1], [0], [0], [1], [0, 0, 1, 1], [], []>} : vector<16x16xf32>, vector<16x32xf32>, vector<16x32xf32> -> vector<16x32xf32>
    %c0_20 = arith.constant 0 : index
    %c32 = arith.constant 32 : index
    %62 = vector.load %arg4[%c0_20, %c32] : memref<16x128xf32, #tpu.memory_space<vmem>>, vector<16x32xf32>
    tpu.vector_store %arg4[%c0_20, %c32], %61 {strides = array<i32>} : memref<16x128xf32, #tpu.memory_space<vmem>>, vector<16x32xf32>,
    %63 = vector.extract_strided_slice %31 {offsets = [0, 64], sizes = [16, 32], strides = [1, 1]} : vector<16x128xf32> to vector<16x32xf32>
    %cst_21 = arith.constant dense<0.000000e+00> : vector<16x16xf32>
    %64 = tpu.matmul %63, %27, %cst_21 {dimension_numbers = #tpu.dot_dimension_numbers<[1], [1], [0], [0], [0, 0, 1, 0], [], []>} : vector<16x32xf32>, vector<16x32xf32>, vector<16x16xf32> -> vector<16x16xf32>
    %cst_22 = arith.constant dense<0xFF800000> : vector<16xf32>
    %65 = vector.multi_reduction <maximumf>, %64, %cst_22 [1] : vector<16x16xf32> to vector<16xf32>
    %66 = vector.shape_cast %65 : vector<16xf32> to vector<16x1xf32>
    %67 = vector.broadcast %66 : vector<16x1xf32> to vector<16x16xf32>
    %68 = arith.subf %64, %67 : vector<16x16xf32>
    %69 = math.exp %68 : vector<16x16xf32>
    %cst_23 = arith.constant dense<0.000000e+00> : vector<16xf32>
    %70 = vector.multi_reduction <add>, %69, %cst_23 [1] : vector<16x16xf32> to vector<16xf32>
    %71 = vector.shape_cast %70 : vector<16xf32> to vector<16x1xf32>
    %72 = tpu.reciprocal %71 : vector<16x1xf32> -> vector<16x1xf32>
    %73 = vector.broadcast %72 : vector<16x1xf32> to vector<16x16xf32>
    %74 = arith.mulf %69, %73 : vector<16x16xf32>
    %75 = vector.extract_strided_slice %32 {offsets = [0, 64], sizes = [16, 32], strides = [1, 1]} : vector<16x128xf32> to vector<16x32xf32>
    %cst_24 = arith.constant dense<0.000000e+00> : vector<16x32xf32>
    %76 = tpu.matmul %74, %75, %cst_24 {dimension_numbers = #tpu.dot_dimension_numbers<[1], [0], [0], [1], [0, 0, 1, 1], [], []>} : vector<16x16xf32>, vector<16x32xf32>, vector<16x32xf32> -> vector<16x32xf32>
    %c0_25 = arith.constant 0 : index
    %c64 = arith.constant 64 : index
    %77 = vector.load %arg4[%c0_25, %c64] : memref<16x128xf32, #tpu.memory_space<vmem>>, vector<16x32xf32>
    tpu.vector_store %arg4[%c0_25, %c64], %76 {strides = array<i32>} : memref<16x128xf32, #tpu.memory_space<vmem>>, vector<16x32xf32>,
    %78 = vector.extract_strided_slice %31 {offsets = [0, 96], sizes = [16, 32], strides = [1, 1]} : vector<16x128xf32> to vector<16x32xf32>
    %cst_26 = arith.constant dense<0.000000e+00> : vector<16x16xf32>
    %79 = tpu.matmul %78, %27, %cst_26 {dimension_numbers = #tpu.dot_dimension_numbers<[1], [1], [0], [0], [0, 0, 1, 0], [], []>} : vector<16x32xf32>, vector<16x32xf32>, vector<16x16xf32> -> vector<16x16xf32>
    %cst_27 = arith.constant dense<0xFF800000> : vector<16xf32>
    %80 = vector.multi_reduction <maximumf>, %79, %cst_27 [1] : vector<16x16xf32> to vector<16xf32>
    %81 = vector.shape_cast %80 : vector<16xf32> to vector<16x1xf32>
    %82 = vector.broadcast %81 : vector<16x1xf32> to vector<16x16xf32>
    %83 = arith.subf %79, %82 : vector<16x16xf32>
    %84 = math.exp %83 : vector<16x16xf32>
    %cst_28 = arith.constant dense<0.000000e+00> : vector<16xf32>
    %85 = vector.multi_reduction <add>, %84, %cst_28 [1] : vector<16x16xf32> to vector<16xf32>
    %86 = vector.shape_cast %85 : vector<16xf32> to vector<16x1xf32>
    %87 = tpu.reciprocal %86 : vector<16x1xf32> -> vector<16x1xf32>
    %88 = vector.broadcast %87 : vector<16x1xf32> to vector<16x16xf32>
    %89 = arith.mulf %84, %88 : vector<16x16xf32>
    %90 = vector.extract_strided_slice %32 {offsets = [0, 96], sizes = [16, 32], strides = [1, 1]} : vector<16x128xf32> to vector<16x32xf32>
    %cst_29 = arith.constant dense<0.000000e+00> : vector<16x32xf32>
    %91 = tpu.matmul %89, %90, %cst_29 {dimension_numbers = #tpu.dot_dimension_numbers<[1], [0], [0], [1], [0, 0, 1, 1], [], []>} : vector<16x16xf32>, vector<16x32xf32>, vector<16x32xf32> -> vector<16x32xf32>
    %c0_30 = arith.constant 0 : index
    %c96 = arith.constant 96 : index
    %92 = vector.load %arg4[%c0_30, %c96] : memref<16x128xf32, #tpu.memory_space<vmem>>, vector<16x32xf32>
    tpu.vector_store %arg4[%c0_30, %c96], %91 {strides = array<i32>} : memref<16x128xf32, #tpu.memory_space<vmem>>, vector<16x32xf32>,
    %c0_31 = arith.constant 0 : index
    %c0_32 = arith.constant 0 : index
    %93 = vector.load %arg4[%c0_31, %c0_32] : memref<16x128xf32, #tpu.memory_space<vmem>>, vector<16x128xf32>
    %cst_33 = arith.constant dense<0.000000e+00> : vector<16x32xf32>
    %94 = tpu.matmul %93, %30, %cst_33 {dimension_numbers = #tpu.dot_dimension_numbers<[1], [0], [0], [1], [0, 0, 1, 1], [], []>} : vector<16x128xf32>, vector<128x32xf32>, vector<16x32xf32> -> vector<16x32xf32>
    %95 = arith.addf %94, %27 : vector<16x32xf32>
    %96 = vector.extract_strided_slice %26 {offsets = [0, 0], sizes = [1, 32], strides = [1, 1]} : vector<4x32xf32> to vector<1x32xf32>
    %97 = vector.extract_strided_slice %26 {offsets = [1, 0], sizes = [1, 32], strides = [1, 1]} : vector<4x32xf32> to vector<1x32xf32>
    %98 = arith.addf %27, %95 : vector<16x32xf32>
    %cst_34 = arith.constant dense<0.000000e+00> : vector<16xf32>
    %99 = vector.multi_reduction <add>, %98, %cst_34 [1] : vector<16x32xf32> to vector<16xf32>
    %100 = vector.shape_cast %99 : vector<16xf32> to vector<16x1xf32>
    %cst_35 = arith.constant 3.200000e+01 : f32
    %101 = vector.broadcast %cst_35 : f32 to vector<16x1xf32>
    %102 = arith.divf %100, %101 : vector<16x1xf32>
    %103 = vector.broadcast %102 : vector<16x1xf32> to vector<16x32xf32>
    %104 = arith.subf %98, %103 : vector<16x32xf32>
    %105 = arith.mulf %104, %104 : vector<16x32xf32>
    %cst_36 = arith.constant dense<0.000000e+00> : vector<16xf32>
    %106 = vector.multi_reduction <add>, %105, %cst_36 [1] : vector<16x32xf32> to vector<16xf32>
    %107 = vector.shape_cast %106 : vector<16xf32> to vector<16x1xf32>
    %cst_37 = arith.constant 3.200000e+01 : f32
    %108 = vector.broadcast %cst_37 : f32 to vector<16x1xf32>
    %109 = arith.divf %107, %108 : vector<16x1xf32>
    %110 = vector.broadcast %102 : vector<16x1xf32> to vector<16x32xf32>
    %111 = arith.subf %98, %110 : vector<16x32xf32>
    %cst_38 = arith.constant 9.99999974E-6 : f32
    %112 = vector.broadcast %cst_38 : f32 to vector<16x1xf32>
    %113 = arith.addf %109, %112 : vector<16x1xf32>
    %114 = math.rsqrt %113 : vector<16x1xf32>
    %115 = vector.broadcast %114 : vector<16x1xf32> to vector<16x32xf32>
    %116 = arith.mulf %111, %115 : vector<16x32xf32>
    %117 = vector.broadcast %96 : vector<1x32xf32> to vector<16x32xf32>
    %118 = arith.mulf %116, %117 : vector<16x32xf32>
    %119 = vector.broadcast %97 : vector<1x32xf32> to vector<16x32xf32>
    %120 = arith.addf %118, %119 : vector<16x32xf32>
    %c216 = arith.constant 216 : index
    %c0_39 = arith.constant 0 : index
    %121 = vector.load %arg1[%c216, %c0_39] : memref<1656x128xf32, #tpu.memory_space<vmem>>, vector<32x64xf32>
    %c248 = arith.constant 248 : index
    %c0_40 = arith.constant 0 : index
    %122 = vector.load %arg1[%c248, %c0_40] : memref<1656x128xf32, #tpu.memory_space<vmem>>, vector<1x64xf32>
    %c256 = arith.constant 256 : index
    %c0_41 = arith.constant 0 : index
    %123 = vector.load %arg1[%c256, %c0_41] : memref<1656x128xf32, #tpu.memory_space<vmem>>, vector<64x32xf32>
    %c320 = arith.constant 320 : index
    %c0_42 = arith.constant 0 : index
    %124 = vector.load %arg1[%c320, %c0_42] : memref<1656x128xf32, #tpu.memory_space<vmem>>, vector<1x32xf32>
    %cst_43 = arith.constant dense<0.000000e+00> : vector<16x64xf32>
    %125 = tpu.matmul %120, %121, %cst_43 {dimension_numbers = #tpu.dot_dimension_numbers<[1], [0], [0], [1], [0, 0, 1, 1], [], []>} : vector<16x32xf32>, vector<32x64xf32>, vector<16x64xf32> -> vector<16x64xf32>
    %126 = vector.broadcast %122 : vector<1x64xf32> to vector<16x64xf32>
    %127 = arith.addf %125, %126 : vector<16x64xf32>
    %cst_44 = arith.constant 0.000000e+00 : f32
    %128 = vector.broadcast %cst_44 : f32 to vector<16x64xf32>
    %129 = arith.maximumf %127, %128 : vector<16x64xf32>
    %cst_45 = arith.constant dense<0.000000e+00> : vector<16x32xf32>
    %130 = tpu.matmul %129, %123, %cst_45 {dimension_numbers = #tpu.dot_dimension_numbers<[1], [0], [0], [1], [0, 0, 1, 1], [], []>} : vector<16x64xf32>, vector<64x32xf32>, vector<16x32xf32> -> vector<16x32xf32>
    %131 = vector.broadcast %124 : vector<1x32xf32> to vector<16x32xf32>
    %132 = arith.addf %130, %131 : vector<16x32xf32>
    %133 = vector.extract_strided_slice %26 {offsets = [2, 0], sizes = [1, 32], strides = [1, 1]} : vector<4x32xf32> to vector<1x32xf32>
    %134 = vector.extract_strided_slice %26 {offsets = [3, 0], sizes = [1, 32], strides = [1, 1]} : vector<4x32xf32> to vector<1x32xf32>
    %135 = arith.addf %120, %132 : vector<16x32xf32>
    %cst_46 = arith.constant dense<0.000000e+00> : vector<16xf32>
    %136 = vector.multi_reduction <add>, %135, %cst_46 [1] : vector<16x32xf32> to vector<16xf32>
    %137 = vector.shape_cast %136 : vector<16xf32> to vector<16x1xf32>
    %cst_47 = arith.constant 3.200000e+01 : f32
    %138 = vector.broadcast %cst_47 : f32 to vector<16x1xf32>
    %139 = arith.divf %137, %138 : vector<16x1xf32>
    %140 = vector.broadcast %139 : vector<16x1xf32> to vector<16x32xf32>
    %141 = arith.subf %135, %140 : vector<16x32xf32>
    %142 = arith.mulf %141, %141 : vector<16x32xf32>
    %cst_48 = arith.constant dense<0.000000e+00> : vector<16xf32>
    %143 = vector.multi_reduction <add>, %142, %cst_48 [1] : vector<16x32xf32> to vector<16xf32>
    %144 = vector.shape_cast %143 : vector<16xf32> to vector<16x1xf32>
    %cst_49 = arith.constant 3.200000e+01 : f32
    %145 = vector.broadcast %cst_49 : f32 to vector<16x1xf32>
    %146 = arith.divf %144, %145 : vector<16x1xf32>
    %147 = vector.broadcast %139 : vector<16x1xf32> to vector<16x32xf32>
    %148 = arith.subf %135, %147 : vector<16x32xf32>
    %cst_50 = arith.constant 9.99999974E-6 : f32
    %149 = vector.broadcast %cst_50 : f32 to vector<16x1xf32>
    %150 = arith.addf %146, %149 : vector<16x1xf32>
    %151 = math.rsqrt %150 : vector<16x1xf32>
    %152 = vector.broadcast %151 : vector<16x1xf32> to vector<16x32xf32>
    %153 = arith.mulf %148, %152 : vector<16x32xf32>
    %154 = vector.broadcast %133 : vector<1x32xf32> to vector<16x32xf32>
    %155 = arith.mulf %153, %154 : vector<16x32xf32>
    %156 = vector.broadcast %134 : vector<1x32xf32> to vector<16x32xf32>
    %157 = arith.addf %155, %156 : vector<16x32xf32>
    %c640 = arith.constant 640 : index
    %c0_51 = arith.constant 0 : index
    %158 = vector.load %arg1[%c640, %c0_51] : memref<1656x128xf32, #tpu.memory_space<vmem>>, vector<4x32xf32>
    %159 = arith.addf %157, %1 : vector<16x32xf32>
    %c336 = arith.constant 336 : index
    %c0_52 = arith.constant 0 : index
    %160 = vector.load %arg1[%c336, %c0_52] : memref<1656x128xf32, #tpu.memory_space<vmem>>, vector<32x128xf32>
    %c368 = arith.constant 368 : index
    %c0_53 = arith.constant 0 : index
    %161 = vector.load %arg1[%c368, %c0_53] : memref<1656x128xf32, #tpu.memory_space<vmem>>, vector<32x128xf32>
    %c400 = arith.constant 400 : index
    %c0_54 = arith.constant 0 : index
    %162 = vector.load %arg1[%c400, %c0_54] : memref<1656x128xf32, #tpu.memory_space<vmem>>, vector<128x32xf32>
    %cst_55 = arith.constant dense<0.000000e+00> : vector<16x128xf32>
    %163 = tpu.matmul %159, %160, %cst_55 {dimension_numbers = #tpu.dot_dimension_numbers<[1], [0], [0], [1], [0, 0, 1, 1], [], []>} : vector<16x32xf32>, vector<32x128xf32>, vector<16x128xf32> -> vector<16x128xf32>
    %cst_56 = arith.constant dense<0.000000e+00> : vector<16x128xf32>
    %164 = tpu.matmul %159, %161, %cst_56 {dimension_numbers = #tpu.dot_dimension_numbers<[1], [0], [0], [1], [0, 0, 1, 1], [], []>} : vector<16x32xf32>, vector<32x128xf32>, vector<16x128xf32> -> vector<16x128xf32>
    %165 = vector.extract_strided_slice %163 {offsets = [0, 0], sizes = [16, 32], strides = [1, 1]} : vector<16x128xf32> to vector<16x32xf32>
    %cst_57 = arith.constant dense<0.000000e+00> : vector<16x16xf32>
    %166 = tpu.matmul %165, %159, %cst_57 {dimension_numbers = #tpu.dot_dimension_numbers<[1], [1], [0], [0], [0, 0, 1, 0], [], []>} : vector<16x32xf32>, vector<16x32xf32>, vector<16x16xf32> -> vector<16x16xf32>
    %cst_58 = arith.constant dense<0xFF800000> : vector<16xf32>
    %167 = vector.multi_reduction <maximumf>, %166, %cst_58 [1] : vector<16x16xf32> to vector<16xf32>
    %168 = vector.shape_cast %167 : vector<16xf32> to vector<16x1xf32>
    %169 = vector.broadcast %168 : vector<16x1xf32> to vector<16x16xf32>
    %170 = arith.subf %166, %169 : vector<16x16xf32>
    %171 = math.exp %170 : vector<16x16xf32>
    %cst_59 = arith.constant dense<0.000000e+00> : vector<16xf32>
    %172 = vector.multi_reduction <add>, %171, %cst_59 [1] : vector<16x16xf32> to vector<16xf32>
    %173 = vector.shape_cast %172 : vector<16xf32> to vector<16x1xf32>
    %174 = tpu.reciprocal %173 : vector<16x1xf32> -> vector<16x1xf32>
    %175 = vector.broadcast %174 : vector<16x1xf32> to vector<16x16xf32>
    %176 = arith.mulf %171, %175 : vector<16x16xf32>
    %177 = vector.extract_strided_slice %164 {offsets = [0, 0], sizes = [16, 32], strides = [1, 1]} : vector<16x128xf32> to vector<16x32xf32>
    %cst_60 = arith.constant dense<0.000000e+00> : vector<16x32xf32>
    %178 = tpu.matmul %176, %177, %cst_60 {dimension_numbers = #tpu.dot_dimension_numbers<[1], [0], [0], [1], [0, 0, 1, 1], [], []>} : vector<16x16xf32>, vector<16x32xf32>, vector<16x32xf32> -> vector<16x32xf32>
    %c0_61 = arith.constant 0 : index
    %c0_62 = arith.constant 0 : index
    %179 = vector.load %arg4[%c0_61, %c0_62] : memref<16x128xf32, #tpu.memory_space<vmem>>, vector<16x32xf32>
    tpu.vector_store %arg4[%c0_61, %c0_62], %178 {strides = array<i32>} : memref<16x128xf32, #tpu.memory_space<vmem>>, vector<16x32xf32>,
    %180 = vector.extract_strided_slice %163 {offsets = [0, 32], sizes = [16, 32], strides = [1, 1]} : vector<16x128xf32> to vector<16x32xf32>
    %cst_63 = arith.constant dense<0.000000e+00> : vector<16x16xf32>
    %181 = tpu.matmul %180, %159, %cst_63 {dimension_numbers = #tpu.dot_dimension_numbers<[1], [1], [0], [0], [0, 0, 1, 0], [], []>} : vector<16x32xf32>, vector<16x32xf32>, vector<16x16xf32> -> vector<16x16xf32>
    %cst_64 = arith.constant dense<0xFF800000> : vector<16xf32>
    %182 = vector.multi_reduction <maximumf>, %181, %cst_64 [1] : vector<16x16xf32> to vector<16xf32>
    %183 = vector.shape_cast %182 : vector<16xf32> to vector<16x1xf32>
    %184 = vector.broadcast %183 : vector<16x1xf32> to vector<16x16xf32>
    %185 = arith.subf %181, %184 : vector<16x16xf32>
    %186 = math.exp %185 : vector<16x16xf32>
    %cst_65 = arith.constant dense<0.000000e+00> : vector<16xf32>
    %187 = vector.multi_reduction <add>, %186, %cst_65 [1] : vector<16x16xf32> to vector<16xf32>
    %188 = vector.shape_cast %187 : vector<16xf32> to vector<16x1xf32>
    %189 = tpu.reciprocal %188 : vector<16x1xf32> -> vector<16x1xf32>
    %190 = vector.broadcast %189 : vector<16x1xf32> to vector<16x16xf32>
    %191 = arith.mulf %186, %190 : vector<16x16xf32>
    %192 = vector.extract_strided_slice %164 {offsets = [0, 32], sizes = [16, 32], strides = [1, 1]} : vector<16x128xf32> to vector<16x32xf32>
    %cst_66 = arith.constant dense<0.000000e+00> : vector<16x32xf32>
    %193 = tpu.matmul %191, %192, %cst_66 {dimension_numbers = #tpu.dot_dimension_numbers<[1], [0], [0], [1], [0, 0, 1, 1], [], []>} : vector<16x16xf32>, vector<16x32xf32>, vector<16x32xf32> -> vector<16x32xf32>
    %c0_67 = arith.constant 0 : index
    %c32_68 = arith.constant 32 : index
    %194 = vector.load %arg4[%c0_67, %c32_68] : memref<16x128xf32, #tpu.memory_space<vmem>>, vector<16x32xf32>
    tpu.vector_store %arg4[%c0_67, %c32_68], %193 {strides = array<i32>} : memref<16x128xf32, #tpu.memory_space<vmem>>, vector<16x32xf32>,
    %195 = vector.extract_strided_slice %163 {offsets = [0, 64], sizes = [16, 32], strides = [1, 1]} : vector<16x128xf32> to vector<16x32xf32>
    %cst_69 = arith.constant dense<0.000000e+00> : vector<16x16xf32>
    %196 = tpu.matmul %195, %159, %cst_69 {dimension_numbers = #tpu.dot_dimension_numbers<[1], [1], [0], [0], [0, 0, 1, 0], [], []>} : vector<16x32xf32>, vector<16x32xf32>, vector<16x16xf32> -> vector<16x16xf32>
    %cst_70 = arith.constant dense<0xFF800000> : vector<16xf32>
    %197 = vector.multi_reduction <maximumf>, %196, %cst_70 [1] : vector<16x16xf32> to vector<16xf32>
    %198 = vector.shape_cast %197 : vector<16xf32> to vector<16x1xf32>
    %199 = vector.broadcast %198 : vector<16x1xf32> to vector<16x16xf32>
    %200 = arith.subf %196, %199 : vector<16x16xf32>
    %201 = math.exp %200 : vector<16x16xf32>
    %cst_71 = arith.constant dense<0.000000e+00> : vector<16xf32>
    %202 = vector.multi_reduction <add>, %201, %cst_71 [1] : vector<16x16xf32> to vector<16xf32>
    %203 = vector.shape_cast %202 : vector<16xf32> to vector<16x1xf32>
    %204 = tpu.reciprocal %203 : vector<16x1xf32> -> vector<16x1xf32>
    %205 = vector.broadcast %204 : vector<16x1xf32> to vector<16x16xf32>
    %206 = arith.mulf %201, %205 : vector<16x16xf32>
    %207 = vector.extract_strided_slice %164 {offsets = [0, 64], sizes = [16, 32], strides = [1, 1]} : vector<16x128xf32> to vector<16x32xf32>
    %cst_72 = arith.constant dense<0.000000e+00> : vector<16x32xf32>
    %208 = tpu.matmul %206, %207, %cst_72 {dimension_numbers = #tpu.dot_dimension_numbers<[1], [0], [0], [1], [0, 0, 1, 1], [], []>} : vector<16x16xf32>, vector<16x32xf32>, vector<16x32xf32> -> vector<16x32xf32>
    %c0_73 = arith.constant 0 : index
    %c64_74 = arith.constant 64 : index
    %209 = vector.load %arg4[%c0_73, %c64_74] : memref<16x128xf32, #tpu.memory_space<vmem>>, vector<16x32xf32>
    tpu.vector_store %arg4[%c0_73, %c64_74], %208 {strides = array<i32>} : memref<16x128xf32, #tpu.memory_space<vmem>>, vector<16x32xf32>,
    %210 = vector.extract_strided_slice %163 {offsets = [0, 96], sizes = [16, 32], strides = [1, 1]} : vector<16x128xf32> to vector<16x32xf32>
    %cst_75 = arith.constant dense<0.000000e+00> : vector<16x16xf32>
    %211 = tpu.matmul %210, %159, %cst_75 {dimension_numbers = #tpu.dot_dimension_numbers<[1], [1], [0], [0], [0, 0, 1, 0], [], []>} : vector<16x32xf32>, vector<16x32xf32>, vector<16x16xf32> -> vector<16x16xf32>
    %cst_76 = arith.constant dense<0xFF800000> : vector<16xf32>
    %212 = vector.multi_reduction <maximumf>, %211, %cst_76 [1] : vector<16x16xf32> to vector<16xf32>
    %213 = vector.shape_cast %212 : vector<16xf32> to vector<16x1xf32>
    %214 = vector.broadcast %213 : vector<16x1xf32> to vector<16x16xf32>
    %215 = arith.subf %211, %214 : vector<16x16xf32>
    %216 = math.exp %215 : vector<16x16xf32>
    %cst_77 = arith.constant dense<0.000000e+00> : vector<16xf32>
    %217 = vector.multi_reduction <add>, %216, %cst_77 [1] : vector<16x16xf32> to vector<16xf32>
    %218 = vector.shape_cast %217 : vector<16xf32> to vector<16x1xf32>
    %219 = tpu.reciprocal %218 : vector<16x1xf32> -> vector<16x1xf32>
    %220 = vector.broadcast %219 : vector<16x1xf32> to vector<16x16xf32>
    %221 = arith.mulf %216, %220 : vector<16x16xf32>
    %222 = vector.extract_strided_slice %164 {offsets = [0, 96], sizes = [16, 32], strides = [1, 1]} : vector<16x128xf32> to vector<16x32xf32>
    %cst_78 = arith.constant dense<0.000000e+00> : vector<16x32xf32>
    %223 = tpu.matmul %221, %222, %cst_78 {dimension_numbers = #tpu.dot_dimension_numbers<[1], [0], [0], [1], [0, 0, 1, 1], [], []>} : vector<16x16xf32>, vector<16x32xf32>, vector<16x32xf32> -> vector<16x32xf32>
    %c0_79 = arith.constant 0 : index
    %c96_80 = arith.constant 96 : index
    %224 = vector.load %arg4[%c0_79, %c96_80] : memref<16x128xf32, #tpu.memory_space<vmem>>, vector<16x32xf32>
    tpu.vector_store %arg4[%c0_79, %c96_80], %223 {strides = array<i32>} : memref<16x128xf32, #tpu.memory_space<vmem>>, vector<16x32xf32>,
    %c0_81 = arith.constant 0 : index
    %c0_82 = arith.constant 0 : index
    %225 = vector.load %arg4[%c0_81, %c0_82] : memref<16x128xf32, #tpu.memory_space<vmem>>, vector<16x128xf32>
    %cst_83 = arith.constant dense<0.000000e+00> : vector<16x32xf32>
    %226 = tpu.matmul %225, %162, %cst_83 {dimension_numbers = #tpu.dot_dimension_numbers<[1], [0], [0], [1], [0, 0, 1, 1], [], []>} : vector<16x128xf32>, vector<128x32xf32>, vector<16x32xf32> -> vector<16x32xf32>
    %227 = arith.addf %226, %159 : vector<16x32xf32>
    %228 = vector.extract_strided_slice %158 {offsets = [0, 0], sizes = [1, 32], strides = [1, 1]} : vector<4x32xf32> to vector<1x32xf32>
    %229 = vector.extract_strided_slice %158 {offsets = [1, 0], sizes = [1, 32], strides = [1, 1]} : vector<4x32xf32> to vector<1x32xf32>
    %230 = arith.addf %159, %227 : vector<16x32xf32>
    %cst_84 = arith.constant dense<0.000000e+00> : vector<16xf32>
    %231 = vector.multi_reduction <add>, %230, %cst_84 [1] : vector<16x32xf32> to vector<16xf32>
    %232 = vector.shape_cast %231 : vector<16xf32> to vector<16x1xf32>
    %cst_85 = arith.constant 3.200000e+01 : f32
    %233 = vector.broadcast %cst_85 : f32 to vector<16x1xf32>
    %234 = arith.divf %232, %233 : vector<16x1xf32>
    %235 = vector.broadcast %234 : vector<16x1xf32> to vector<16x32xf32>
    %236 = arith.subf %230, %235 : vector<16x32xf32>
    %237 = arith.mulf %236, %236 : vector<16x32xf32>
    %cst_86 = arith.constant dense<0.000000e+00> : vector<16xf32>
    %238 = vector.multi_reduction <add>, %237, %cst_86 [1] : vector<16x32xf32> to vector<16xf32>
    %239 = vector.shape_cast %238 : vector<16xf32> to vector<16x1xf32>
    %cst_87 = arith.constant 3.200000e+01 : f32
    %240 = vector.broadcast %cst_87 : f32 to vector<16x1xf32>
    %241 = arith.divf %239, %240 : vector<16x1xf32>
    %242 = vector.broadcast %234 : vector<16x1xf32> to vector<16x32xf32>
    %243 = arith.subf %230, %242 : vector<16x32xf32>
    %cst_88 = arith.constant 9.99999974E-6 : f32
    %244 = vector.broadcast %cst_88 : f32 to vector<16x1xf32>
    %245 = arith.addf %241, %244 : vector<16x1xf32>
    %246 = math.rsqrt %245 : vector<16x1xf32>
    %247 = vector.broadcast %246 : vector<16x1xf32> to vector<16x32xf32>
    %248 = arith.mulf %243, %247 : vector<16x32xf32>
    %249 = vector.broadcast %228 : vector<1x32xf32> to vector<16x32xf32>
    %250 = arith.mulf %248, %249 : vector<16x32xf32>
    %251 = vector.broadcast %229 : vector<1x32xf32> to vector<16x32xf32>
    %252 = arith.addf %250, %251 : vector<16x32xf32>
    %c528 = arith.constant 528 : index
    %c0_89 = arith.constant 0 : index
    %253 = vector.load %arg1[%c528, %c0_89] : memref<1656x128xf32, #tpu.memory_space<vmem>>, vector<32x64xf32>
    %c560 = arith.constant 560 : index
    %c0_90 = arith.constant 0 : index
    %254 = vector.load %arg1[%c560, %c0_90] : memref<1656x128xf32, #tpu.memory_space<vmem>>, vector<1x64xf32>
    %c568 = arith.constant 568 : index
    %c0_91 = arith.constant 0 : index
    %255 = vector.load %arg1[%c568, %c0_91] : memref<1656x128xf32, #tpu.memory_space<vmem>>, vector<64x32xf32>
    %c632 = arith.constant 632 : index
    %c0_92 = arith.constant 0 : index
    %256 = vector.load %arg1[%c632, %c0_92] : memref<1656x128xf32, #tpu.memory_space<vmem>>, vector<1x32xf32>
    %cst_93 = arith.constant dense<0.000000e+00> : vector<16x64xf32>
    %257 = tpu.matmul %252, %253, %cst_93 {dimension_numbers = #tpu.dot_dimension_numbers<[1], [0], [0], [1], [0, 0, 1, 1], [], []>} : vector<16x32xf32>, vector<32x64xf32>, vector<16x64xf32> -> vector<16x64xf32>
    %258 = vector.broadcast %254 : vector<1x64xf32> to vector<16x64xf32>
    %259 = arith.addf %257, %258 : vector<16x64xf32>
    %cst_94 = arith.constant 0.000000e+00 : f32
    %260 = vector.broadcast %cst_94 : f32 to vector<16x64xf32>
    %261 = arith.maximumf %259, %260 : vector<16x64xf32>
    %cst_95 = arith.constant dense<0.000000e+00> : vector<16x32xf32>
    %262 = tpu.matmul %261, %255, %cst_95 {dimension_numbers = #tpu.dot_dimension_numbers<[1], [0], [0], [1], [0, 0, 1, 1], [], []>} : vector<16x64xf32>, vector<64x32xf32>, vector<16x32xf32> -> vector<16x32xf32>
    %263 = vector.broadcast %256 : vector<1x32xf32> to vector<16x32xf32>
    %264 = arith.addf %262, %263 : vector<16x32xf32>
    %265 = vector.extract_strided_slice %158 {offsets = [2, 0], sizes = [1, 32], strides = [1, 1]} : vector<4x32xf32> to vector<1x32xf32>
    %266 = vector.extract_strided_slice %158 {offsets = [3, 0], sizes = [1, 32], strides = [1, 1]} : vector<4x32xf32> to vector<1x32xf32>
    %267 = arith.addf %252, %264 : vector<16x32xf32>
    %cst_96 = arith.constant dense<0.000000e+00> : vector<16xf32>
    %268 = vector.multi_reduction <add>, %267, %cst_96 [1] : vector<16x32xf32> to vector<16xf32>
    %269 = vector.shape_cast %268 : vector<16xf32> to vector<16x1xf32>
    %cst_97 = arith.constant 3.200000e+01 : f32
    %270 = vector.broadcast %cst_97 : f32 to vector<16x1xf32>
    %271 = arith.divf %269, %270 : vector<16x1xf32>
    %272 = vector.broadcast %271 : vector<16x1xf32> to vector<16x32xf32>
    %273 = arith.subf %267, %272 : vector<16x32xf32>
    %274 = arith.mulf %273, %273 : vector<16x32xf32>
    %cst_98 = arith.constant dense<0.000000e+00> : vector<16xf32>
    %275 = vector.multi_reduction <add>, %274, %cst_98 [1] : vector<16x32xf32> to vector<16xf32>
    %276 = vector.shape_cast %275 : vector<16xf32> to vector<16x1xf32>
    %cst_99 = arith.constant 3.200000e+01 : f32
    %277 = vector.broadcast %cst_99 : f32 to vector<16x1xf32>
    %278 = arith.divf %276, %277 : vector<16x1xf32>
    %279 = vector.broadcast %271 : vector<16x1xf32> to vector<16x32xf32>
    %280 = arith.subf %267, %279 : vector<16x32xf32>
    %cst_100 = arith.constant 9.99999974E-6 : f32
    %281 = vector.broadcast %cst_100 : f32 to vector<16x1xf32>
    %282 = arith.addf %278, %281 : vector<16x1xf32>
    %283 = math.rsqrt %282 : vector<16x1xf32>
    %284 = vector.broadcast %283 : vector<16x1xf32> to vector<16x32xf32>
    %285 = arith.mulf %280, %284 : vector<16x32xf32>
    %286 = vector.broadcast %265 : vector<1x32xf32> to vector<16x32xf32>
    %287 = arith.mulf %285, %286 : vector<16x32xf32>
    %288 = vector.broadcast %266 : vector<1x32xf32> to vector<16x32xf32>
    %289 = arith.addf %287, %288 : vector<16x32xf32>
    %cst_101 = arith.constant 0.000000e+00 : f32
    %290 = vector.broadcast %cst_101 : f32 to vector<8x32xf32>
    %c1144 = arith.constant 1144 : index
    %c0_102 = arith.constant 0 : index
    %291 = vector.load %arg1[%c1144, %c0_102] : memref<1656x128xf32, #tpu.memory_space<vmem>>, vector<6x32xf32>
    %c648 = arith.constant 648 : index
    %c0_103 = arith.constant 0 : index
    %292 = vector.load %arg1[%c648, %c0_103] : memref<1656x128xf32, #tpu.memory_space<vmem>>, vector<32x128xf32>
    %c680 = arith.constant 680 : index
    %c0_104 = arith.constant 0 : index
    %293 = vector.load %arg1[%c680, %c0_104] : memref<1656x128xf32, #tpu.memory_space<vmem>>, vector<32x128xf32>
    %c712 = arith.constant 712 : index
    %c0_105 = arith.constant 0 : index
    %294 = vector.load %arg1[%c712, %c0_105] : memref<1656x128xf32, #tpu.memory_space<vmem>>, vector<128x32xf32>
    %cst_106 = arith.constant dense<0.000000e+00> : vector<8x128xf32>
    %295 = tpu.matmul %290, %292, %cst_106 {dimension_numbers = #tpu.dot_dimension_numbers<[1], [0], [0], [1], [0, 0, 1, 1], [], []>} : vector<8x32xf32>, vector<32x128xf32>, vector<8x128xf32> -> vector<8x128xf32>
    %cst_107 = arith.constant dense<0.000000e+00> : vector<8x128xf32>
    %296 = tpu.matmul %290, %293, %cst_107 {dimension_numbers = #tpu.dot_dimension_numbers<[1], [0], [0], [1], [0, 0, 1, 1], [], []>} : vector<8x32xf32>, vector<32x128xf32>, vector<8x128xf32> -> vector<8x128xf32>
    %297 = vector.extract_strided_slice %295 {offsets = [0, 0], sizes = [8, 32], strides = [1, 1]} : vector<8x128xf32> to vector<8x32xf32>
    %cst_108 = arith.constant dense<0.000000e+00> : vector<8x8xf32>
    %298 = tpu.matmul %297, %290, %cst_108 {dimension_numbers = #tpu.dot_dimension_numbers<[1], [1], [0], [0], [0, 0, 1, 0], [], []>} : vector<8x32xf32>, vector<8x32xf32>, vector<8x8xf32> -> vector<8x8xf32>
    %cst_109 = arith.constant dense<0xFF800000> : vector<8xf32>
    %299 = vector.multi_reduction <maximumf>, %298, %cst_109 [1] : vector<8x8xf32> to vector<8xf32>
    %300 = vector.shape_cast %299 : vector<8xf32> to vector<8x1xf32>
    %301 = vector.broadcast %300 : vector<8x1xf32> to vector<8x8xf32>
    %302 = arith.subf %298, %301 : vector<8x8xf32>
    %303 = math.exp %302 : vector<8x8xf32>
    %cst_110 = arith.constant dense<0.000000e+00> : vector<8xf32>
    %304 = vector.multi_reduction <add>, %303, %cst_110 [1] : vector<8x8xf32> to vector<8xf32>
    %305 = vector.shape_cast %304 : vector<8xf32> to vector<8x1xf32>
    %306 = tpu.reciprocal %305 : vector<8x1xf32> -> vector<8x1xf32>
    %307 = vector.broadcast %306 : vector<8x1xf32> to vector<8x8xf32>
    %308 = arith.mulf %303, %307 : vector<8x8xf32>
    %309 = vector.extract_strided_slice %296 {offsets = [0, 0], sizes = [8, 32], strides = [1, 1]} : vector<8x128xf32> to vector<8x32xf32>
    %cst_111 = arith.constant dense<0.000000e+00> : vector<8x32xf32>
    %310 = tpu.matmul %308, %309, %cst_111 {dimension_numbers = #tpu.dot_dimension_numbers<[1], [0], [0], [1], [0, 0, 1, 1], [], []>} : vector<8x8xf32>, vector<8x32xf32>, vector<8x32xf32> -> vector<8x32xf32>
    %c0_112 = arith.constant 0 : index
    %c0_113 = arith.constant 0 : index
    %311 = vector.load %arg4[%c0_112, %c0_113] : memref<16x128xf32, #tpu.memory_space<vmem>>, vector<8x32xf32>
    tpu.vector_store %arg4[%c0_112, %c0_113], %310 {strides = array<i32>} : memref<16x128xf32, #tpu.memory_space<vmem>>, vector<8x32xf32>,
    %312 = vector.extract_strided_slice %295 {offsets = [0, 32], sizes = [8, 32], strides = [1, 1]} : vector<8x128xf32> to vector<8x32xf32>
    %cst_114 = arith.constant dense<0.000000e+00> : vector<8x8xf32>
    %313 = tpu.matmul %312, %290, %cst_114 {dimension_numbers = #tpu.dot_dimension_numbers<[1], [1], [0], [0], [0, 0, 1, 0], [], []>} : vector<8x32xf32>, vector<8x32xf32>, vector<8x8xf32> -> vector<8x8xf32>
    %cst_115 = arith.constant dense<0xFF800000> : vector<8xf32>
    %314 = vector.multi_reduction <maximumf>, %313, %cst_115 [1] : vector<8x8xf32> to vector<8xf32>
    %315 = vector.shape_cast %314 : vector<8xf32> to vector<8x1xf32>
    %316 = vector.broadcast %315 : vector<8x1xf32> to vector<8x8xf32>
    %317 = arith.subf %313, %316 : vector<8x8xf32>
    %318 = math.exp %317 : vector<8x8xf32>
    %cst_116 = arith.constant dense<0.000000e+00> : vector<8xf32>
    %319 = vector.multi_reduction <add>, %318, %cst_116 [1] : vector<8x8xf32> to vector<8xf32>
    %320 = vector.shape_cast %319 : vector<8xf32> to vector<8x1xf32>
    %321 = tpu.reciprocal %320 : vector<8x1xf32> -> vector<8x1xf32>
    %322 = vector.broadcast %321 : vector<8x1xf32> to vector<8x8xf32>
    %323 = arith.mulf %318, %322 : vector<8x8xf32>
    %324 = vector.extract_strided_slice %296 {offsets = [0, 32], sizes = [8, 32], strides = [1, 1]} : vector<8x128xf32> to vector<8x32xf32>
    %cst_117 = arith.constant dense<0.000000e+00> : vector<8x32xf32>
    %325 = tpu.matmul %323, %324, %cst_117 {dimension_numbers = #tpu.dot_dimension_numbers<[1], [0], [0], [1], [0, 0, 1, 1], [], []>} : vector<8x8xf32>, vector<8x32xf32>, vector<8x32xf32> -> vector<8x32xf32>
    %c0_118 = arith.constant 0 : index
    %c32_119 = arith.constant 32 : index
    %326 = vector.load %arg4[%c0_118, %c32_119] : memref<16x128xf32, #tpu.memory_space<vmem>>, vector<8x32xf32>
    tpu.vector_store %arg4[%c0_118, %c32_119], %325 {strides = array<i32>} : memref<16x128xf32, #tpu.memory_space<vmem>>, vector<8x32xf32>,
    %327 = vector.extract_strided_slice %295 {offsets = [0, 64], sizes = [8, 32], strides = [1, 1]} : vector<8x128xf32> to vector<8x32xf32>
    %cst_120 = arith.constant dense<0.000000e+00> : vector<8x8xf32>
    %328 = tpu.matmul %327, %290, %cst_120 {dimension_numbers = #tpu.dot_dimension_numbers<[1], [1], [0], [0], [0, 0, 1, 0], [], []>} : vector<8x32xf32>, vector<8x32xf32>, vector<8x8xf32> -> vector<8x8xf32>
    %cst_121 = arith.constant dense<0xFF800000> : vector<8xf32>
    %329 = vector.multi_reduction <maximumf>, %328, %cst_121 [1] : vector<8x8xf32> to vector<8xf32>
    %330 = vector.shape_cast %329 : vector<8xf32> to vector<8x1xf32>
    %331 = vector.broadcast %330 : vector<8x1xf32> to vector<8x8xf32>
    %332 = arith.subf %328, %331 : vector<8x8xf32>
    %333 = math.exp %332 : vector<8x8xf32>
    %cst_122 = arith.constant dense<0.000000e+00> : vector<8xf32>
    %334 = vector.multi_reduction <add>, %333, %cst_122 [1] : vector<8x8xf32> to vector<8xf32>
    %335 = vector.shape_cast %334 : vector<8xf32> to vector<8x1xf32>
    %336 = tpu.reciprocal %335 : vector<8x1xf32> -> vector<8x1xf32>
    %337 = vector.broadcast %336 : vector<8x1xf32> to vector<8x8xf32>
    %338 = arith.mulf %333, %337 : vector<8x8xf32>
    %339 = vector.extract_strided_slice %296 {offsets = [0, 64], sizes = [8, 32], strides = [1, 1]} : vector<8x128xf32> to vector<8x32xf32>
    %cst_123 = arith.constant dense<0.000000e+00> : vector<8x32xf32>
    %340 = tpu.matmul %338, %339, %cst_123 {dimension_numbers = #tpu.dot_dimension_numbers<[1], [0], [0], [1], [0, 0, 1, 1], [], []>} : vector<8x8xf32>, vector<8x32xf32>, vector<8x32xf32> -> vector<8x32xf32>
    %c0_124 = arith.constant 0 : index
    %c64_125 = arith.constant 64 : index
    %341 = vector.load %arg4[%c0_124, %c64_125] : memref<16x128xf32, #tpu.memory_space<vmem>>, vector<8x32xf32>
    tpu.vector_store %arg4[%c0_124, %c64_125], %340 {strides = array<i32>} : memref<16x128xf32, #tpu.memory_space<vmem>>, vector<8x32xf32>,
    %342 = vector.extract_strided_slice %295 {offsets = [0, 96], sizes = [8, 32], strides = [1, 1]} : vector<8x128xf32> to vector<8x32xf32>
    %cst_126 = arith.constant dense<0.000000e+00> : vector<8x8xf32>
    %343 = tpu.matmul %342, %290, %cst_126 {dimension_numbers = #tpu.dot_dimension_numbers<[1], [1], [0], [0], [0, 0, 1, 0], [], []>} : vector<8x32xf32>, vector<8x32xf32>, vector<8x8xf32> -> vector<8x8xf32>
    %cst_127 = arith.constant dense<0xFF800000> : vector<8xf32>
    %344 = vector.multi_reduction <maximumf>, %343, %cst_127 [1] : vector<8x8xf32> to vector<8xf32>
    %345 = vector.shape_cast %344 : vector<8xf32> to vector<8x1xf32>
    %346 = vector.broadcast %345 : vector<8x1xf32> to vector<8x8xf32>
    %347 = arith.subf %343, %346 : vector<8x8xf32>
    %348 = math.exp %347 : vector<8x8xf32>
    %cst_128 = arith.constant dense<0.000000e+00> : vector<8xf32>
    %349 = vector.multi_reduction <add>, %348, %cst_128 [1] : vector<8x8xf32> to vector<8xf32>
    %350 = vector.shape_cast %349 : vector<8xf32> to vector<8x1xf32>
    %351 = tpu.reciprocal %350 : vector<8x1xf32> -> vector<8x1xf32>
    %352 = vector.broadcast %351 : vector<8x1xf32> to vector<8x8xf32>
    %353 = arith.mulf %348, %352 : vector<8x8xf32>
    %354 = vector.extract_strided_slice %296 {offsets = [0, 96], sizes = [8, 32], strides = [1, 1]} : vector<8x128xf32> to vector<8x32xf32>
    %cst_129 = arith.constant dense<0.000000e+00> : vector<8x32xf32>
    %355 = tpu.matmul %353, %354, %cst_129 {dimension_numbers = #tpu.dot_dimension_numbers<[1], [0], [0], [1], [0, 0, 1, 1], [], []>} : vector<8x8xf32>, vector<8x32xf32>, vector<8x32xf32> -> vector<8x32xf32>
    %c0_130 = arith.constant 0 : index
    %c96_131 = arith.constant 96 : index
    %356 = vector.load %arg4[%c0_130, %c96_131] : memref<16x128xf32, #tpu.memory_space<vmem>>, vector<8x32xf32>
    tpu.vector_store %arg4[%c0_130, %c96_131], %355 {strides = array<i32>} : memref<16x128xf32, #tpu.memory_space<vmem>>, vector<8x32xf32>,
    %c0_132 = arith.constant 0 : index
    %c0_133 = arith.constant 0 : index
    %357 = vector.load %arg4[%c0_132, %c0_133] : memref<16x128xf32, #tpu.memory_space<vmem>>, vector<8x128xf32>
    %cst_134 = arith.constant dense<0.000000e+00> : vector<8x32xf32>
    %358 = tpu.matmul %357, %294, %cst_134 {dimension_numbers = #tpu.dot_dimension_numbers<[1], [0], [0], [1], [0, 0, 1, 1], [], []>} : vector<8x128xf32>, vector<128x32xf32>, vector<8x32xf32> -> vector<8x32xf32>
    %359 = arith.addf %358, %290 : vector<8x32xf32>
    %360 = vector.extract_strided_slice %291 {offsets = [0, 0], sizes = [1, 32], strides = [1, 1]} : vector<6x32xf32> to vector<1x32xf32>
    %361 = vector.extract_strided_slice %291 {offsets = [1, 0], sizes = [1, 32], strides = [1, 1]} : vector<6x32xf32> to vector<1x32xf32>
    %362 = arith.addf %290, %359 : vector<8x32xf32>
    %cst_135 = arith.constant dense<0.000000e+00> : vector<8xf32>
    %363 = vector.multi_reduction <add>, %362, %cst_135 [1] : vector<8x32xf32> to vector<8xf32>
    %364 = vector.shape_cast %363 : vector<8xf32> to vector<8x1xf32>
    %cst_136 = arith.constant 3.200000e+01 : f32
    %365 = vector.broadcast %cst_136 : f32 to vector<8x1xf32>
    %366 = arith.divf %364, %365 : vector<8x1xf32>
    %367 = vector.broadcast %366 : vector<8x1xf32> to vector<8x32xf32>
    %368 = arith.subf %362, %367 : vector<8x32xf32>
    %369 = arith.mulf %368, %368 : vector<8x32xf32>
    %cst_137 = arith.constant dense<0.000000e+00> : vector<8xf32>
    %370 = vector.multi_reduction <add>, %369, %cst_137 [1] : vector<8x32xf32> to vector<8xf32>
    %371 = vector.shape_cast %370 : vector<8xf32> to vector<8x1xf32>
    %cst_138 = arith.constant 3.200000e+01 : f32
    %372 = vector.broadcast %cst_138 : f32 to vector<8x1xf32>
    %373 = arith.divf %371, %372 : vector<8x1xf32>
    %374 = vector.broadcast %366 : vector<8x1xf32> to vector<8x32xf32>
    %375 = arith.subf %362, %374 : vector<8x32xf32>
    %cst_139 = arith.constant 9.99999974E-6 : f32
    %376 = vector.broadcast %cst_139 : f32 to vector<8x1xf32>
    %377 = arith.addf %373, %376 : vector<8x1xf32>
    %378 = math.rsqrt %377 : vector<8x1xf32>
    %379 = vector.broadcast %378 : vector<8x1xf32> to vector<8x32xf32>
    %380 = arith.mulf %375, %379 : vector<8x32xf32>
    %381 = vector.broadcast %360 : vector<1x32xf32> to vector<8x32xf32>
    %382 = arith.mulf %380, %381 : vector<8x32xf32>
    %383 = vector.broadcast %361 : vector<1x32xf32> to vector<8x32xf32>
    %384 = arith.addf %382, %383 : vector<8x32xf32>
    %385 = arith.addf %289, %1 : vector<16x32xf32>
    %c840 = arith.constant 840 : index
    %c0_140 = arith.constant 0 : index
    %386 = vector.load %arg1[%c840, %c0_140] : memref<1656x128xf32, #tpu.memory_space<vmem>>, vector<32x128xf32>
    %c872 = arith.constant 872 : index
    %c0_141 = arith.constant 0 : index
    %387 = vector.load %arg1[%c872, %c0_141] : memref<1656x128xf32, #tpu.memory_space<vmem>>, vector<32x128xf32>
    %c904 = arith.constant 904 : index
    %c0_142 = arith.constant 0 : index
    %388 = vector.load %arg1[%c904, %c0_142] : memref<1656x128xf32, #tpu.memory_space<vmem>>, vector<128x32xf32>
    %cst_143 = arith.constant dense<0.000000e+00> : vector<8x128xf32>
    %389 = tpu.matmul %384, %386, %cst_143 {dimension_numbers = #tpu.dot_dimension_numbers<[1], [0], [0], [1], [0, 0, 1, 1], [], []>} : vector<8x32xf32>, vector<32x128xf32>, vector<8x128xf32> -> vector<8x128xf32>
    %cst_144 = arith.constant dense<0.000000e+00> : vector<16x128xf32>
    %390 = tpu.matmul %385, %387, %cst_144 {dimension_numbers = #tpu.dot_dimension_numbers<[1], [0], [0], [1], [0, 0, 1, 1], [], []>} : vector<16x32xf32>, vector<32x128xf32>, vector<16x128xf32> -> vector<16x128xf32>
    %391 = vector.extract_strided_slice %389 {offsets = [0, 0], sizes = [8, 32], strides = [1, 1]} : vector<8x128xf32> to vector<8x32xf32>
    %cst_145 = arith.constant dense<0.000000e+00> : vector<8x16xf32>
    %392 = tpu.matmul %391, %385, %cst_145 {dimension_numbers = #tpu.dot_dimension_numbers<[1], [1], [0], [0], [0, 0, 1, 0], [], []>} : vector<8x32xf32>, vector<16x32xf32>, vector<8x16xf32> -> vector<8x16xf32>
    %cst_146 = arith.constant dense<0xFF800000> : vector<8xf32>
    %393 = vector.multi_reduction <maximumf>, %392, %cst_146 [1] : vector<8x16xf32> to vector<8xf32>
    %394 = vector.shape_cast %393 : vector<8xf32> to vector<8x1xf32>
    %395 = vector.broadcast %394 : vector<8x1xf32> to vector<8x16xf32>
    %396 = arith.subf %392, %395 : vector<8x16xf32>
    %397 = math.exp %396 : vector<8x16xf32>
    %cst_147 = arith.constant dense<0.000000e+00> : vector<8xf32>
    %398 = vector.multi_reduction <add>, %397, %cst_147 [1] : vector<8x16xf32> to vector<8xf32>
    %399 = vector.shape_cast %398 : vector<8xf32> to vector<8x1xf32>
    %400 = tpu.reciprocal %399 : vector<8x1xf32> -> vector<8x1xf32>
    %401 = vector.broadcast %400 : vector<8x1xf32> to vector<8x16xf32>
    %402 = arith.mulf %397, %401 : vector<8x16xf32>
    %403 = vector.extract_strided_slice %390 {offsets = [0, 0], sizes = [16, 32], strides = [1, 1]} : vector<16x128xf32> to vector<16x32xf32>
    %cst_148 = arith.constant dense<0.000000e+00> : vector<8x32xf32>
    %404 = tpu.matmul %402, %403, %cst_148 {dimension_numbers = #tpu.dot_dimension_numbers<[1], [0], [0], [1], [0, 0, 1, 1], [], []>} : vector<8x16xf32>, vector<16x32xf32>, vector<8x32xf32> -> vector<8x32xf32>
    %c0_149 = arith.constant 0 : index
    %c0_150 = arith.constant 0 : index
    %405 = vector.load %arg4[%c0_149, %c0_150] : memref<16x128xf32, #tpu.memory_space<vmem>>, vector<8x32xf32>
    tpu.vector_store %arg4[%c0_149, %c0_150], %404 {strides = array<i32>} : memref<16x128xf32, #tpu.memory_space<vmem>>, vector<8x32xf32>,
    %406 = vector.extract_strided_slice %389 {offsets = [0, 32], sizes = [8, 32], strides = [1, 1]} : vector<8x128xf32> to vector<8x32xf32>
    %cst_151 = arith.constant dense<0.000000e+00> : vector<8x16xf32>
    %407 = tpu.matmul %406, %385, %cst_151 {dimension_numbers = #tpu.dot_dimension_numbers<[1], [1], [0], [0], [0, 0, 1, 0], [], []>} : vector<8x32xf32>, vector<16x32xf32>, vector<8x16xf32> -> vector<8x16xf32>
    %cst_152 = arith.constant dense<0xFF800000> : vector<8xf32>
    %408 = vector.multi_reduction <maximumf>, %407, %cst_152 [1] : vector<8x16xf32> to vector<8xf32>
    %409 = vector.shape_cast %408 : vector<8xf32> to vector<8x1xf32>
    %410 = vector.broadcast %409 : vector<8x1xf32> to vector<8x16xf32>
    %411 = arith.subf %407, %410 : vector<8x16xf32>
    %412 = math.exp %411 : vector<8x16xf32>
    %cst_153 = arith.constant dense<0.000000e+00> : vector<8xf32>
    %413 = vector.multi_reduction <add>, %412, %cst_153 [1] : vector<8x16xf32> to vector<8xf32>
    %414 = vector.shape_cast %413 : vector<8xf32> to vector<8x1xf32>
    %415 = tpu.reciprocal %414 : vector<8x1xf32> -> vector<8x1xf32>
    %416 = vector.broadcast %415 : vector<8x1xf32> to vector<8x16xf32>
    %417 = arith.mulf %412, %416 : vector<8x16xf32>
    %418 = vector.extract_strided_slice %390 {offsets = [0, 32], sizes = [16, 32], strides = [1, 1]} : vector<16x128xf32> to vector<16x32xf32>
    %cst_154 = arith.constant dense<0.000000e+00> : vector<8x32xf32>
    %419 = tpu.matmul %417, %418, %cst_154 {dimension_numbers = #tpu.dot_dimension_numbers<[1], [0], [0], [1], [0, 0, 1, 1], [], []>} : vector<8x16xf32>, vector<16x32xf32>, vector<8x32xf32> -> vector<8x32xf32>
    %c0_155 = arith.constant 0 : index
    %c32_156 = arith.constant 32 : index
    %420 = vector.load %arg4[%c0_155, %c32_156] : memref<16x128xf32, #tpu.memory_space<vmem>>, vector<8x32xf32>
    tpu.vector_store %arg4[%c0_155, %c32_156], %419 {strides = array<i32>} : memref<16x128xf32, #tpu.memory_space<vmem>>, vector<8x32xf32>,
    %421 = vector.extract_strided_slice %389 {offsets = [0, 64], sizes = [8, 32], strides = [1, 1]} : vector<8x128xf32> to vector<8x32xf32>
    %cst_157 = arith.constant dense<0.000000e+00> : vector<8x16xf32>
    %422 = tpu.matmul %421, %385, %cst_157 {dimension_numbers = #tpu.dot_dimension_numbers<[1], [1], [0], [0], [0, 0, 1, 0], [], []>} : vector<8x32xf32>, vector<16x32xf32>, vector<8x16xf32> -> vector<8x16xf32>
    %cst_158 = arith.constant dense<0xFF800000> : vector<8xf32>
    %423 = vector.multi_reduction <maximumf>, %422, %cst_158 [1] : vector<8x16xf32> to vector<8xf32>
    %424 = vector.shape_cast %423 : vector<8xf32> to vector<8x1xf32>
    %425 = vector.broadcast %424 : vector<8x1xf32> to vector<8x16xf32>
    %426 = arith.subf %422, %425 : vector<8x16xf32>
    %427 = math.exp %426 : vector<8x16xf32>
    %cst_159 = arith.constant dense<0.000000e+00> : vector<8xf32>
    %428 = vector.multi_reduction <add>, %427, %cst_159 [1] : vector<8x16xf32> to vector<8xf32>
    %429 = vector.shape_cast %428 : vector<8xf32> to vector<8x1xf32>
    %430 = tpu.reciprocal %429 : vector<8x1xf32> -> vector<8x1xf32>
    %431 = vector.broadcast %430 : vector<8x1xf32> to vector<8x16xf32>
    %432 = arith.mulf %427, %431 : vector<8x16xf32>
    %433 = vector.extract_strided_slice %390 {offsets = [0, 64], sizes = [16, 32], strides = [1, 1]} : vector<16x128xf32> to vector<16x32xf32>
    %cst_160 = arith.constant dense<0.000000e+00> : vector<8x32xf32>
    %434 = tpu.matmul %432, %433, %cst_160 {dimension_numbers = #tpu.dot_dimension_numbers<[1], [0], [0], [1], [0, 0, 1, 1], [], []>} : vector<8x16xf32>, vector<16x32xf32>, vector<8x32xf32> -> vector<8x32xf32>
    %c0_161 = arith.constant 0 : index
    %c64_162 = arith.constant 64 : index
    %435 = vector.load %arg4[%c0_161, %c64_162] : memref<16x128xf32, #tpu.memory_space<vmem>>, vector<8x32xf32>
    tpu.vector_store %arg4[%c0_161, %c64_162], %434 {strides = array<i32>} : memref<16x128xf32, #tpu.memory_space<vmem>>, vector<8x32xf32>,
    %436 = vector.extract_strided_slice %389 {offsets = [0, 96], sizes = [8, 32], strides = [1, 1]} : vector<8x128xf32> to vector<8x32xf32>
    %cst_163 = arith.constant dense<0.000000e+00> : vector<8x16xf32>
    %437 = tpu.matmul %436, %385, %cst_163 {dimension_numbers = #tpu.dot_dimension_numbers<[1], [1], [0], [0], [0, 0, 1, 0], [], []>} : vector<8x32xf32>, vector<16x32xf32>, vector<8x16xf32> -> vector<8x16xf32>
    %cst_164 = arith.constant dense<0xFF800000> : vector<8xf32>
    %438 = vector.multi_reduction <maximumf>, %437, %cst_164 [1] : vector<8x16xf32> to vector<8xf32>
    %439 = vector.shape_cast %438 : vector<8xf32> to vector<8x1xf32>
    %440 = vector.broadcast %439 : vector<8x1xf32> to vector<8x16xf32>
    %441 = arith.subf %437, %440 : vector<8x16xf32>
    %442 = math.exp %441 : vector<8x16xf32>
    %cst_165 = arith.constant dense<0.000000e+00> : vector<8xf32>
    %443 = vector.multi_reduction <add>, %442, %cst_165 [1] : vector<8x16xf32> to vector<8xf32>
    %444 = vector.shape_cast %443 : vector<8xf32> to vector<8x1xf32>
    %445 = tpu.reciprocal %444 : vector<8x1xf32> -> vector<8x1xf32>
    %446 = vector.broadcast %445 : vector<8x1xf32> to vector<8x16xf32>
    %447 = arith.mulf %442, %446 : vector<8x16xf32>
    %448 = vector.extract_strided_slice %390 {offsets = [0, 96], sizes = [16, 32], strides = [1, 1]} : vector<16x128xf32> to vector<16x32xf32>
    %cst_166 = arith.constant dense<0.000000e+00> : vector<8x32xf32>
    %449 = tpu.matmul %447, %448, %cst_166 {dimension_numbers = #tpu.dot_dimension_numbers<[1], [0], [0], [1], [0, 0, 1, 1], [], []>} : vector<8x16xf32>, vector<16x32xf32>, vector<8x32xf32> -> vector<8x32xf32>
    %c0_167 = arith.constant 0 : index
    %c96_168 = arith.constant 96 : index
    %450 = vector.load %arg4[%c0_167, %c96_168] : memref<16x128xf32, #tpu.memory_space<vmem>>, vector<8x32xf32>
    tpu.vector_store %arg4[%c0_167, %c96_168], %449 {strides = array<i32>} : memref<16x128xf32, #tpu.memory_space<vmem>>, vector<8x32xf32>,
    %c0_169 = arith.constant 0 : index
    %c0_170 = arith.constant 0 : index
    %451 = vector.load %arg4[%c0_169, %c0_170] : memref<16x128xf32, #tpu.memory_space<vmem>>, vector<8x128xf32>
    %cst_171 = arith.constant dense<0.000000e+00> : vector<8x32xf32>
    %452 = tpu.matmul %451, %388, %cst_171 {dimension_numbers = #tpu.dot_dimension_numbers<[1], [0], [0], [1], [0, 0, 1, 1], [], []>} : vector<8x128xf32>, vector<128x32xf32>, vector<8x32xf32> -> vector<8x32xf32>
    %453 = arith.addf %452, %384 : vector<8x32xf32>
    %454 = vector.extract_strided_slice %291 {offsets = [2, 0], sizes = [1, 32], strides = [1, 1]} : vector<6x32xf32> to vector<1x32xf32>
    %455 = vector.extract_strided_slice %291 {offsets = [3, 0], sizes = [1, 32], strides = [1, 1]} : vector<6x32xf32> to vector<1x32xf32>
    %456 = arith.addf %384, %453 : vector<8x32xf32>
    %cst_172 = arith.constant dense<0.000000e+00> : vector<8xf32>
    %457 = vector.multi_reduction <add>, %456, %cst_172 [1] : vector<8x32xf32> to vector<8xf32>
    %458 = vector.shape_cast %457 : vector<8xf32> to vector<8x1xf32>
    %cst_173 = arith.constant 3.200000e+01 : f32
    %459 = vector.broadcast %cst_173 : f32 to vector<8x1xf32>
    %460 = arith.divf %458, %459 : vector<8x1xf32>
    %461 = vector.broadcast %460 : vector<8x1xf32> to vector<8x32xf32>
    %462 = arith.subf %456, %461 : vector<8x32xf32>
    %463 = arith.mulf %462, %462 : vector<8x32xf32>
    %cst_174 = arith.constant dense<0.000000e+00> : vector<8xf32>
    %464 = vector.multi_reduction <add>, %463, %cst_174 [1] : vector<8x32xf32> to vector<8xf32>
    %465 = vector.shape_cast %464 : vector<8xf32> to vector<8x1xf32>
    %cst_175 = arith.constant 3.200000e+01 : f32
    %466 = vector.broadcast %cst_175 : f32 to vector<8x1xf32>
    %467 = arith.divf %465, %466 : vector<8x1xf32>
    %468 = vector.broadcast %460 : vector<8x1xf32> to vector<8x32xf32>
    %469 = arith.subf %456, %468 : vector<8x32xf32>
    %cst_176 = arith.constant 9.99999974E-6 : f32
    %470 = vector.broadcast %cst_176 : f32 to vector<8x1xf32>
    %471 = arith.addf %467, %470 : vector<8x1xf32>
    %472 = math.rsqrt %471 : vector<8x1xf32>
    %473 = vector.broadcast %472 : vector<8x1xf32> to vector<8x32xf32>
    %474 = arith.mulf %469, %473 : vector<8x32xf32>
    %475 = vector.broadcast %454 : vector<1x32xf32> to vector<8x32xf32>
    %476 = arith.mulf %474, %475 : vector<8x32xf32>
    %477 = vector.broadcast %455 : vector<1x32xf32> to vector<8x32xf32>
    %478 = arith.addf %476, %477 : vector<8x32xf32>
    %c1032 = arith.constant 1032 : index
    %c0_177 = arith.constant 0 : index
    %479 = vector.load %arg1[%c1032, %c0_177] : memref<1656x128xf32, #tpu.memory_space<vmem>>, vector<32x64xf32>
    %c1064 = arith.constant 1064 : index
    %c0_178 = arith.constant 0 : index
    %480 = vector.load %arg1[%c1064, %c0_178] : memref<1656x128xf32, #tpu.memory_space<vmem>>, vector<1x64xf32>
    %c1072 = arith.constant 1072 : index
    %c0_179 = arith.constant 0 : index
    %481 = vector.load %arg1[%c1072, %c0_179] : memref<1656x128xf32, #tpu.memory_space<vmem>>, vector<64x32xf32>
    %c1136 = arith.constant 1136 : index
    %c0_180 = arith.constant 0 : index
    %482 = vector.load %arg1[%c1136, %c0_180] : memref<1656x128xf32, #tpu.memory_space<vmem>>, vector<1x32xf32>
    %cst_181 = arith.constant dense<0.000000e+00> : vector<8x64xf32>
    %483 = tpu.matmul %478, %479, %cst_181 {dimension_numbers = #tpu.dot_dimension_numbers<[1], [0], [0], [1], [0, 0, 1, 1], [], []>} : vector<8x32xf32>, vector<32x64xf32>, vector<8x64xf32> -> vector<8x64xf32>
    %484 = vector.broadcast %480 : vector<1x64xf32> to vector<8x64xf32>
    %485 = arith.addf %483, %484 : vector<8x64xf32>
    %cst_182 = arith.constant 0.000000e+00 : f32
    %486 = vector.broadcast %cst_182 : f32 to vector<8x64xf32>
    %487 = arith.maximumf %485, %486 : vector<8x64xf32>
    %cst_183 = arith.constant dense<0.000000e+00> : vector<8x32xf32>
    %488 = tpu.matmul %487, %481, %cst_183 {dimension_numbers = #tpu.dot_dimension_numbers<[1], [0], [0], [1], [0, 0, 1, 1], [], []>} : vector<8x64xf32>, vector<64x32xf32>, vector<8x32xf32> -> vector<8x32xf32>
    %489 = vector.broadcast %482 : vector<1x32xf32> to vector<8x32xf32>
    %490 = arith.addf %488, %489 : vector<8x32xf32>
    %491 = vector.extract_strided_slice %291 {offsets = [4, 0], sizes = [1, 32], strides = [1, 1]} : vector<6x32xf32> to vector<1x32xf32>
    %492 = vector.extract_strided_slice %291 {offsets = [5, 0], sizes = [1, 32], strides = [1, 1]} : vector<6x32xf32> to vector<1x32xf32>
    %493 = arith.addf %478, %490 : vector<8x32xf32>
    %cst_184 = arith.constant dense<0.000000e+00> : vector<8xf32>
    %494 = vector.multi_reduction <add>, %493, %cst_184 [1] : vector<8x32xf32> to vector<8xf32>
    %495 = vector.shape_cast %494 : vector<8xf32> to vector<8x1xf32>
    %cst_185 = arith.constant 3.200000e+01 : f32
    %496 = vector.broadcast %cst_185 : f32 to vector<8x1xf32>
    %497 = arith.divf %495, %496 : vector<8x1xf32>
    %498 = vector.broadcast %497 : vector<8x1xf32> to vector<8x32xf32>
    %499 = arith.subf %493, %498 : vector<8x32xf32>
    %500 = arith.mulf %499, %499 : vector<8x32xf32>
    %cst_186 = arith.constant dense<0.000000e+00> : vector<8xf32>
    %501 = vector.multi_reduction <add>, %500, %cst_186 [1] : vector<8x32xf32> to vector<8xf32>
    %502 = vector.shape_cast %501 : vector<8xf32> to vector<8x1xf32>
    %cst_187 = arith.constant 3.200000e+01 : f32
    %503 = vector.broadcast %cst_187 : f32 to vector<8x1xf32>
    %504 = arith.divf %502, %503 : vector<8x1xf32>
    %505 = vector.broadcast %497 : vector<8x1xf32> to vector<8x32xf32>
    %506 = arith.subf %493, %505 : vector<8x32xf32>
    %cst_188 = arith.constant 9.99999974E-6 : f32
    %507 = vector.broadcast %cst_188 : f32 to vector<8x1xf32>
    %508 = arith.addf %504, %507 : vector<8x1xf32>
    %509 = math.rsqrt %508 : vector<8x1xf32>
    %510 = vector.broadcast %509 : vector<8x1xf32> to vector<8x32xf32>
    %511 = arith.mulf %506, %510 : vector<8x32xf32>
    %512 = vector.broadcast %491 : vector<1x32xf32> to vector<8x32xf32>
    %513 = arith.mulf %511, %512 : vector<8x32xf32>
    %514 = vector.broadcast %492 : vector<1x32xf32> to vector<8x32xf32>
    %515 = arith.addf %513, %514 : vector<8x32xf32>
    %c1648 = arith.constant 1648 : index
    %c0_189 = arith.constant 0 : index
    %516 = vector.load %arg1[%c1648, %c0_189] : memref<1656x128xf32, #tpu.memory_space<vmem>>, vector<6x32xf32>
    %c1152 = arith.constant 1152 : index
    %c0_190 = arith.constant 0 : index
    %517 = vector.load %arg1[%c1152, %c0_190] : memref<1656x128xf32, #tpu.memory_space<vmem>>, vector<32x128xf32>
    %c1184 = arith.constant 1184 : index
    %c0_191 = arith.constant 0 : index
    %518 = vector.load %arg1[%c1184, %c0_191] : memref<1656x128xf32, #tpu.memory_space<vmem>>, vector<32x128xf32>
    %c1216 = arith.constant 1216 : index
    %c0_192 = arith.constant 0 : index
    %519 = vector.load %arg1[%c1216, %c0_192] : memref<1656x128xf32, #tpu.memory_space<vmem>>, vector<128x32xf32>
    %cst_193 = arith.constant dense<0.000000e+00> : vector<8x128xf32>
    %520 = tpu.matmul %515, %517, %cst_193 {dimension_numbers = #tpu.dot_dimension_numbers<[1], [0], [0], [1], [0, 0, 1, 1], [], []>} : vector<8x32xf32>, vector<32x128xf32>, vector<8x128xf32> -> vector<8x128xf32>
    %cst_194 = arith.constant dense<0.000000e+00> : vector<8x128xf32>
    %521 = tpu.matmul %515, %518, %cst_194 {dimension_numbers = #tpu.dot_dimension_numbers<[1], [0], [0], [1], [0, 0, 1, 1], [], []>} : vector<8x32xf32>, vector<32x128xf32>, vector<8x128xf32> -> vector<8x128xf32>
    %522 = vector.extract_strided_slice %520 {offsets = [0, 0], sizes = [8, 32], strides = [1, 1]} : vector<8x128xf32> to vector<8x32xf32>
    %cst_195 = arith.constant dense<0.000000e+00> : vector<8x8xf32>
    %523 = tpu.matmul %522, %515, %cst_195 {dimension_numbers = #tpu.dot_dimension_numbers<[1], [1], [0], [0], [0, 0, 1, 0], [], []>} : vector<8x32xf32>, vector<8x32xf32>, vector<8x8xf32> -> vector<8x8xf32>
    %cst_196 = arith.constant dense<0xFF800000> : vector<8xf32>
    %524 = vector.multi_reduction <maximumf>, %523, %cst_196 [1] : vector<8x8xf32> to vector<8xf32>
    %525 = vector.shape_cast %524 : vector<8xf32> to vector<8x1xf32>
    %526 = vector.broadcast %525 : vector<8x1xf32> to vector<8x8xf32>
    %527 = arith.subf %523, %526 : vector<8x8xf32>
    %528 = math.exp %527 : vector<8x8xf32>
    %cst_197 = arith.constant dense<0.000000e+00> : vector<8xf32>
    %529 = vector.multi_reduction <add>, %528, %cst_197 [1] : vector<8x8xf32> to vector<8xf32>
    %530 = vector.shape_cast %529 : vector<8xf32> to vector<8x1xf32>
    %531 = tpu.reciprocal %530 : vector<8x1xf32> -> vector<8x1xf32>
    %532 = vector.broadcast %531 : vector<8x1xf32> to vector<8x8xf32>
    %533 = arith.mulf %528, %532 : vector<8x8xf32>
    %534 = vector.extract_strided_slice %521 {offsets = [0, 0], sizes = [8, 32], strides = [1, 1]} : vector<8x128xf32> to vector<8x32xf32>
    %cst_198 = arith.constant dense<0.000000e+00> : vector<8x32xf32>
    %535 = tpu.matmul %533, %534, %cst_198 {dimension_numbers = #tpu.dot_dimension_numbers<[1], [0], [0], [1], [0, 0, 1, 1], [], []>} : vector<8x8xf32>, vector<8x32xf32>, vector<8x32xf32> -> vector<8x32xf32>
    %c0_199 = arith.constant 0 : index
    %c0_200 = arith.constant 0 : index
    %536 = vector.load %arg4[%c0_199, %c0_200] : memref<16x128xf32, #tpu.memory_space<vmem>>, vector<8x32xf32>
    tpu.vector_store %arg4[%c0_199, %c0_200], %535 {strides = array<i32>} : memref<16x128xf32, #tpu.memory_space<vmem>>, vector<8x32xf32>,
    %537 = vector.extract_strided_slice %520 {offsets = [0, 32], sizes = [8, 32], strides = [1, 1]} : vector<8x128xf32> to vector<8x32xf32>
    %cst_201 = arith.constant dense<0.000000e+00> : vector<8x8xf32>
    %538 = tpu.matmul %537, %515, %cst_201 {dimension_numbers = #tpu.dot_dimension_numbers<[1], [1], [0], [0], [0, 0, 1, 0], [], []>} : vector<8x32xf32>, vector<8x32xf32>, vector<8x8xf32> -> vector<8x8xf32>
    %cst_202 = arith.constant dense<0xFF800000> : vector<8xf32>
    %539 = vector.multi_reduction <maximumf>, %538, %cst_202 [1] : vector<8x8xf32> to vector<8xf32>
    %540 = vector.shape_cast %539 : vector<8xf32> to vector<8x1xf32>
    %541 = vector.broadcast %540 : vector<8x1xf32> to vector<8x8xf32>
    %542 = arith.subf %538, %541 : vector<8x8xf32>
    %543 = math.exp %542 : vector<8x8xf32>
    %cst_203 = arith.constant dense<0.000000e+00> : vector<8xf32>
    %544 = vector.multi_reduction <add>, %543, %cst_203 [1] : vector<8x8xf32> to vector<8xf32>
    %545 = vector.shape_cast %544 : vector<8xf32> to vector<8x1xf32>
    %546 = tpu.reciprocal %545 : vector<8x1xf32> -> vector<8x1xf32>
    %547 = vector.broadcast %546 : vector<8x1xf32> to vector<8x8xf32>
    %548 = arith.mulf %543, %547 : vector<8x8xf32>
    %549 = vector.extract_strided_slice %521 {offsets = [0, 32], sizes = [8, 32], strides = [1, 1]} : vector<8x128xf32> to vector<8x32xf32>
    %cst_204 = arith.constant dense<0.000000e+00> : vector<8x32xf32>
    %550 = tpu.matmul %548, %549, %cst_204 {dimension_numbers = #tpu.dot_dimension_numbers<[1], [0], [0], [1], [0, 0, 1, 1], [], []>} : vector<8x8xf32>, vector<8x32xf32>, vector<8x32xf32> -> vector<8x32xf32>
    %c0_205 = arith.constant 0 : index
    %c32_206 = arith.constant 32 : index
    %551 = vector.load %arg4[%c0_205, %c32_206] : memref<16x128xf32, #tpu.memory_space<vmem>>, vector<8x32xf32>
    tpu.vector_store %arg4[%c0_205, %c32_206], %550 {strides = array<i32>} : memref<16x128xf32, #tpu.memory_space<vmem>>, vector<8x32xf32>,
    %552 = vector.extract_strided_slice %520 {offsets = [0, 64], sizes = [8, 32], strides = [1, 1]} : vector<8x128xf32> to vector<8x32xf32>
    %cst_207 = arith.constant dense<0.000000e+00> : vector<8x8xf32>
    %553 = tpu.matmul %552, %515, %cst_207 {dimension_numbers = #tpu.dot_dimension_numbers<[1], [1], [0], [0], [0, 0, 1, 0], [], []>} : vector<8x32xf32>, vector<8x32xf32>, vector<8x8xf32> -> vector<8x8xf32>
    %cst_208 = arith.constant dense<0xFF800000> : vector<8xf32>
    %554 = vector.multi_reduction <maximumf>, %553, %cst_208 [1] : vector<8x8xf32> to vector<8xf32>
    %555 = vector.shape_cast %554 : vector<8xf32> to vector<8x1xf32>
    %556 = vector.broadcast %555 : vector<8x1xf32> to vector<8x8xf32>
    %557 = arith.subf %553, %556 : vector<8x8xf32>
    %558 = math.exp %557 : vector<8x8xf32>
    %cst_209 = arith.constant dense<0.000000e+00> : vector<8xf32>
    %559 = vector.multi_reduction <add>, %558, %cst_209 [1] : vector<8x8xf32> to vector<8xf32>
    %560 = vector.shape_cast %559 : vector<8xf32> to vector<8x1xf32>
    %561 = tpu.reciprocal %560 : vector<8x1xf32> -> vector<8x1xf32>
    %562 = vector.broadcast %561 : vector<8x1xf32> to vector<8x8xf32>
    %563 = arith.mulf %558, %562 : vector<8x8xf32>
    %564 = vector.extract_strided_slice %521 {offsets = [0, 64], sizes = [8, 32], strides = [1, 1]} : vector<8x128xf32> to vector<8x32xf32>
    %cst_210 = arith.constant dense<0.000000e+00> : vector<8x32xf32>
    %565 = tpu.matmul %563, %564, %cst_210 {dimension_numbers = #tpu.dot_dimension_numbers<[1], [0], [0], [1], [0, 0, 1, 1], [], []>} : vector<8x8xf32>, vector<8x32xf32>, vector<8x32xf32> -> vector<8x32xf32>
    %c0_211 = arith.constant 0 : index
    %c64_212 = arith.constant 64 : index
    %566 = vector.load %arg4[%c0_211, %c64_212] : memref<16x128xf32, #tpu.memory_space<vmem>>, vector<8x32xf32>
    tpu.vector_store %arg4[%c0_211, %c64_212], %565 {strides = array<i32>} : memref<16x128xf32, #tpu.memory_space<vmem>>, vector<8x32xf32>,
    %567 = vector.extract_strided_slice %520 {offsets = [0, 96], sizes = [8, 32], strides = [1, 1]} : vector<8x128xf32> to vector<8x32xf32>
    %cst_213 = arith.constant dense<0.000000e+00> : vector<8x8xf32>
    %568 = tpu.matmul %567, %515, %cst_213 {dimension_numbers = #tpu.dot_dimension_numbers<[1], [1], [0], [0], [0, 0, 1, 0], [], []>} : vector<8x32xf32>, vector<8x32xf32>, vector<8x8xf32> -> vector<8x8xf32>
    %cst_214 = arith.constant dense<0xFF800000> : vector<8xf32>
    %569 = vector.multi_reduction <maximumf>, %568, %cst_214 [1] : vector<8x8xf32> to vector<8xf32>
    %570 = vector.shape_cast %569 : vector<8xf32> to vector<8x1xf32>
    %571 = vector.broadcast %570 : vector<8x1xf32> to vector<8x8xf32>
    %572 = arith.subf %568, %571 : vector<8x8xf32>
    %573 = math.exp %572 : vector<8x8xf32>
    %cst_215 = arith.constant dense<0.000000e+00> : vector<8xf32>
    %574 = vector.multi_reduction <add>, %573, %cst_215 [1] : vector<8x8xf32> to vector<8xf32>
    %575 = vector.shape_cast %574 : vector<8xf32> to vector<8x1xf32>
    %576 = tpu.reciprocal %575 : vector<8x1xf32> -> vector<8x1xf32>
    %577 = vector.broadcast %576 : vector<8x1xf32> to vector<8x8xf32>
    %578 = arith.mulf %573, %577 : vector<8x8xf32>
    %579 = vector.extract_strided_slice %521 {offsets = [0, 96], sizes = [8, 32], strides = [1, 1]} : vector<8x128xf32> to vector<8x32xf32>
    %cst_216 = arith.constant dense<0.000000e+00> : vector<8x32xf32>
    %580 = tpu.matmul %578, %579, %cst_216 {dimension_numbers = #tpu.dot_dimension_numbers<[1], [0], [0], [1], [0, 0, 1, 1], [], []>} : vector<8x8xf32>, vector<8x32xf32>, vector<8x32xf32> -> vector<8x32xf32>
    %c0_217 = arith.constant 0 : index
    %c96_218 = arith.constant 96 : index
    %581 = vector.load %arg4[%c0_217, %c96_218] : memref<16x128xf32, #tpu.memory_space<vmem>>, vector<8x32xf32>
    tpu.vector_store %arg4[%c0_217, %c96_218], %580 {strides = array<i32>} : memref<16x128xf32, #tpu.memory_space<vmem>>, vector<8x32xf32>,
    %c0_219 = arith.constant 0 : index
    %c0_220 = arith.constant 0 : index
    %582 = vector.load %arg4[%c0_219, %c0_220] : memref<16x128xf32, #tpu.memory_space<vmem>>, vector<8x128xf32>
    %cst_221 = arith.constant dense<0.000000e+00> : vector<8x32xf32>
    %583 = tpu.matmul %582, %519, %cst_221 {dimension_numbers = #tpu.dot_dimension_numbers<[1], [0], [0], [1], [0, 0, 1, 1], [], []>} : vector<8x128xf32>, vector<128x32xf32>, vector<8x32xf32> -> vector<8x32xf32>
    %584 = arith.addf %583, %515 : vector<8x32xf32>
    %585 = vector.extract_strided_slice %516 {offsets = [0, 0], sizes = [1, 32], strides = [1, 1]} : vector<6x32xf32> to vector<1x32xf32>
    %586 = vector.extract_strided_slice %516 {offsets = [1, 0], sizes = [1, 32], strides = [1, 1]} : vector<6x32xf32> to vector<1x32xf32>
    %587 = arith.addf %515, %584 : vector<8x32xf32>
    %cst_222 = arith.constant dense<0.000000e+00> : vector<8xf32>
    %588 = vector.multi_reduction <add>, %587, %cst_222 [1] : vector<8x32xf32> to vector<8xf32>
    %589 = vector.shape_cast %588 : vector<8xf32> to vector<8x1xf32>
    %cst_223 = arith.constant 3.200000e+01 : f32
    %590 = vector.broadcast %cst_223 : f32 to vector<8x1xf32>
    %591 = arith.divf %589, %590 : vector<8x1xf32>
    %592 = vector.broadcast %591 : vector<8x1xf32> to vector<8x32xf32>
    %593 = arith.subf %587, %592 : vector<8x32xf32>
    %594 = arith.mulf %593, %593 : vector<8x32xf32>
    %cst_224 = arith.constant dense<0.000000e+00> : vector<8xf32>
    %595 = vector.multi_reduction <add>, %594, %cst_224 [1] : vector<8x32xf32> to vector<8xf32>
    %596 = vector.shape_cast %595 : vector<8xf32> to vector<8x1xf32>
    %cst_225 = arith.constant 3.200000e+01 : f32
    %597 = vector.broadcast %cst_225 : f32 to vector<8x1xf32>
    %598 = arith.divf %596, %597 : vector<8x1xf32>
    %599 = vector.broadcast %591 : vector<8x1xf32> to vector<8x32xf32>
    %600 = arith.subf %587, %599 : vector<8x32xf32>
    %cst_226 = arith.constant 9.99999974E-6 : f32
    %601 = vector.broadcast %cst_226 : f32 to vector<8x1xf32>
    %602 = arith.addf %598, %601 : vector<8x1xf32>
    %603 = math.rsqrt %602 : vector<8x1xf32>
    %604 = vector.broadcast %603 : vector<8x1xf32> to vector<8x32xf32>
    %605 = arith.mulf %600, %604 : vector<8x32xf32>
    %606 = vector.broadcast %585 : vector<1x32xf32> to vector<8x32xf32>
    %607 = arith.mulf %605, %606 : vector<8x32xf32>
    %608 = vector.broadcast %586 : vector<1x32xf32> to vector<8x32xf32>
    %609 = arith.addf %607, %608 : vector<8x32xf32>
    %610 = arith.addf %385, %1 : vector<16x32xf32>
    %c1344 = arith.constant 1344 : index
    %c0_227 = arith.constant 0 : index
    %611 = vector.load %arg1[%c1344, %c0_227] : memref<1656x128xf32, #tpu.memory_space<vmem>>, vector<32x128xf32>
    %c1376 = arith.constant 1376 : index
    %c0_228 = arith.constant 0 : index
    %612 = vector.load %arg1[%c1376, %c0_228] : memref<1656x128xf32, #tpu.memory_space<vmem>>, vector<32x128xf32>
    %c1408 = arith.constant 1408 : index
    %c0_229 = arith.constant 0 : index
    %613 = vector.load %arg1[%c1408, %c0_229] : memref<1656x128xf32, #tpu.memory_space<vmem>>, vector<128x32xf32>
    %cst_230 = arith.constant dense<0.000000e+00> : vector<8x128xf32>
    %614 = tpu.matmul %609, %611, %cst_230 {dimension_numbers = #tpu.dot_dimension_numbers<[1], [0], [0], [1], [0, 0, 1, 1], [], []>} : vector<8x32xf32>, vector<32x128xf32>, vector<8x128xf32> -> vector<8x128xf32>
    %cst_231 = arith.constant dense<0.000000e+00> : vector<16x128xf32>
    %615 = tpu.matmul %610, %612, %cst_231 {dimension_numbers = #tpu.dot_dimension_numbers<[1], [0], [0], [1], [0, 0, 1, 1], [], []>} : vector<16x32xf32>, vector<32x128xf32>, vector<16x128xf32> -> vector<16x128xf32>
    %616 = vector.extract_strided_slice %614 {offsets = [0, 0], sizes = [8, 32], strides = [1, 1]} : vector<8x128xf32> to vector<8x32xf32>
    %cst_232 = arith.constant dense<0.000000e+00> : vector<8x16xf32>
    %617 = tpu.matmul %616, %610, %cst_232 {dimension_numbers = #tpu.dot_dimension_numbers<[1], [1], [0], [0], [0, 0, 1, 0], [], []>} : vector<8x32xf32>, vector<16x32xf32>, vector<8x16xf32> -> vector<8x16xf32>
    %cst_233 = arith.constant dense<0xFF800000> : vector<8xf32>
    %618 = vector.multi_reduction <maximumf>, %617, %cst_233 [1] : vector<8x16xf32> to vector<8xf32>
    %619 = vector.shape_cast %618 : vector<8xf32> to vector<8x1xf32>
    %620 = vector.broadcast %619 : vector<8x1xf32> to vector<8x16xf32>
    %621 = arith.subf %617, %620 : vector<8x16xf32>
    %622 = math.exp %621 : vector<8x16xf32>
    %cst_234 = arith.constant dense<0.000000e+00> : vector<8xf32>
    %623 = vector.multi_reduction <add>, %622, %cst_234 [1] : vector<8x16xf32> to vector<8xf32>
    %624 = vector.shape_cast %623 : vector<8xf32> to vector<8x1xf32>
    %625 = tpu.reciprocal %624 : vector<8x1xf32> -> vector<8x1xf32>
    %626 = vector.broadcast %625 : vector<8x1xf32> to vector<8x16xf32>
    %627 = arith.mulf %622, %626 : vector<8x16xf32>
    %628 = vector.extract_strided_slice %615 {offsets = [0, 0], sizes = [16, 32], strides = [1, 1]} : vector<16x128xf32> to vector<16x32xf32>
    %cst_235 = arith.constant dense<0.000000e+00> : vector<8x32xf32>
    %629 = tpu.matmul %627, %628, %cst_235 {dimension_numbers = #tpu.dot_dimension_numbers<[1], [0], [0], [1], [0, 0, 1, 1], [], []>} : vector<8x16xf32>, vector<16x32xf32>, vector<8x32xf32> -> vector<8x32xf32>
    %c0_236 = arith.constant 0 : index
    %c0_237 = arith.constant 0 : index
    %630 = vector.load %arg4[%c0_236, %c0_237] : memref<16x128xf32, #tpu.memory_space<vmem>>, vector<8x32xf32>
    tpu.vector_store %arg4[%c0_236, %c0_237], %629 {strides = array<i32>} : memref<16x128xf32, #tpu.memory_space<vmem>>, vector<8x32xf32>,
    %631 = vector.extract_strided_slice %614 {offsets = [0, 32], sizes = [8, 32], strides = [1, 1]} : vector<8x128xf32> to vector<8x32xf32>
    %cst_238 = arith.constant dense<0.000000e+00> : vector<8x16xf32>
    %632 = tpu.matmul %631, %610, %cst_238 {dimension_numbers = #tpu.dot_dimension_numbers<[1], [1], [0], [0], [0, 0, 1, 0], [], []>} : vector<8x32xf32>, vector<16x32xf32>, vector<8x16xf32> -> vector<8x16xf32>
    %cst_239 = arith.constant dense<0xFF800000> : vector<8xf32>
    %633 = vector.multi_reduction <maximumf>, %632, %cst_239 [1] : vector<8x16xf32> to vector<8xf32>
    %634 = vector.shape_cast %633 : vector<8xf32> to vector<8x1xf32>
    %635 = vector.broadcast %634 : vector<8x1xf32> to vector<8x16xf32>
    %636 = arith.subf %632, %635 : vector<8x16xf32>
    %637 = math.exp %636 : vector<8x16xf32>
    %cst_240 = arith.constant dense<0.000000e+00> : vector<8xf32>
    %638 = vector.multi_reduction <add>, %637, %cst_240 [1] : vector<8x16xf32> to vector<8xf32>
    %639 = vector.shape_cast %638 : vector<8xf32> to vector<8x1xf32>
    %640 = tpu.reciprocal %639 : vector<8x1xf32> -> vector<8x1xf32>
    %641 = vector.broadcast %640 : vector<8x1xf32> to vector<8x16xf32>
    %642 = arith.mulf %637, %641 : vector<8x16xf32>
    %643 = vector.extract_strided_slice %615 {offsets = [0, 32], sizes = [16, 32], strides = [1, 1]} : vector<16x128xf32> to vector<16x32xf32>
    %cst_241 = arith.constant dense<0.000000e+00> : vector<8x32xf32>
    %644 = tpu.matmul %642, %643, %cst_241 {dimension_numbers = #tpu.dot_dimension_numbers<[1], [0], [0], [1], [0, 0, 1, 1], [], []>} : vector<8x16xf32>, vector<16x32xf32>, vector<8x32xf32> -> vector<8x32xf32>
    %c0_242 = arith.constant 0 : index
    %c32_243 = arith.constant 32 : index
    %645 = vector.load %arg4[%c0_242, %c32_243] : memref<16x128xf32, #tpu.memory_space<vmem>>, vector<8x32xf32>
    tpu.vector_store %arg4[%c0_242, %c32_243], %644 {strides = array<i32>} : memref<16x128xf32, #tpu.memory_space<vmem>>, vector<8x32xf32>,
    %646 = vector.extract_strided_slice %614 {offsets = [0, 64], sizes = [8, 32], strides = [1, 1]} : vector<8x128xf32> to vector<8x32xf32>
    %cst_244 = arith.constant dense<0.000000e+00> : vector<8x16xf32>
    %647 = tpu.matmul %646, %610, %cst_244 {dimension_numbers = #tpu.dot_dimension_numbers<[1], [1], [0], [0], [0, 0, 1, 0], [], []>} : vector<8x32xf32>, vector<16x32xf32>, vector<8x16xf32> -> vector<8x16xf32>
    %cst_245 = arith.constant dense<0xFF800000> : vector<8xf32>
    %648 = vector.multi_reduction <maximumf>, %647, %cst_245 [1] : vector<8x16xf32> to vector<8xf32>
    %649 = vector.shape_cast %648 : vector<8xf32> to vector<8x1xf32>
    %650 = vector.broadcast %649 : vector<8x1xf32> to vector<8x16xf32>
    %651 = arith.subf %647, %650 : vector<8x16xf32>
    %652 = math.exp %651 : vector<8x16xf32>
    %cst_246 = arith.constant dense<0.000000e+00> : vector<8xf32>
    %653 = vector.multi_reduction <add>, %652, %cst_246 [1] : vector<8x16xf32> to vector<8xf32>
    %654 = vector.shape_cast %653 : vector<8xf32> to vector<8x1xf32>
    %655 = tpu.reciprocal %654 : vector<8x1xf32> -> vector<8x1xf32>
    %656 = vector.broadcast %655 : vector<8x1xf32> to vector<8x16xf32>
    %657 = arith.mulf %652, %656 : vector<8x16xf32>
    %658 = vector.extract_strided_slice %615 {offsets = [0, 64], sizes = [16, 32], strides = [1, 1]} : vector<16x128xf32> to vector<16x32xf32>
    %cst_247 = arith.constant dense<0.000000e+00> : vector<8x32xf32>
    %659 = tpu.matmul %657, %658, %cst_247 {dimension_numbers = #tpu.dot_dimension_numbers<[1], [0], [0], [1], [0, 0, 1, 1], [], []>} : vector<8x16xf32>, vector<16x32xf32>, vector<8x32xf32> -> vector<8x32xf32>
    %c0_248 = arith.constant 0 : index
    %c64_249 = arith.constant 64 : index
    %660 = vector.load %arg4[%c0_248, %c64_249] : memref<16x128xf32, #tpu.memory_space<vmem>>, vector<8x32xf32>
    tpu.vector_store %arg4[%c0_248, %c64_249], %659 {strides = array<i32>} : memref<16x128xf32, #tpu.memory_space<vmem>>, vector<8x32xf32>,
    %661 = vector.extract_strided_slice %614 {offsets = [0, 96], sizes = [8, 32], strides = [1, 1]} : vector<8x128xf32> to vector<8x32xf32>
    %cst_250 = arith.constant dense<0.000000e+00> : vector<8x16xf32>
    %662 = tpu.matmul %661, %610, %cst_250 {dimension_numbers = #tpu.dot_dimension_numbers<[1], [1], [0], [0], [0, 0, 1, 0], [], []>} : vector<8x32xf32>, vector<16x32xf32>, vector<8x16xf32> -> vector<8x16xf32>
    %cst_251 = arith.constant dense<0xFF800000> : vector<8xf32>
    %663 = vector.multi_reduction <maximumf>, %662, %cst_251 [1] : vector<8x16xf32> to vector<8xf32>
    %664 = vector.shape_cast %663 : vector<8xf32> to vector<8x1xf32>
    %665 = vector.broadcast %664 : vector<8x1xf32> to vector<8x16xf32>
    %666 = arith.subf %662, %665 : vector<8x16xf32>
    %667 = math.exp %666 : vector<8x16xf32>
    %cst_252 = arith.constant dense<0.000000e+00> : vector<8xf32>
    %668 = vector.multi_reduction <add>, %667, %cst_252 [1] : vector<8x16xf32> to vector<8xf32>
    %669 = vector.shape_cast %668 : vector<8xf32> to vector<8x1xf32>
    %670 = tpu.reciprocal %669 : vector<8x1xf32> -> vector<8x1xf32>
    %671 = vector.broadcast %670 : vector<8x1xf32> to vector<8x16xf32>
    %672 = arith.mulf %667, %671 : vector<8x16xf32>
    %673 = vector.extract_strided_slice %615 {offsets = [0, 96], sizes = [16, 32], strides = [1, 1]} : vector<16x128xf32> to vector<16x32xf32>
    %cst_253 = arith.constant dense<0.000000e+00> : vector<8x32xf32>
    %674 = tpu.matmul %672, %673, %cst_253 {dimension_numbers = #tpu.dot_dimension_numbers<[1], [0], [0], [1], [0, 0, 1, 1], [], []>} : vector<8x16xf32>, vector<16x32xf32>, vector<8x32xf32> -> vector<8x32xf32>
    %c0_254 = arith.constant 0 : index
    %c96_255 = arith.constant 96 : index
    %675 = vector.load %arg4[%c0_254, %c96_255] : memref<16x128xf32, #tpu.memory_space<vmem>>, vector<8x32xf32>
    tpu.vector_store %arg4[%c0_254, %c96_255], %674 {strides = array<i32>} : memref<16x128xf32, #tpu.memory_space<vmem>>, vector<8x32xf32>,
    %c0_256 = arith.constant 0 : index
    %c0_257 = arith.constant 0 : index
    %676 = vector.load %arg4[%c0_256, %c0_257] : memref<16x128xf32, #tpu.memory_space<vmem>>, vector<8x128xf32>
    %cst_258 = arith.constant dense<0.000000e+00> : vector<8x32xf32>
    %677 = tpu.matmul %676, %613, %cst_258 {dimension_numbers = #tpu.dot_dimension_numbers<[1], [0], [0], [1], [0, 0, 1, 1], [], []>} : vector<8x128xf32>, vector<128x32xf32>, vector<8x32xf32> -> vector<8x32xf32>
    %678 = arith.addf %677, %609 : vector<8x32xf32>
    %679 = vector.extract_strided_slice %516 {offsets = [2, 0], sizes = [1, 32], strides = [1, 1]} : vector<6x32xf32> to vector<1x32xf32>
    %680 = vector.extract_strided_slice %516 {offsets = [3, 0], sizes = [1, 32], strides = [1, 1]} : vector<6x32xf32> to vector<1x32xf32>
    %681 = arith.addf %609, %678 : vector<8x32xf32>
    %cst_259 = arith.constant dense<0.000000e+00> : vector<8xf32>
    %682 = vector.multi_reduction <add>, %681, %cst_259 [1] : vector<8x32xf32> to vector<8xf32>
    %683 = vector.shape_cast %682 : vector<8xf32> to vector<8x1xf32>
    %cst_260 = arith.constant 3.200000e+01 : f32
    %684 = vector.broadcast %cst_260 : f32 to vector<8x1xf32>
    %685 = arith.divf %683, %684 : vector<8x1xf32>
    %686 = vector.broadcast %685 : vector<8x1xf32> to vector<8x32xf32>
    %687 = arith.subf %681, %686 : vector<8x32xf32>
    %688 = arith.mulf %687, %687 : vector<8x32xf32>
    %cst_261 = arith.constant dense<0.000000e+00> : vector<8xf32>
    %689 = vector.multi_reduction <add>, %688, %cst_261 [1] : vector<8x32xf32> to vector<8xf32>
    %690 = vector.shape_cast %689 : vector<8xf32> to vector<8x1xf32>
    %cst_262 = arith.constant 3.200000e+01 : f32
    %691 = vector.broadcast %cst_262 : f32 to vector<8x1xf32>
    %692 = arith.divf %690, %691 : vector<8x1xf32>
    %693 = vector.broadcast %685 : vector<8x1xf32> to vector<8x32xf32>
    %694 = arith.subf %681, %693 : vector<8x32xf32>
    %cst_263 = arith.constant 9.99999974E-6 : f32
    %695 = vector.broadcast %cst_263 : f32 to vector<8x1xf32>
    %696 = arith.addf %692, %695 : vector<8x1xf32>
    %697 = math.rsqrt %696 : vector<8x1xf32>
    %698 = vector.broadcast %697 : vector<8x1xf32> to vector<8x32xf32>
    %699 = arith.mulf %694, %698 : vector<8x32xf32>
    %700 = vector.broadcast %679 : vector<1x32xf32> to vector<8x32xf32>
    %701 = arith.mulf %699, %700 : vector<8x32xf32>
    %702 = vector.broadcast %680 : vector<1x32xf32> to vector<8x32xf32>
    %703 = arith.addf %701, %702 : vector<8x32xf32>
    %c1536 = arith.constant 1536 : index
    %c0_264 = arith.constant 0 : index
    %704 = vector.load %arg1[%c1536, %c0_264] : memref<1656x128xf32, #tpu.memory_space<vmem>>, vector<32x64xf32>
    %c1568 = arith.constant 1568 : index
    %c0_265 = arith.constant 0 : index
    %705 = vector.load %arg1[%c1568, %c0_265] : memref<1656x128xf32, #tpu.memory_space<vmem>>, vector<1x64xf32>
    %c1576 = arith.constant 1576 : index
    %c0_266 = arith.constant 0 : index
    %706 = vector.load %arg1[%c1576, %c0_266] : memref<1656x128xf32, #tpu.memory_space<vmem>>, vector<64x32xf32>
    %c1640 = arith.constant 1640 : index
    %c0_267 = arith.constant 0 : index
    %707 = vector.load %arg1[%c1640, %c0_267] : memref<1656x128xf32, #tpu.memory_space<vmem>>, vector<1x32xf32>
    %cst_268 = arith.constant dense<0.000000e+00> : vector<8x64xf32>
    %708 = tpu.matmul %703, %704, %cst_268 {dimension_numbers = #tpu.dot_dimension_numbers<[1], [0], [0], [1], [0, 0, 1, 1], [], []>} : vector<8x32xf32>, vector<32x64xf32>, vector<8x64xf32> -> vector<8x64xf32>
    %709 = vector.broadcast %705 : vector<1x64xf32> to vector<8x64xf32>
    %710 = arith.addf %708, %709 : vector<8x64xf32>
    %cst_269 = arith.constant 0.000000e+00 : f32
    %711 = vector.broadcast %cst_269 : f32 to vector<8x64xf32>
    %712 = arith.maximumf %710, %711 : vector<8x64xf32>
    %cst_270 = arith.constant dense<0.000000e+00> : vector<8x32xf32>
    %713 = tpu.matmul %712, %706, %cst_270 {dimension_numbers = #tpu.dot_dimension_numbers<[1], [0], [0], [1], [0, 0, 1, 1], [], []>} : vector<8x64xf32>, vector<64x32xf32>, vector<8x32xf32> -> vector<8x32xf32>
    %714 = vector.broadcast %707 : vector<1x32xf32> to vector<8x32xf32>
    %715 = arith.addf %713, %714 : vector<8x32xf32>
    %716 = vector.extract_strided_slice %516 {offsets = [4, 0], sizes = [1, 32], strides = [1, 1]} : vector<6x32xf32> to vector<1x32xf32>
    %717 = vector.extract_strided_slice %516 {offsets = [5, 0], sizes = [1, 32], strides = [1, 1]} : vector<6x32xf32> to vector<1x32xf32>
    %718 = arith.addf %703, %715 : vector<8x32xf32>
    %cst_271 = arith.constant dense<0.000000e+00> : vector<8xf32>
    %719 = vector.multi_reduction <add>, %718, %cst_271 [1] : vector<8x32xf32> to vector<8xf32>
    %720 = vector.shape_cast %719 : vector<8xf32> to vector<8x1xf32>
    %cst_272 = arith.constant 3.200000e+01 : f32
    %721 = vector.broadcast %cst_272 : f32 to vector<8x1xf32>
    %722 = arith.divf %720, %721 : vector<8x1xf32>
    %723 = vector.broadcast %722 : vector<8x1xf32> to vector<8x32xf32>
    %724 = arith.subf %718, %723 : vector<8x32xf32>
    %725 = arith.mulf %724, %724 : vector<8x32xf32>
    %cst_273 = arith.constant dense<0.000000e+00> : vector<8xf32>
    %726 = vector.multi_reduction <add>, %725, %cst_273 [1] : vector<8x32xf32> to vector<8xf32>
    %727 = vector.shape_cast %726 : vector<8xf32> to vector<8x1xf32>
    %cst_274 = arith.constant 3.200000e+01 : f32
    %728 = vector.broadcast %cst_274 : f32 to vector<8x1xf32>
    %729 = arith.divf %727, %728 : vector<8x1xf32>
    %730 = vector.broadcast %722 : vector<8x1xf32> to vector<8x32xf32>
    %731 = arith.subf %718, %730 : vector<8x32xf32>
    %cst_275 = arith.constant 9.99999974E-6 : f32
    %732 = vector.broadcast %cst_275 : f32 to vector<8x1xf32>
    %733 = arith.addf %729, %732 : vector<8x1xf32>
    %734 = math.rsqrt %733 : vector<8x1xf32>
    %735 = vector.broadcast %734 : vector<8x1xf32> to vector<8x32xf32>
    %736 = arith.mulf %731, %735 : vector<8x32xf32>
    %737 = vector.broadcast %716 : vector<1x32xf32> to vector<8x32xf32>
    %738 = arith.mulf %736, %737 : vector<8x32xf32>
    %739 = vector.broadcast %717 : vector<1x32xf32> to vector<8x32xf32>
    %740 = arith.addf %738, %739 : vector<8x32xf32>
    %c16 = arith.constant 16 : index
    %c0_276 = arith.constant 0 : index
    %741 = vector.load %arg1[%c16, %c0_276] : memref<1656x128xf32, #tpu.memory_space<vmem>>, vector<2x32xf32>
    %742 = vector.extract_strided_slice %741 {offsets = [0, 0], sizes = [1, 32], strides = [1, 1]} : vector<2x32xf32> to vector<1x32xf32>
    %743 = vector.extract_strided_slice %741 {offsets = [1, 0], sizes = [1, 32], strides = [1, 1]} : vector<2x32xf32> to vector<1x32xf32>
    %cst_277 = arith.constant dense<0.000000e+00> : vector<8xf32>
    %744 = vector.multi_reduction <add>, %740, %cst_277 [1] : vector<8x32xf32> to vector<8xf32>
    %745 = vector.shape_cast %744 : vector<8xf32> to vector<8x1xf32>
    %cst_278 = arith.constant 3.200000e+01 : f32
    %746 = vector.broadcast %cst_278 : f32 to vector<8x1xf32>
    %747 = arith.divf %745, %746 : vector<8x1xf32>
    %748 = vector.broadcast %747 : vector<8x1xf32> to vector<8x32xf32>
    %749 = arith.subf %740, %748 : vector<8x32xf32>
    %750 = arith.mulf %749, %749 : vector<8x32xf32>
    %cst_279 = arith.constant dense<0.000000e+00> : vector<8xf32>
    %751 = vector.multi_reduction <add>, %750, %cst_279 [1] : vector<8x32xf32> to vector<8xf32>
    %752 = vector.shape_cast %751 : vector<8xf32> to vector<8x1xf32>
    %cst_280 = arith.constant 3.200000e+01 : f32
    %753 = vector.broadcast %cst_280 : f32 to vector<8x1xf32>
    %754 = arith.divf %752, %753 : vector<8x1xf32>
    %755 = vector.broadcast %747 : vector<8x1xf32> to vector<8x32xf32>
    %756 = arith.subf %740, %755 : vector<8x32xf32>
    %cst_281 = arith.constant 9.99999974E-6 : f32
    %757 = vector.broadcast %cst_281 : f32 to vector<8x1xf32>
    %758 = arith.addf %754, %757 : vector<8x1xf32>
    %759 = math.rsqrt %758 : vector<8x1xf32>
    %760 = vector.broadcast %759 : vector<8x1xf32> to vector<8x32xf32>
    %761 = arith.mulf %756, %760 : vector<8x32xf32>
    %762 = vector.broadcast %742 : vector<1x32xf32> to vector<8x32xf32>
    %763 = arith.mulf %761, %762 : vector<8x32xf32>
    %764 = vector.broadcast %743 : vector<1x32xf32> to vector<8x32xf32>
    %765 = arith.addf %763, %764 : vector<8x32xf32>
    %766 = vector.extract_strided_slice %765 {offsets = [0, 0], sizes = [1, 32], strides = [1, 1]} : vector<8x32xf32> to vector<1x32xf32>
    %767 = tpu.iota {dimensions = array<i32: 0>} : vector<32x32xi32>
    %768 = tpu.iota {dimensions = array<i32: 1>} : vector<32x32xi32>
    %769 = arith.cmpi eq, %767, %768 : vector<32x32xi32>
    %770 = vector.shape_cast %766 : vector<1x32xf32> to vector<1x32xf32>
    %771 = vector.broadcast %770 : vector<1x32xf32> to vector<32x32xf32>
    %cst_282 = arith.constant 0.000000e+00 : f32
    %772 = vector.broadcast %cst_282 : f32 to vector<32x32xf32>
    %773 = arith.select %769, %771, %772 : vector<32x32xi1>, vector<32x32xf32>
    %cst_283 = arith.constant 1.000000e+00 : f32
    %774 = vector.broadcast %cst_283 : f32 to vector<32x128xf32>
    %cst_284 = arith.constant dense<0.000000e+00> : vector<32x128xf32>
    %775 = tpu.matmul %773, %774, %cst_284 {dimension_numbers = #tpu.dot_dimension_numbers<[1], [0], [0], [1], [0, 0, 1, 1], [], []>} : vector<32x32xf32>, vector<32x128xf32>, vector<32x128xf32> -> vector<32x128xf32>
    %c0_285 = arith.constant 0 : index
    %c0_286 = arith.constant 0 : index
    %776 = vector.load %arg2[%c0_285, %c0_286] : memref<32x128xf32, #tpu.memory_space<vmem>>, vector<32x128xf32>
    tpu.vector_store %arg2[%c0_285, %c0_286], %775 {strides = array<i32>} : memref<32x128xf32, #tpu.memory_space<vmem>>, vector<32x128xf32>,
    %c0_287 = arith.constant 0 : index
    %c0_288 = arith.constant 0 : index
    %777 = vector.load %arg3[%c0_287, %c0_288] : memref<16x32xf32, #tpu.memory_space<vmem>>, vector<16x32xf32>
    tpu.vector_store %arg3[%c0_287, %c0_288], %610 {strides = array<i32>} : memref<16x32xf32, #tpu.memory_space<vmem>>, vector<16x32xf32>,
    return
  }
}

</mosaic_0001>

<bundles_post_ra>
// kernel: transformer_forward.1
= control target key start
LH: loop header
LB: loop body
LE: loop exit
PB: predicated region body
PF: predicated region fallthrough
CT: control target
= control target key end

     0   :  { %9 = vsyncpa [#allocation4], 0  ;;  %s9966_s0 = inlined_call_operand.vmem [shape: f32[16,35], index: 0, kind: input, shape index: {}]   ;;  %s9967_s1 = inlined_call_operand.hbm [shape: f32[1656,128], index: 1, kind: input, shape index: {}]   ;;  %s9968_s2 = inlined_call_operand.vmem [shape: f32[32,128], index: 2, kind: output, shape index: {0}]   ;;  %s9969_s3 = inlined_call_operand.hbm [shape: f32[16,32], index: 3, kind: output, shape index: {1}]  }
   0x1   :  { %10 = vsyncpa [#allocation5], 0  ;;  %s9069_s12 = smov [#allocation3]   ;;  %s9021_s16 = scalar_lea.hbm %s9967_s1, 26496 }
   0x2   :  { %s18_s13 = sshll.u32 %s9069_s12, 4  ;;  %p9022_p0 = scmp.ne.s32.totalorder %s9967_s1, %s9021_s16  ;;  %s19_s13 = int_to_ptr.vmem [resolvable:$true] %s18_s13 }
   0x3   :  { %p9025_p1 = scmp.lt.u32.totalorder %s9021_s16, %s9967_s1 }
   0x5   :  { %p9027_p2 = pnand %p9025_p1, %p9022_p0 }
   0x7   :  { %9030 = shalt.err (!%p9027_p2)
}
   0x8   :  { %s9031_s21 = scalar_lea.vmem %s19_s13, 26496  ;;  %p9036_p4 = scmp.lt.s32.totalorder %s19_s13, %s19_s13 }
   0x9   :  { %p9032_p3 = scmp.ne.s32.totalorder %s19_s13, %s9031_s21  ;;  %p9037_p5 = scmp.lt.s32.totalorder %s9031_s21, %s9031_s21 }
   0xb   :  { %p9038_p6 = por %p9037_p5, %p9036_p4 }
   0xd   :  { %p9039_p7 = pnand %p9038_p6, %p9032_p3 }
   0xf   :  { %9042 = shalt.err (!%p9039_p7)
}
  0x10   :  { %s9070_s22 = smov 128   ;;  %s9071_s23 = smov 8  }
  0x11   :  { %24 = dma.hbm_to_vmem [thread:$0]  %s9967_s1, 26496, %s19_s13, [#allocation4], %s9070_s22, %s9070_s22, %s9071_s23  }
  0x12   :  { %9065 = dma.done.wait [#allocation4], 26496  }
  0x13   :  { %9066 = vsyncadd [#allocation4], 4294940800  ;;  %v9072_v0 = vmov 33   ;;  %v9073_v1 = vmov 32   ;;  %v9121_v2 = vld [vmem:[%s9966_s0] sm:$0xff]  ;;  %v9128_v3 = vld [vmem:[%s9966_s0 + $0x8] sm:$0xff]  ;;  %v46_v17 = vlaneseq }
  0x14   :  { %8798 = vset.pattern.permute.xlu1 %v9072_v0  ;;  %8797 = vset.pattern.permute.xlu0 %v9073_v1  ;;  %v91_v4 = vld [vmem:[#allocation3 + $0x18] sm:$0xff]  ;;  %v92_v5 = vld [vmem:[#allocation3 + $0x20] sm:$0xff]  ;;  %v93_v7 = vld [vmem:[#allocation3 + $0x28] sm:$0xff]  ;;  %v9074_v10 = vmov 34   ;;  %vm115_vm0 = vcmask 261120   ;;  %vm353_vm2 = vcmask 130048  }
  0x15   :  { %55 = vperm.xlu1 %8798, %v9121_v2   ;;  %38 = vperm.xlu0 %8797, %v9121_v2   ;;  %v8315_v6 = vpack.c.bf16 %v92_v5, %v91_v4  ;;  %v94_v8 = vld [vmem:[#allocation3 + $0x30] sm:$0xff]  ;;  %v95_v9 = vld [vmem:[#allocation3 + $0x38] sm:$0xff]  ;;  %v96_v12 = vld [vmem:[#allocation3 + $0x40] sm:$0xff]  ;;  %v9135_v18 = vshrl.u32 %v46_v17, 7  ;;  %s9075_s1 = smov 96   ;;  %s9076_s30 = smov 64  }
  0x16   :  { %v8319_v11 = vpack.c.bf16 %v94_v8, %v93_v7  ;;  %v8323_v13 = vpack.c.bf16 %v96_v12, %v95_v9  ;;  %v97_v14 = vld [vmem:[#allocation3 + $0x48] sm:$0xff]  ;;  %v98_v15 = vld [vmem:[#allocation3 + $0x50] sm:$0xff]  ;;  %v30_v20 = vld [vmem:[#allocation3] sm:$0x7]  ;;  %s9077_s4 = smov 32   ;;  %vm661_vm3 = vcmask 523520  }
  0x17   :  { %8316 = vmatprep.subr.bf16.mxu0 %v8315_v6  ;;  %v8327_v16 = vpack.c.bf16 %v98_v15, %v97_v14  ;;  %v9138_v19 = vsub.s32 0, %v9135_v18  ;;  %v9141_v21 = vsub.s32 1, %v9135_v18  ;;  %v9146_v27 = vsub.s32 2, %v9135_v18  ;;  %v7012_v28 = vld [vmem:[#allocation3 + $0x8] ss:$0 sm:$0xff]  ;;  %vm9157_vm1 = vmpackc.low %vm115_vm0, %vm115_vm0 }
  0x18   :  { %8318 = vmatpush3.bf16.msra.mxu0 %v8315_v6  ;;  %8324 = vmatprep.subr.bf16.mxu1 %v8323_v13  ;;  %vm864_vm4 = vcmask 785920   ;;  %vm1067_vm5 = vcmask 1048320   ;;  %vm1293_vm6 = vcmask 523264   ;;  %vm9079_vm7 = vmmov 0  }
  0x19   :  { %59 = vperm.xlu1 %8798, %v9128_v3   ;;  %43 = vperm.xlu0 %8797, %v9128_v3   ;;  %v49_v22 = vrot.slane %v30_v20, %v9138_v19  ;;  %v65_v25 = vrot.slane %v30_v20, %v9141_v21  ;;  %v81_v34 = vrot.slane %v30_v20, %v9146_v27  ;;  %vm2976_vm8 = vcmask 64512  }
  0x1a   :  { %8320 = vmatprep.subr.bf16.mxu0 %v8319_v11  ;;  %8326 = vmatpush3.bf16.msra.mxu1 %v8323_v13 }
  0x1b   :  { %8328 = vmatprep.subr.bf16.mxu1 %v8327_v16 }
  0x1c   :  { %8322 = vmatpush3.bf16.msra.mxu0 %v8319_v11 }
  0x1d   :  { %8800 = vset.pattern.permute.xlu1 %v9074_v10  ;;  %8799 = vset.pattern.permute.xlu0 %v9074_v10 }
  0x1e   :  { %75 = vperm.xlu1 %8800, %v9128_v3   ;;  %71 = vperm.xlu0 %8799, %v9121_v2  }
  0x1f   :  { %8330 = vmatpush3.bf16.msra.mxu1 %v8327_v16 }
  0x94   :  { %v56_v23 = vpop.permute.xlu1 %55  ;;  %v39_v24 = vpop.permute.xlu0 %38 }
  0x95   :  { %v50_v26 = vmul.f32 %v49_v22, %v39_v24  ;;  %v66_v32 = vmul.f32 %v65_v25, %v56_v23 }
  0x97   :  { %v52_v33 = vadd.f32 %v7012_v28, %v50_v26 }
  0x98   :  { %v60_v29 = vpop.permute.xlu1 %59  ;;  %v44_v30 = vpop.permute.xlu0 %43 }
  0x99   :  { %v51_v31 = vmul.f32 %v49_v22, %v44_v30  ;;  %v67_v35 = vmul.f32 %v65_v25, %v60_v29  ;;  %v68_v41 = vadd.f32 %v66_v32, %v52_v33 }
  0x9b   :  { %v53_v36 = vadd.f32 %v7012_v28, %v51_v31 }
  0x9d   :  { %v76_v37 = vpop.permute.xlu1 %75  ;;  %v69_v38 = vadd.f32 %v67_v35, %v53_v36  ;;  %v72_v39 = vpop.permute.xlu0 %71 }
  0x9e   :  { %v83_v40 = vmul.f32 %v81_v34, %v76_v37  ;;  %v82_v42 = vmul.f32 %v81_v34, %v72_v39 }
  0xa0   :  { %v85_v43 = vadd.f32 %v83_v40, %v69_v38  ;;  %v84_v44 = vadd.f32 %v82_v42, %v68_v41 }
  0xa2   :  { %v87_v45 = vmax.f32 %v85_v43, 0.0  ;;  %v86_v46 = vmax.f32 %v84_v44, 0.0 }
  0xa4   :  { %v9150_v47 = vadd.f32 %v87_v45, %v9128_v3  ;;  %v9153_v48 = vadd.f32 %v86_v46, %v9121_v2 }
  0xa6   :  { %v9163_v50 = vpack.c.bf16 %v9150_v47, %v9153_v48  ;;  %7543 = vmatprep.mubr.msk.f32.mxu0 %vm115_vm0, %v9153_v48  ;;  %7554 = vmatprep.mubr.msk.f32.mxu1 %vm115_vm0, %v9153_v48 }
  0xa7   :  { %7544 = vmatmul.mubr.msk.f32.vlgmr.msra.gmra.mrb[0].mxu0 %vm115_vm0, %v9150_v47  ;;  %7555 = vmatmul.mubr.msk.f32.vlgmr.msra.gmra.mrb[0].mxu1 %vm115_vm0, %v9150_v47 }
  0xa8   :  { %8333 = vmatprep.subr.msk.bf16.mxu0 %vm9157_vm1, %v9163_v50 }
  0xa9   :  { %8336 = vmatpush3.bf16.xpose.msk.msra.mxu0 %vm9157_vm1, %v9163_v50 }
 0x17a   :  { %v9179_v51 = vpop.f32.mrb[0].mxu0  ;;  %v7556_v52 = vpop.f32.mrb[0].mxu1 }
 0x17b   :  { %v9181_v53 = vpop.f32.mrb[1].mxu0  ;;  %v263_v54 = vpop.f32.mrb[1].mxu1 }
 0x17c   :  { %7561 = vmatprep.mubr.msk.f32.mxu0 %vm115_vm0, %v9181_v53  ;;  %v8337_v55 = vpack.c.bf16 %v7556_v52, %v263_v54  ;;  %v9185_v56 = vpack.i.bf16 %v7556_v52, %v263_v54 }
 0x17d   :  { %7562 = vmatmul.mubr.msk.f32.vlgmr.msra.gmra.mrb[2].mxu0 %vm115_vm0, %v9179_v51 }
 0x17e   :  { %8338 = vmatprep.subr.bf16.mxu1 %v8337_v55 }
 0x17f   :  { %8340 = vmatpush3.bf16.msra.mxu1 %v8337_v55 }
 0x180   :  { %8343 = vmatprep.subr.msk.bf16.mxu1 %vm9157_vm1, %v9163_v50 }
 0x250   :  { %v7563_v57 = vpop.f32.mrb[2].mxu0 }
 0x251   :  { %v344_v58 = vpop.f32.mrb[3].mxu0  ;;  %v357_v59 = vsel %vm353_vm2, %v7563_v57, -inf }
 0x252   :  { %358 = vmax.xlane.f32.xlu0 %v357_v59  ;;  %v354_v60 = vsel %vm353_vm2, %v344_v58, -inf }
 0x253   :  { %355 = vmax.xlane.f32.xlu1 %v354_v60 }
 0x2df   :  { %v359_v61 = vpop.xlane.xlu0 %358 }
 0x2e0   :  { %v361_v62 = vsub.f32 %v7563_v57, %v359_v61  ;;  %v356_v63 = vpop.xlane.xlu1 %355 }
 0x2e1   :  { %v360_v0 = vsub.f32 %v344_v58, %v356_v63 }
 0x2e2   :  { %v364_v1 = vmul.f32 1.442695, %v361_v62 }
 0x2e3   :  { %v362_v4 = vmul.f32 1.442695, %v360_v0 }
 0x2e4   :  { %8861 = vpow2.f32 %v364_v1 }
 0x2e5   :  { %8863 = vpow2.f32 %v362_v4 }
 0x2ee   :  { %v8862_v5 = vpop.eup %8861 }
 0x2ef   :  { %v8864_v6 = vpop.eup %8863  ;;  %v369_v7 = vsel %vm353_vm2, %v8862_v5, 0.0 }
 0x2f0   :  { %370 = vadd.xlane.f32.xlu1 %v369_v7  ;;  %v366_v8 = vsel %vm353_vm2, %v8864_v6, 0.0 }
 0x2f1   :  { %367 = vadd.xlane.f32.xlu0 %v366_v8 }
 0x301   :  { %461 = vrot.lane.b32.xlu1 %v9179_v51, %s9075_s1 }
 0x307   :  { %459 = vrot.lane.b32.xlu0 %v9181_v53, %s9075_s1 }
 0x37d   :  { %v371_v9 = vpop.xlane.xlu1 %370 }
 0x37e   :  { %8865 = vrcp.f32 %v371_v9  ;;  %v368_v10 = vpop.xlane.xlu0 %367 }
 0x37f   :  { %8867 = vrcp.f32 %v368_v10 }
 0x381   :  { %v462_v16 = vpop.permute.xlu1 %461 }
 0x382   :  { %v460_v15 = vpop.permute.xlu0 %459 }
 0x388   :  { %v8866_v11 = vpop.eup %8865 }
 0x389   :  { %v8868_v12 = vpop.eup %8867  ;;  %v375_v14 = vmul.f32 %v8866_v11, %v8862_v5 }
 0x38a   :  { %v374_v13 = vmul.f32 %v8868_v12, %v8864_v6 }
 0x38c   :  { %7568 = vmatprep.mubr.msk.f32.mxu1 %vm353_vm2, %v374_v13 }
 0x38d   :  { %7569 = vmatmul.mubr.msk.f32.vlgmr.msra.gmra.mrb[2].mxu1 %vm353_vm2, %v375_v14 }
 0x38e   :  { %8346 = vmatpush3.bf16.xpose.msk.msra.mxu1 %vm9157_vm1, %v9163_v50  ;;  %7575 = vmatprep.mubr.msk.f32.mxu1 %vm115_vm0, %v460_v15 }
 0x395   :  { %7576 = vmatmul.mubr.msk.f32.vlgmr.msra.gmra.mrb[4].mxu1 %vm115_vm0, %v462_v16 }
 0x460   :  { %v7570_v20 = vpop.f32.mrb[2].mxu1 }
 0x461   :  { %458 = vst.msk [vmem:[#allocation2 + $0x8] sm:$0xff] %vm115_vm0, %v7570_v20  ;;  %v448_v22 = vpop.f32.mrb[3].mxu1 }
 0x462   :  { %457 = vst.msk [vmem:[#allocation2] sm:$0xff] %vm115_vm0, %v448_v22 }
 0x468   :  { %v7577_v23 = vpop.f32.mrb[4].mxu1 }
 0x469   :  { %v533_v24 = vpop.f32.mrb[5].mxu1  ;;  %v545_v25 = vsel %vm353_vm2, %v7577_v23, -inf }
 0x46a   :  { %546 = vmax.xlane.f32.xlu0 %v545_v25  ;;  %v542_v26 = vsel %vm353_vm2, %v533_v24, -inf }
 0x46b   :  { %543 = vmax.xlane.f32.xlu1 %v542_v26 }
 0x4f7   :  { %v547_v28 = vpop.xlane.xlu0 %546 }
 0x4f8   :  { %v549_v29 = vsub.f32 %v7577_v23, %v547_v28  ;;  %v544_v30 = vpop.xlane.xlu1 %543 }
 0x4f9   :  { %v548_v31 = vsub.f32 %v533_v24, %v544_v30 }
 0x4fa   :  { %v552_v32 = vmul.f32 1.442695, %v549_v29 }
 0x4fb   :  { %v550_v33 = vmul.f32 1.442695, %v548_v31 }
 0x4fc   :  { %8869 = vpow2.f32 %v552_v32 }
 0x4fd   :  { %8871 = vpow2.f32 %v550_v33 }
 0x506   :  { %v8870_v34 = vpop.eup %8869 }
 0x507   :  { %v8872_v35 = vpop.eup %8871  ;;  %v557_v36 = vsel %vm353_vm2, %v8870_v34, 0.0 }
 0x508   :  { %558 = vadd.xlane.f32.xlu1 %v557_v36  ;;  %v554_v37 = vsel %vm353_vm2, %v8872_v35, 0.0 }
 0x509   :  { %555 = vadd.xlane.f32.xlu0 %v554_v37 }
 0x519   :  { %664 = vrot.lane.b32.xlu1 %v9181_v53, %s9076_s30 }
 0x51d   :  { %666 = vrot.lane.b32.xlu1 %v9179_v51, %s9076_s30 }
 0x51f   :  { %8802 = vrot.lane.b32.xlu0 %v9185_v56, %s9075_s1 }
 0x595   :  { %v559_v38 = vpop.xlane.xlu1 %558 }
 0x596   :  { %8873 = vrcp.f32 %v559_v38  ;;  %v556_v39 = vpop.xlane.xlu0 %555 }
 0x597   :  { %8875 = vrcp.f32 %v556_v39 }
 0x599   :  { %v665_v54 = vpop.permute.xlu1 %664 }
 0x59a   :  { %v8803_v40 = vpop.permute.xlu0 %8802 }
 0x59b   :  { %v8805_v41 = vunpack.i.h.bf16 %v8803_v40  ;;  %v8804_v42 = vunpack.i.l.bf16 %v8803_v40 }
 0x59d   :  { %v8347_v43 = vpack.c.bf16 %v8805_v41, %v8804_v42  ;;  %v667_v55 = vpop.permute.xlu1 %666 }
 0x59f   :  { %8348 = vmatprep.subr.bf16.mxu0 %v8347_v43 }
 0x5a0   :  { %v8874_v44 = vpop.eup %8873  ;;  %8350 = vmatpush3.bf16.msra.mxu0 %v8347_v43 }
 0x5a1   :  { %v8876_v45 = vpop.eup %8875  ;;  %8353 = vmatprep.subr.msk.bf16.mxu0 %vm9157_vm1, %v9163_v50  ;;  %v563_v52 = vmul.f32 %v8874_v44, %v8870_v34 }
 0x5a2   :  { %v562_v46 = vmul.f32 %v8876_v45, %v8872_v35 }
 0x5a4   :  { %7582 = vmatprep.mubr.msk.f32.mxu0 %vm353_vm2, %v562_v46 }
 0x5a5   :  { %7583 = vmatmul.mubr.msk.f32.vlgmr.msra.gmra.mrb[4].mxu0 %vm353_vm2, %v563_v52 }
 0x5a6   :  { %7589 = vmatprep.mubr.msk.f32.mxu0 %vm115_vm0, %v665_v54 }
 0x5a9   :  { %8356 = vmatpush3.bf16.xpose.msk.msra.mxu0 %vm9157_vm1, %v9163_v50 }
 0x5b0   :  { %7590 = vmatmul.mubr.msk.f32.vlgmr.msra.gmra.mrb[6].mxu0 %vm115_vm0, %v667_v55 }
 0x678   :  { %v9229_v57 = vpop.f32.mrb[4].mxu0 }
 0x679   :  { %v9231_v58 = vpop.f32.mrb[5].mxu0 }
 0x683   :  { %v7591_v59 = vpop.f32.mrb[6].mxu0 }
 0x684   :  { %v738_v60 = vpop.f32.mrb[7].mxu0  ;;  %v750_v61 = vsel %vm353_vm2, %v7591_v59, -inf }
 0x685   :  { %751 = vmax.xlane.f32.xlu1 %v750_v61  ;;  %v747_v62 = vsel %vm353_vm2, %v738_v60, -inf  ;;  %v99_v61 = vld [vmem:[#allocation3 + $0x58] sm:$0xff] }
 0x686   :  { %748 = vmax.xlane.f32.xlu0 %v747_v62  ;;  %v100_v62 = vld [vmem:[#allocation3 + $0x60] sm:$0xff] }
 0x696   :  { %8807 = vrot.lane.b32.xlu1 %v9185_v56, %s9076_s30 }
 0x69a   :  { %869 = vrot.lane.b32.xlu1 %v9179_v51, %s9077_s4 }
 0x712   :  { %v752_v63 = vpop.xlane.xlu1 %751 }
 0x713   :  { %v754_v0 = vsub.f32 %v7591_v59, %v752_v63  ;;  %v749_v1 = vpop.xlane.xlu0 %748  ;;  %v101_v63 = vld [vmem:[#allocation3 + $0x68] sm:$0xff] }
 0x714   :  { %v753_v4 = vsub.f32 %v738_v60, %v749_v1  ;;  %v102_v1 = vld [vmem:[#allocation3 + $0x70] sm:$0xff] }
 0x715   :  { %v757_v5 = vmul.f32 1.442695, %v754_v0  ;;  %v8371_v0 = vpack.c.bf16 %v100_v62, %v99_v61 }
 0x716   :  { %v755_v6 = vmul.f32 1.442695, %v753_v4  ;;  %v8808_v7 = vpop.permute.xlu1 %8807  ;;  %v8375_v4 = vpack.c.bf16 %v102_v1, %v101_v63 }
 0x717   :  { %v8810_v8 = vunpack.i.h.bf16 %v8808_v7  ;;  %v8809_v9 = vunpack.i.l.bf16 %v8808_v7 }
 0x718   :  { %8877 = vpow2.f32 %v755_v6  ;;  %v104_v6 = vld [vmem:[#allocation3 + $0x80] sm:$0xff] }
 0x719   :  { %v8357_v10 = vpack.c.bf16 %v8810_v8, %v8809_v9  ;;  %8879 = vpow2.f32 %v757_v5  ;;  %v103_v5 = vld [vmem:[#allocation3 + $0x78] sm:$0xff]  ;;  %v105_v8 = vld [vmem:[#allocation3 + $0x88] sm:$0xff]  ;;  %v106_v9 = vld [vmem:[#allocation3 + $0x90] sm:$0xff] }
 0x71a   :  { %v8379_v7 = vpack.c.bf16 %v104_v6, %v103_v5  ;;  %v9283_v6 = vld [vmem:[#allocation3 + $0x148] sm:$0xf] }
 0x71b   :  { %8358 = vmatprep.subr.bf16.mxu1 %v8357_v10 }
 0x71c   :  { %8360 = vmatpush3.bf16.msra.mxu1 %v8357_v10  ;;  %v8383_v10 = vpack.c.bf16 %v106_v9, %v105_v8 }
 0x71d   :  { %8363 = vmatprep.subr.msk.bf16.mxu1 %vm9157_vm1, %v9163_v50 }
 0x722   :  { %v8878_v11 = vpop.eup %8877 }
 0x723   :  { %v759_v51 = vsel %vm353_vm2, %v8878_v11, 0.0  ;;  %v8880_v12 = vpop.eup %8879 }
 0x724   :  { %760 = vadd.xlane.f32.xlu0 %v759_v51  ;;  %v762_v13 = vsel %vm353_vm2, %v8880_v12, 0.0  ;;  %v108_v51 = vld [vmem:[#allocation3 + $0xa0] sm:$0xff] }
 0x728   :  { %763 = vadd.xlane.f32.xlu0 %v762_v13  ;;  %v109_v13 = vld [vmem:[#allocation3 + $0xa8] sm:$0xff] }
 0x73e   :  { %867 = vrot.lane.b32.xlu0 %v9181_v53, %s9077_s4  ;;  %v870_v53 = vpop.permute.xlu1 %869 }
 0x7b1   :  { %v761_v14 = vpop.xlane.xlu0 %760 }
 0x7b2   :  { %8881 = vrcp.f32 %v761_v14  ;;  %v110_v14 = vld [vmem:[#allocation3 + $0xb0] sm:$0xff] }
 0x7b5   :  { %v764_v15 = vpop.xlane.xlu0 %763 }
 0x7b6   :  { %8883 = vrcp.f32 %v764_v15  ;;  %v8391_v15 = vpack.c.bf16 %v110_v14, %v109_v13  ;;  %v1195_v14 = vld [vmem:[#allocation3 + $0x110] sm:$0xff] }
 0x7b9   :  { %v868_v24 = vpop.permute.xlu0 %867 }
 0x7bc   :  { %v8882_v16 = vpop.eup %8881 }
 0x7bd   :  { %v767_v20 = vmul.f32 %v8882_v16, %v8878_v11  ;;  %v107_v11 = vld [vmem:[#allocation3 + $0x98] sm:$0xff] }
 0x7be   :  { %v111_v16 = vld [vmem:[#allocation3 + $0xb8] sm:$0xff] }
 0x7bf   :  { %7596 = vmatprep.mubr.msk.f32.mxu1 %vm353_vm2, %v767_v20  ;;  %v112_v20 = vld [vmem:[#allocation3 + $0xc0] sm:$0xff] }
 0x7c0   :  { %v8884_v22 = vpop.eup %8883 }
 0x7c1   :  { %v768_v23 = vmul.f32 %v8884_v22, %v8880_v12  ;;  %v8387_v12 = vpack.c.bf16 %v108_v51, %v107_v11  ;;  %v8395_v22 = vpack.c.bf16 %v112_v20, %v111_v16 }
 0x7c3   :  { %7597 = vmatmul.mubr.msk.f32.vlgmr.msra.gmra.mrb[6].mxu1 %vm353_vm2, %v768_v23  ;;  %v113_v23 = vld [vmem:[#allocation3 + $0xc8] sm:$0xff] }
 0x7c4   :  { %8366 = vmatpush3.bf16.xpose.msk.msra.mxu1 %vm9157_vm1, %v9163_v50  ;;  %7603 = vmatprep.mubr.msk.f32.mxu1 %vm115_vm0, %v868_v24  ;;  %v114_v24 = vld [vmem:[#allocation3 + $0xd0] sm:$0xff] }
 0x7cb   :  { %7604 = vmatmul.mubr.msk.f32.vlgmr.msra.gmra.mrb[8].mxu1 %vm115_vm0, %v870_v53  ;;  %v8399_v53 = vpack.c.bf16 %v114_v24, %v113_v23  ;;  %v1197_v23 = vld [vmem:[#allocation3 + $0x120] sm:$0xff]  ;;  %v1198_v24 = vld [vmem:[#allocation3 + $0x128] sm:$0xff] }
 0x896   :  { %v7598_v25 = vpop.f32.mrb[6].mxu1 }
 0x897   :  { %v847_v26 = vpop.f32.mrb[7].mxu1 }
 0x89e   :  { %v7605_v28 = vpop.f32.mrb[8].mxu1 }
 0x89f   :  { %v941_v29 = vpop.f32.mrb[9].mxu1  ;;  %v953_v30 = vsel %vm353_vm2, %v7605_v28, -inf }
 0x8a0   :  { %954 = vmax.xlane.f32.xlu0 %v953_v30  ;;  %v950_v31 = vsel %vm353_vm2, %v941_v29, -inf }
 0x8a1   :  { %951 = vmax.xlane.f32.xlu1 %v950_v31 }
 0x92d   :  { %v955_v32 = vpop.xlane.xlu0 %954 }
 0x92e   :  { %v957_v33 = vsub.f32 %v7605_v28, %v955_v32  ;;  %v952_v34 = vpop.xlane.xlu1 %951 }
 0x92f   :  { %v956_v35 = vsub.f32 %v941_v29, %v952_v34 }
 0x930   :  { %v960_v50 = vmul.f32 1.442695, %v957_v33 }
 0x931   :  { %v958_v36 = vmul.f32 1.442695, %v956_v35 }
 0x932   :  { %8885 = vpow2.f32 %v960_v50 }
 0x933   :  { %8887 = vpow2.f32 %v958_v36 }
 0x93c   :  { %v8886_v37 = vpop.eup %8885 }
 0x93d   :  { %v8888_v38 = vpop.eup %8887  ;;  %v965_v39 = vsel %vm353_vm2, %v8886_v37, 0.0 }
 0x93e   :  { %966 = vadd.xlane.f32.xlu1 %v965_v39  ;;  %v962_v40 = vsel %vm353_vm2, %v8888_v38, 0.0 }
 0x93f   :  { %963 = vadd.xlane.f32.xlu0 %v962_v40 }
 0x94f   :  { %655 = vrot.lane.b32.xlu1 %v9231_v58, %s9077_s4 }
 0x953   :  { %657 = vrot.lane.b32.xlu1 %v9229_v57, %s9077_s4 }
 0x955   :  { %8812 = vrot.lane.b32.xlu0 %v9185_v56, %s9077_s4 }
 0x957   :  { %860 = vrot.lane.b32.xlu1 %v7598_v25, %s9076_s30 }
 0x959   :  { %858 = vrot.lane.b32.xlu0 %v847_v26, %s9076_s30 }
 0x9cb   :  { %v967_v41 = vpop.xlane.xlu1 %966 }
 0x9cc   :  { %8889 = vrcp.f32 %v967_v41  ;;  %v964_v42 = vpop.xlane.xlu0 %963 }
 0x9cd   :  { %8891 = vrcp.f32 %v964_v42 }
 0x9cf   :  { %v656_v43 = vpop.permute.xlu1 %655 }
 0x9d0   :  { %662 = vst.msk [vmem:[#allocation2] sm:$0xff] %vm661_vm3, %v656_v43  ;;  %v8813_v44 = vpop.permute.xlu0 %8812 }
 0x9d1   :  { %v8815_v45 = vunpack.i.h.bf16 %v8813_v44  ;;  %v8814_v46 = vunpack.i.l.bf16 %v8813_v44 }
 0x9d3   :  { %v658_v52 = vpop.permute.xlu1 %657  ;;  %v8367_v54 = vpack.c.bf16 %v8815_v45, %v8814_v46 }
 0x9d4   :  { %663 = vst.msk [vmem:[#allocation2 + $0x8] sm:$0xff] %vm661_vm3, %v658_v52  ;;  %v859_v56 = vpop.permute.xlu0 %858 }
 0x9d5   :  { %865 = vst.msk [vmem:[#allocation2] sm:$0xff] %vm864_vm4, %v859_v56  ;;  %8368 = vmatprep.subr.bf16.mxu0 %v8367_v54 }
 0x9d6   :  { %v8890_v55 = vpop.eup %8889  ;;  %8370 = vmatpush3.bf16.msra.mxu0 %v8367_v54  ;;  %v1189_v54 = vld [vmem:[#allocation3 + $0xe0] sm:$0xff] }
 0x9d7   :  { %v8892_v57 = vpop.eup %8891  ;;  %v861_v58 = vpop.permute.xlu1 %860  ;;  %v971_v60 = vmul.f32 %v8890_v55, %v8886_v37  ;;  %8372 = vmatprep.subr.bf16.mxu0 %v8371_v0  ;;  %v1190_v55 = vld [vmem:[#allocation3 + $0xe8] sm:$0xff] }
 0x9d8   :  { %866 = vst.msk [vmem:[#allocation2 + $0x8] sm:$0xff] %vm864_vm4, %v861_v58  ;;  %v970_v59 = vmul.f32 %v8892_v57, %v8888_v38  ;;  %v1191_v57 = vld [vmem:[#allocation3 + $0xf0] sm:$0xff] }
 0x9d9   :  { %v8407_v58 = vpack.c.bf16 %v1191_v57, %v1190_v55 }
 0x9da   :  { %7610 = vmatprep.mubr.msk.f32.mxu0 %vm353_vm2, %v970_v59  ;;  %v1193_v59 = vld [vmem:[#allocation3 + $0x100] sm:$0xff] }
 0x9db   :  { %7611 = vmatmul.mubr.msk.f32.vlgmr.msra.gmra.mrb[8].mxu0 %vm353_vm2, %v971_v60  ;;  %v1194_v60 = vld [vmem:[#allocation3 + $0x108] sm:$0xff] }
 0x9dc   :  { %8374 = vmatpush3.bf16.msra.mxu0 %v8371_v0  ;;  %v8411_v61 = vpack.c.bf16 %v1194_v60, %v1193_v59  ;;  %v1419_v59 = vld [vmem:[#allocation3 + $0x158] sm:$0xff] }
 0x9dd   :  { %8376 = vmatprep.subr.bf16.mxu0 %v8375_v4 }
 0x9e0   :  { %8378 = vmatpush3.bf16.msra.mxu0 %v8375_v4 }
 0x9e1   :  { %8380 = vmatprep.subr.bf16.mxu0 %v8379_v7 }
 0x9e4   :  { %8382 = vmatpush3.bf16.msra.mxu0 %v8379_v7  ;;  %v1179_v7 = vrot.slane %v9283_v6, %v9138_v19 }
 0x9e5   :  { %8384 = vmatprep.subr.bf16.mxu0 %v8383_v10 }
 0x9e8   :  { %8386 = vmatpush3.bf16.msra.mxu0 %v8383_v10  ;;  %v1185_v10 = vrot.slane %v9283_v6, %v9141_v21 }
 0x9e9   :  { %8388 = vmatprep.subr.bf16.mxu0 %v8387_v12 }
 0x9ec   :  { %8390 = vmatpush3.bf16.msra.mxu0 %v8387_v12 }
 0x9ed   :  { %8392 = vmatprep.subr.bf16.mxu0 %v8391_v15 }
 0x9f0   :  { %8394 = vmatpush3.bf16.msra.mxu0 %v8391_v15  ;;  %v1196_v15 = vld [vmem:[#allocation3 + $0x118] sm:$0xff] }
 0x9f1   :  { %8396 = vmatprep.subr.bf16.mxu0 %v8395_v22 }
 0x9f4   :  { %8398 = vmatpush3.bf16.msra.mxu0 %v8395_v22  ;;  %v8415_v22 = vpack.c.bf16 %v1196_v15, %v1195_v14  ;;  %v9298_v14 = vsub.s32 3, %v9135_v18  ;;  %v1406_v15 = vrot.slane %v9283_v6, %v9146_v27 }
 0x9f5   :  { %8400 = vmatprep.subr.bf16.mxu0 %v8399_v53 }
 0x9f8   :  { %8402 = vmatpush3.bf16.msra.mxu0 %v8399_v53  ;;  %v8419_v53 = vpack.c.bf16 %v1198_v24, %v1197_v23  ;;  %v1412_v23 = vrot.slane %v9283_v6, %v9298_v14 }
 0xaae   :  { %v7612_v25 = vpop.f32.mrb[8].mxu0 }
 0xaaf   :  { %1063 = vrot.lane.b32.xlu1 %v7612_v25, %s9075_s1  ;;  %v1050_v26 = vpop.f32.mrb[9].mxu0  ;;  %v1199_v25 = vld [vmem:[#allocation3 + $0x130] sm:$0xff] }
 0xab0   :  { %1061 = vrot.lane.b32.xlu0 %v1050_v26, %s9075_s1  ;;  %v1200_v26 = vld [vmem:[#allocation3 + $0x138] sm:$0xff] }
 0xb21   :  { %v1064_v28 = vpop.permute.xlu1 %1063 }
 0xb22   :  { %1069 = vst.msk [vmem:[#allocation2 + $0x8] sm:$0xff] %vm1067_vm5, %v1064_v28  ;;  %v1062_v29 = vpop.permute.xlu0 %1061  ;;  %v8423_v28 = vpack.c.bf16 %v1200_v26, %v1199_v25 }
 0xb23   :  { %1068 = vst.msk [vmem:[#allocation2] sm:$0xff] %vm1067_vm5, %v1062_v29  ;;  %v7041_v29 = vld [vmem:[#allocation3 + $0xf8] ss:$0 sm:$0xff] }
 0xb29   :  { %v1071_v31 = vld [vmem:[#allocation2 + $0x8] sm:$0xff] }
 0xb2a   :  { %v1070_v30 = vld [vmem:[#allocation2] sm:$0xff] }
 0xb2b   :  { %7645 = vmatprep.mubr.f32.mxu0 %v1070_v30 }
 0xb2c   :  { %7646 = vmatmul.mubr.f32.vlgmr.msra.gmra.mrb[10].mxu0 %v1071_v31 }
 0xbff   :  { %v7647_v32 = vpop.f32.mrb[10].mxu0 }
 0xc00   :  { %v1144_v33 = vadd.f32 %v7647_v32, %v9150_v47  ;;  %v1138_v34 = vpop.f32.mrb[11].mxu0 }
 0xc01   :  { %v1139_v35 = vadd.f32 %v1138_v34, %v9153_v48 }
 0xc02   :  { %v1148_v50 = vadd.f32 %v1144_v33, %v9150_v47 }
 0xc03   :  { %v1147_v36 = vadd.f32 %v1139_v35, %v9153_v48  ;;  %v1188_v48 = vld [vmem:[#allocation3 + $0xd8] sm:$0xff] }
 0xc04   :  { %v1152_v37 = vsel %vm115_vm0, %v1148_v50, 0.0  ;;  %v8403_v56 = vpack.c.bf16 %v1189_v54, %v1188_v48 }
 0xc05   :  { %1153 = vadd.xlane.f32.xlu1 %v1152_v37  ;;  %v1149_v38 = vsel %vm115_vm0, %v1147_v36, 0.0 }
 0xc06   :  { %1150 = vadd.xlane.f32.xlu0 %v1149_v38  ;;  %8404 = vmatprep.subr.bf16.mxu1 %v8403_v56 }
 0xc07   :  { %8406 = vmatpush3.bf16.msra.mxu1 %v8403_v56 }
 0xc08   :  { %8408 = vmatprep.subr.bf16.mxu1 %v8407_v58 }
 0xc0b   :  { %8410 = vmatpush3.bf16.msra.mxu1 %v8407_v58  ;;  %v1418_v58 = vld [vmem:[#allocation3 + $0x150] sm:$0xff] }
 0xc0c   :  { %8412 = vmatprep.subr.bf16.mxu1 %v8411_v61  ;;  %v8427_v60 = vpack.c.bf16 %v1419_v59, %v1418_v58 }
 0xc92   :  { %v1154_v39 = vpop.xlane.xlu1 %1153 }
 0xc93   :  { %v1157_v40 = vmul.f32 0.03125, %v1154_v39  ;;  %v1151_v41 = vpop.xlane.xlu0 %1150 }
 0xc94   :  { %v1156_v42 = vmul.f32 0.03125, %v1151_v41 }
 0xc95   :  { %v1159_v43 = vsub.f32 %v1148_v50, %v1157_v40  ;;  %v7044_v50 = vld [vmem:[#allocation3 + $0x140] ss:$0 sm:$0xff] }
 0xc96   :  { %v1158_v44 = vsub.f32 %v1147_v36, %v1156_v42 }
 0xc97   :  { %v1161_v52 = vmul.f32 %v1159_v43, %v1159_v43 }
 0xc98   :  { %v1160_v45 = vmul.f32 %v1158_v44, %v1158_v44 }
 0xc99   :  { %v1165_v47 = vsel %vm115_vm0, %v1161_v52, 0.0 }
 0xc9a   :  { %v1162_v46 = vsel %vm115_vm0, %v1160_v45, 0.0 }
 0xc9b   :  { %1163 = vadd.xlane.f32.xlu0 %v1162_v46 }
 0xc9f   :  { %1166 = vadd.xlane.f32.xlu0 %v1165_v47 }
 0xd28   :  { %v1164_v62 = vpop.xlane.xlu0 %1163 }
 0xd29   :  { %v1168_v63 = vmul.f32 0.03125, %v1164_v62  ;;  %v1421_v62 = vld [vmem:[#allocation3 + $0x168] sm:$0xff] }
 0xd2b   :  { %v1170_v0 = vadd.f32 1e-05, %v1168_v63  ;;  %v1422_v63 = vld [vmem:[#allocation3 + $0x170] sm:$0xff] }
 0xd2c   :  { %v1167_v1 = vpop.xlane.xlu0 %1166 }
 0xd2d   :  { %8893 = vrsqrt.f32 %v1170_v0  ;;  %v1169_v4 = vmul.f32 0.03125, %v1167_v1  ;;  %v1423_v1 = vld [vmem:[#allocation3 + $0x178] sm:$0xff] }
 0xd2f   :  { %v1171_v5 = vadd.f32 1e-05, %v1169_v4  ;;  %v8435_v4 = vpack.c.bf16 %v1423_v1, %v1422_v63 }
 0xd31   :  { %8895 = vrsqrt.f32 %v1171_v5  ;;  %8436 = vmatprep.subr.bf16.mxu0 %v8435_v4  ;;  %v1424_v5 = vld [vmem:[#allocation3 + $0x180] sm:$0xff] }
 0xd32   :  { %8438 = vmatpush3.bf16.msra.mxu0 %v8435_v4 }
 0xd37   :  { %v8894_v8 = vpop.eup %8893 }
 0xd38   :  { %v1174_v9 = vmul.f32 %v8894_v8, %v1158_v44 }
 0xd3a   :  { %v1180_v11 = vmul.f32 %v1179_v7, %v1174_v9 }
 0xd3b   :  { %v8896_v51 = vpop.eup %8895 }
 0xd3c   :  { %v1175_v12 = vmul.f32 %v8896_v51, %v1159_v43  ;;  %v1186_v13 = vadd.f32 %v1185_v10, %v1180_v11 }
 0xd3e   :  { %v1181_v16 = vmul.f32 %v1179_v7, %v1175_v12  ;;  %7656 = vmatprep.mubr.msk.f32.mxu1 %vm115_vm0, %v1186_v13  ;;  %v1425_v7 = vld [vmem:[#allocation3 + $0x188] sm:$0xff] }
 0xd3f   :  { %v8439_v8 = vpack.c.bf16 %v1425_v7, %v1424_v5 }
 0xd40   :  { %v1187_v20 = vadd.f32 %v1185_v10, %v1181_v16 }
 0xd41   :  { %8440 = vmatprep.subr.bf16.mxu0 %v8439_v8 }
 0xd42   :  { %7657 = vmatmul.mubr.msk.f32.vlgmr.msra.gmra.mrb[10].mxu1 %vm115_vm0, %v1187_v20  ;;  %8442 = vmatpush3.bf16.msra.mxu0 %v8439_v8 }
 0xd43   :  { %8414 = vmatpush3.bf16.msra.mxu1 %v8411_v61  ;;  %v1420_v61 = vld [vmem:[#allocation3 + $0x160] sm:$0xff] }
 0xd44   :  { %8416 = vmatprep.subr.bf16.mxu1 %v8415_v22  ;;  %v8431_v0 = vpack.c.bf16 %v1421_v62, %v1420_v61 }
 0xd47   :  { %8418 = vmatpush3.bf16.msra.mxu1 %v8415_v22 }
 0xd48   :  { %8420 = vmatprep.subr.bf16.mxu1 %v8419_v53 }
 0xd4b   :  { %8422 = vmatpush3.bf16.msra.mxu1 %v8419_v53 }
 0xd4c   :  { %8424 = vmatprep.subr.bf16.mxu1 %v8423_v28 }
 0xd4f   :  { %8426 = vmatpush3.bf16.msra.mxu1 %v8423_v28 }
 0xd50   :  { %8428 = vmatprep.subr.bf16.mxu1 %v8427_v60 }
 0xe15   :  { %v7658_v30 = vpop.f32.mrb[10].mxu1 }
 0xe16   :  { %v1284_v31 = vadd.f32 %v7658_v30, %v7041_v29  ;;  %v1278_v32 = vpop.f32.mrb[11].mxu1 }
 0xe17   :  { %v1279_v33 = vadd.f32 %v7041_v29, %v1278_v32 }
 0xe18   :  { %v1288_v35 = vmax.f32 %v1284_v31, 0.0 }
 0xe19   :  { %v1287_v34 = vmax.f32 %v1279_v33, 0.0 }
 0xe1b   :  { %7675 = vmatprep.mubr.msk.f32.mxu1 %vm1293_vm6, %v1287_v34 }
 0xe1c   :  { %7676 = vmatmul.mubr.msk.f32.vlgmr.msra.gmra.mrb[12].mxu1 %vm1293_vm6, %v1288_v35 }
 0xe1d   :  { %8430 = vmatpush3.bf16.msra.mxu1 %v8427_v60 }
 0xe1e   :  { %8432 = vmatprep.subr.bf16.mxu1 %v8431_v0 }
 0xe21   :  { %8434 = vmatpush3.bf16.msra.mxu1 %v8431_v0 }
 0xeef   :  { %v7677_v36 = vpop.f32.mrb[12].mxu1 }
 0xef0   :  { %v1372_v37 = vadd.f32 %v7677_v36, %v7044_v50  ;;  %v1366_v38 = vpop.f32.mrb[13].mxu1 }
 0xef1   :  { %v1367_v39 = vadd.f32 %v7044_v50, %v1366_v38 }
 0xef2   :  { %v1376_v40 = vadd.f32 %v1372_v37, %v1187_v20 }
 0xef3   :  { %v1375_v41 = vadd.f32 %v1367_v39, %v1186_v13 }
 0xef4   :  { %v1380_v42 = vsel %vm115_vm0, %v1376_v40, 0.0 }
 0xef5   :  { %1381 = vadd.xlane.f32.xlu0 %v1380_v42  ;;  %v1377_v43 = vsel %vm115_vm0, %v1375_v41, 0.0 }
 0xef6   :  { %1378 = vadd.xlane.f32.xlu1 %v1377_v43 }
 0xf82   :  { %v1382_v44 = vpop.xlane.xlu0 %1381 }
 0xf83   :  { %v1384_v45 = vmul.f32 0.03125, %v1382_v44  ;;  %v1379_v46 = vpop.xlane.xlu1 %1378 }
 0xf84   :  { %v1383_v52 = vmul.f32 0.03125, %v1379_v46 }
 0xf85   :  { %v1386_v47 = vsub.f32 %v1376_v40, %v1384_v45 }
 0xf86   :  { %v1385_v48 = vsub.f32 %v1375_v41, %v1383_v52 }
 0xf87   :  { %v1388_v54 = vmul.f32 %v1386_v47, %v1386_v47 }
 0xf88   :  { %v1387_v56 = vmul.f32 %v1385_v48, %v1385_v48 }
 0xf89   :  { %v1392_v55 = vsel %vm115_vm0, %v1388_v54, 0.0 }
 0xf8a   :  { %1393 = vadd.xlane.f32.xlu0 %v1392_v55  ;;  %v1389_v57 = vsel %vm115_vm0, %v1387_v56, 0.0 }
 0xf8b   :  { %1390 = vadd.xlane.f32.xlu1 %v1389_v57 }
0x1017   :  { %v1394_v9 = vpop.xlane.xlu0 %1393 }
0x1018   :  { %v1396_v10 = vmul.f32 0.03125, %v1394_v9  ;;  %v1391_v11 = vpop.xlane.xlu1 %1390 }
0x1019   :  { %v1395_v51 = vmul.f32 0.03125, %v1391_v11 }
0x101a   :  { %v1398_v12 = vadd.f32 1e-05, %v1396_v10 }
0x101b   :  { %v1397_v13 = vadd.f32 1e-05, %v1395_v51 }
0x101c   :  { %8897 = vrsqrt.f32 %v1398_v12 }
0x101d   :  { %8899 = vrsqrt.f32 %v1397_v13 }
0x1026   :  { %v8898_v16 = vpop.eup %8897 }
0x1027   :  { %v8900_v20 = vpop.eup %8899  ;;  %v1402_v22 = vmul.f32 %v8898_v16, %v1386_v47 }
0x1028   :  { %v1401_v24 = vmul.f32 %v8900_v20, %v1385_v48 }
0x1029   :  { %v1408_v53 = vmul.f32 %v1406_v15, %v1402_v22 }
0x102a   :  { %v1407_v25 = vmul.f32 %v1406_v15, %v1401_v24 }
0x102b   :  { %v1414_v26 = vadd.f32 %v1412_v23, %v1408_v53 }
0x102c   :  { %v1413_v28 = vadd.f32 %v1412_v23, %v1407_v25 }
0x102d   :  { %v9305_v29 = vadd.f32 %v1414_v26, %v9128_v3 }
0x102e   :  { %v9308_v30 = vadd.f32 %v1413_v28, %v9121_v2 }
0x1030   :  { %7686 = vmatprep.mubr.msk.f32.mxu1 %vm115_vm0, %v9308_v30  ;;  %7697 = vmatprep.mubr.msk.f32.mxu0 %vm115_vm0, %v9308_v30  ;;  %v9316_v6 = vpack.c.bf16 %v9305_v29, %v9308_v30 }
0x1031   :  { %7687 = vmatmul.mubr.msk.f32.vlgmr.msra.gmra.mrb[14].mxu1 %vm115_vm0, %v9305_v29  ;;  %7698 = vmatmul.mubr.msk.f32.vlgmr.msra.gmra.mrb[12].mxu0 %vm115_vm0, %v9305_v29 }
0x1032   :  { %8445 = vmatprep.subr.msk.bf16.mxu1 %vm9157_vm1, %v9316_v6 }
0x1033   :  { %8448 = vmatpush3.bf16.xpose.msk.msra.mxu1 %vm9157_vm1, %v9316_v6 }
0x1034   :  { %8455 = vmatprep.subr.msk.bf16.mxu1 %vm9157_vm1, %v9316_v6 }
0x1104   :  { %v9331_v2 = vpop.f32.mrb[14].mxu1  ;;  %v7699_v3 = vpop.f32.mrb[12].mxu0 }
0x1105   :  { %v1589_v31 = vpop.f32.mrb[13].mxu0  ;;  %1786 = vrot.lane.b32.xlu0 %v9331_v2, %s9075_s1  ;;  %v9335_v32 = vpop.f32.mrb[15].mxu1 }
0x1106   :  { %1784 = vrot.lane.b32.xlu1 %v9335_v32, %s9075_s1  ;;  %7704 = vmatprep.mubr.msk.f32.mxu1 %vm115_vm0, %v9335_v32  ;;  %v8449_v33 = vpack.c.bf16 %v7699_v3, %v1589_v31  ;;  %v9341_v34 = vpack.i.bf16 %v7699_v3, %v1589_v31 }
0x1107   :  { %7705 = vmatmul.mubr.msk.f32.vlgmr.msra.gmra.mrb[16].mxu1 %vm115_vm0, %v9331_v2 }
0x1108   :  { %8458 = vmatpush3.bf16.xpose.msk.msra.mxu1 %vm9157_vm1, %v9316_v6  ;;  %8450 = vmatprep.subr.bf16.mxu0 %v8449_v33 }
0x1109   :  { %8452 = vmatpush3.bf16.msra.mxu0 %v8449_v33 }
0x1177   :  { %v1787_v50 = vpop.permute.xlu0 %1786 }
0x1178   :  { %v1785_v35 = vpop.permute.xlu1 %1784 }
0x1179   :  { %7718 = vmatprep.mubr.msk.f32.mxu1 %vm115_vm0, %v1785_v35 }
0x117a   :  { %7719 = vmatmul.mubr.msk.f32.vlgmr.msra.gmra.mrb[18].mxu1 %vm115_vm0, %v1787_v50 }
0x11da   :  { %v7706_v36 = vpop.f32.mrb[16].mxu1 }
0x11db   :  { %v1670_v37 = vpop.f32.mrb[17].mxu1  ;;  %v1682_v38 = vsel %vm353_vm2, %v7706_v36, -inf }
0x11dc   :  { %1683 = vmax.xlane.f32.xlu0 %v1682_v38  ;;  %v1679_v39 = vsel %vm353_vm2, %v1670_v37, -inf }
0x11dd   :  { %1680 = vmax.xlane.f32.xlu1 %v1679_v39 }
0x124d   :  { %v7720_v40 = vpop.f32.mrb[18].mxu1 }
0x124e   :  { %v1858_v41 = vpop.f32.mrb[19].mxu1  ;;  %v1870_v42 = vsel %vm353_vm2, %v7720_v40, -inf }
0x124f   :  { %1871 = vmax.xlane.f32.xlu0 %v1870_v42  ;;  %v1867_v43 = vsel %vm353_vm2, %v1858_v41, -inf }
0x1250   :  { %1868 = vmax.xlane.f32.xlu1 %v1867_v43 }
0x1269   :  { %v1684_v44 = vpop.xlane.xlu0 %1683 }
0x126a   :  { %v1686_v45 = vsub.f32 %v7706_v36, %v1684_v44  ;;  %v1681_v46 = vpop.xlane.xlu1 %1680 }
0x126b   :  { %v1685_v52 = vsub.f32 %v1670_v37, %v1681_v46 }
0x126c   :  { %v1689_v47 = vmul.f32 1.442695, %v1686_v45 }
0x126d   :  { %v1687_v48 = vmul.f32 1.442695, %v1685_v52 }
0x126e   :  { %8901 = vpow2.f32 %v1689_v47 }
0x126f   :  { %8903 = vpow2.f32 %v1687_v48 }
0x1278   :  { %v8902_v54 = vpop.eup %8901 }
0x1279   :  { %v8904_v56 = vpop.eup %8903  ;;  %v1694_v55 = vsel %vm353_vm2, %v8902_v54, 0.0 }
0x127a   :  { %1695 = vadd.xlane.f32.xlu0 %v1694_v55  ;;  %v1691_v57 = vsel %vm353_vm2, %v8904_v56, 0.0 }
0x127b   :  { %1692 = vadd.xlane.f32.xlu1 %v1691_v57 }
0x128c   :  { %8817 = vrot.lane.b32.xlu1 %v9341_v34, %s9075_s1 }
0x12dc   :  { %v1872_v58 = vpop.xlane.xlu0 %1871 }
0x12dd   :  { %v1874_v59 = vsub.f32 %v7720_v40, %v1872_v58  ;;  %v1869_v60 = vpop.xlane.xlu1 %1868 }
0x12de   :  { %v1873_v61 = vsub.f32 %v1858_v41, %v1869_v60 }
0x12df   :  { %v1877_v62 = vmul.f32 1.442695, %v1874_v59 }
0x12e0   :  { %v1875_v63 = vmul.f32 1.442695, %v1873_v61 }
0x12e1   :  { %8905 = vpow2.f32 %v1877_v62 }
0x12e2   :  { %8907 = vpow2.f32 %v1875_v63 }
0x12eb   :  { %v8906_v0 = vpop.eup %8905 }
0x12ec   :  { %v8908_v1 = vpop.eup %8907  ;;  %v1882_v4 = vsel %vm353_vm2, %v8906_v0, 0.0 }
0x12ed   :  { %1883 = vadd.xlane.f32.xlu0 %v1882_v4  ;;  %v1879_v5 = vsel %vm353_vm2, %v8908_v1, 0.0 }
0x12ee   :  { %1880 = vadd.xlane.f32.xlu1 %v1879_v5 }
0x12ff   :  { %1990 = vrot.lane.b32.xlu1 %v9331_v2, %s9076_s30 }
0x1303   :  { %1988 = vrot.lane.b32.xlu0 %v9335_v32, %s9076_s30 }
0x1307   :  { %v1696_v7 = vpop.xlane.xlu0 %1695 }
0x1308   :  { %8909 = vrcp.f32 %v1696_v7  ;;  %v1693_v8 = vpop.xlane.xlu1 %1692 }
0x1309   :  { %8911 = vrcp.f32 %v1693_v8 }
0x130c   :  { %v8818_v9 = vpop.permute.xlu1 %8817 }
0x130d   :  { %v8820_v10 = vunpack.i.h.bf16 %v8818_v9  ;;  %v8819_v11 = vunpack.i.l.bf16 %v8818_v9 }
0x130f   :  { %v8459_v51 = vpack.c.bf16 %v8820_v10, %v8819_v11 }
0x1311   :  { %8460 = vmatprep.subr.bf16.mxu0 %v8459_v51 }
0x1312   :  { %v8910_v12 = vpop.eup %8909 }
0x1313   :  { %v8912_v13 = vpop.eup %8911  ;;  %v1700_v16 = vmul.f32 %v8910_v12, %v8902_v54 }
0x1314   :  { %v1699_v15 = vmul.f32 %v8912_v13, %v8904_v56 }
0x1316   :  { %7711 = vmatprep.mubr.msk.f32.mxu0 %vm353_vm2, %v1699_v15 }
0x1317   :  { %7712 = vmatmul.mubr.msk.f32.vlgmr.msra.gmra.mrb[14].mxu0 %vm353_vm2, %v1700_v16 }
0x1318   :  { %8462 = vmatpush3.bf16.msra.mxu0 %v8459_v51 }
0x1319   :  { %8465 = vmatprep.subr.msk.bf16.mxu0 %vm9157_vm1, %v9316_v6 }
0x137a   :  { %v1884_v20 = vpop.xlane.xlu0 %1883 }
0x137b   :  { %8913 = vrcp.f32 %v1884_v20  ;;  %v1881_v22 = vpop.xlane.xlu1 %1880 }
0x137c   :  { %8915 = vrcp.f32 %v1881_v22 }
0x137e   :  { %v1989_v26 = vpop.permute.xlu0 %1988 }
0x137f   :  { %v1991_v28 = vpop.permute.xlu1 %1990 }
0x1385   :  { %v8914_v23 = vpop.eup %8913 }
0x1386   :  { %v8916_v24 = vpop.eup %8915  ;;  %v1888_v25 = vmul.f32 %v8914_v23, %v8906_v0 }
0x1387   :  { %v1887_v53 = vmul.f32 %v8916_v24, %v8908_v1 }
0x1389   :  { %7725 = vmatprep.mubr.msk.f32.mxu0 %vm353_vm2, %v1887_v53 }
0x138a   :  { %7726 = vmatmul.mubr.msk.f32.vlgmr.msra.gmra.mrb[16].mxu0 %vm353_vm2, %v1888_v25 }
0x138b   :  { %8468 = vmatpush3.bf16.xpose.msk.msra.mxu0 %vm9157_vm1, %v9316_v6  ;;  %7732 = vmatprep.mubr.msk.f32.mxu0 %vm115_vm0, %v1989_v26 }
0x1392   :  { %7733 = vmatmul.mubr.msk.f32.vlgmr.msra.gmra.mrb[18].mxu0 %vm115_vm0, %v1991_v28 }
0x13ea   :  { %v7713_v3 = vpop.f32.mrb[14].mxu0 }
0x13eb   :  { %1783 = vst.msk [vmem:[#allocation2 + $0x8] sm:$0xff] %vm115_vm0, %v7713_v3  ;;  %v1773_v31 = vpop.f32.mrb[15].mxu0 }
0x13ec   :  { %1782 = vst.msk [vmem:[#allocation2] sm:$0xff] %vm115_vm0, %v1773_v31 }
0x145d   :  { %v7727_v33 = vpop.f32.mrb[16].mxu0 }
0x145e   :  { %v9378_v35 = vpop.f32.mrb[17].mxu0 }
0x1465   :  { %v7734_v50 = vpop.f32.mrb[18].mxu0 }
0x1466   :  { %v2062_v36 = vpop.f32.mrb[19].mxu0  ;;  %v2074_v37 = vsel %vm353_vm2, %v7734_v50, -inf }
0x1467   :  { %2075 = vmax.xlane.f32.xlu0 %v2074_v37  ;;  %v2071_v38 = vsel %vm353_vm2, %v2062_v36, -inf  ;;  %v1427_v37 = vld [vmem:[#allocation3 + $0x198] sm:$0xff] }
0x1468   :  { %2072 = vmax.xlane.f32.xlu1 %v2071_v38  ;;  %v1428_v38 = vld [vmem:[#allocation3 + $0x1a0] sm:$0xff] }
0x14f4   :  { %v2076_v39 = vpop.xlane.xlu0 %2075 }
0x14f5   :  { %v2078_v40 = vsub.f32 %v7734_v50, %v2076_v39  ;;  %v2073_v41 = vpop.xlane.xlu1 %2072 }
0x14f6   :  { %v2077_v42 = vsub.f32 %v2062_v36, %v2073_v41  ;;  %v1426_v36 = vld [vmem:[#allocation3 + $0x190] sm:$0xff] }
0x14f7   :  { %v2081_v43 = vmul.f32 1.442695, %v2078_v40  ;;  %v8483_v39 = vpack.c.bf16 %v1427_v37, %v1426_v36  ;;  %v1429_v40 = vld [vmem:[#allocation3 + $0x1a8] sm:$0xff] }
0x14f8   :  { %v2079_v44 = vmul.f32 1.442695, %v2077_v42  ;;  %v8487_v41 = vpack.c.bf16 %v1429_v40, %v1428_v38  ;;  %v1430_v42 = vld [vmem:[#allocation3 + $0x1b0] sm:$0xff] }
0x14f9   :  { %8917 = vpow2.f32 %v2081_v43  ;;  %v1431_v43 = vld [vmem:[#allocation3 + $0x1b8] sm:$0xff] }
0x14fa   :  { %8919 = vpow2.f32 %v2079_v44  ;;  %v8491_v44 = vpack.c.bf16 %v1431_v43, %v1430_v42  ;;  %v9429_v42 = vld [vmem:[#allocation3 + $0x280] sm:$0xf] }
0x14fb   :  { %v2500_v43 = vrot.slane %v9429_v42, %v9138_v19 }
0x1503   :  { %v8918_v45 = vpop.eup %8917 }
0x1504   :  { %v8920_v46 = vpop.eup %8919  ;;  %v2086_v52 = vsel %vm353_vm2, %v8918_v45, 0.0 }
0x1505   :  { %2087 = vadd.xlane.f32.xlu1 %v2086_v52  ;;  %v2083_v47 = vsel %vm353_vm2, %v8920_v46, 0.0 }
0x1506   :  { %2084 = vadd.xlane.f32.xlu0 %v2083_v47  ;;  %v1434_v47 = vld [vmem:[#allocation3 + $0x1d0] sm:$0xff] }
0x1516   :  { %2190 = vrot.lane.b32.xlu1 %v9335_v32, %s9077_s4 }
0x151a   :  { %2192 = vrot.lane.b32.xlu1 %v9331_v2, %s9077_s4 }
0x151c   :  { %8822 = vrot.lane.b32.xlu0 %v9341_v34, %s9076_s30 }
0x1592   :  { %v2088_v48 = vpop.xlane.xlu1 %2087 }
0x1593   :  { %8921 = vrcp.f32 %v2088_v48  ;;  %v2085_v54 = vpop.xlane.xlu0 %2084  ;;  %v1435_v48 = vld [vmem:[#allocation3 + $0x1d8] sm:$0xff] }
0x1594   :  { %8923 = vrcp.f32 %v2085_v54  ;;  %v8499_v54 = vpack.c.bf16 %v1435_v48, %v1434_v47  ;;  %v2506_v47 = vrot.slane %v9429_v42, %v9141_v21 }
0x1596   :  { %v2191_v61 = vpop.permute.xlu1 %2190 }
0x1597   :  { %v8823_v56 = vpop.permute.xlu0 %8822 }
0x1598   :  { %v8825_v55 = vunpack.i.h.bf16 %v8823_v56  ;;  %v8824_v57 = vunpack.i.l.bf16 %v8823_v56  ;;  %v1436_v56 = vld [vmem:[#allocation3 + $0x1e0] sm:$0xff] }
0x159a   :  { %v8469_v58 = vpack.c.bf16 %v8825_v55, %v8824_v57  ;;  %v2193_v62 = vpop.permute.xlu1 %2192  ;;  %v1437_v55 = vld [vmem:[#allocation3 + $0x1e8] sm:$0xff] }
0x159b   :  { %v8503_v57 = vpack.c.bf16 %v1437_v55, %v1436_v56  ;;  %v2516_v56 = vld [vmem:[#allocation3 + $0x248] sm:$0xff]  ;;  %v2517_v55 = vld [vmem:[#allocation3 + $0x250] sm:$0xff] }
0x159c   :  { %8470 = vmatprep.subr.bf16.mxu1 %v8469_v58 }
0x159d   :  { %v8922_v59 = vpop.eup %8921  ;;  %8472 = vmatpush3.bf16.msra.mxu1 %v8469_v58  ;;  %v1438_v58 = vld [vmem:[#allocation3 + $0x1f0] sm:$0xff] }
0x159e   :  { %v8924_v60 = vpop.eup %8923  ;;  %8475 = vmatprep.subr.msk.bf16.mxu1 %vm9157_vm1, %v9316_v6  ;;  %v2092_v32 = vmul.f32 %v8922_v59, %v8918_v45  ;;  %v1432_v45 = vld [vmem:[#allocation3 + $0x1c0] sm:$0xff]  ;;  %v1439_v59 = vld [vmem:[#allocation3 + $0x1f8] sm:$0xff] }
0x159f   :  { %v2091_v2 = vmul.f32 %v8924_v60, %v8920_v46  ;;  %v1433_v46 = vld [vmem:[#allocation3 + $0x1c8] sm:$0xff]  ;;  %v8507_v60 = vpack.c.bf16 %v1439_v59, %v1438_v58  ;;  %v8527_v59 = vpack.c.bf16 %v2517_v55, %v2516_v56 }
0x15a0   :  { %v8495_v52 = vpack.c.bf16 %v1433_v46, %v1432_v45 }
0x15a1   :  { %7739 = vmatprep.mubr.msk.f32.mxu1 %vm353_vm2, %v2091_v2  ;;  %v1440_v2 = vld [vmem:[#allocation3 + $0x200] sm:$0xff] }
0x15a2   :  { %7740 = vmatmul.mubr.msk.f32.vlgmr.msra.gmra.mrb[20].mxu1 %vm353_vm2, %v2092_v32  ;;  %v1441_v32 = vld [vmem:[#allocation3 + $0x208] sm:$0xff] }
0x15a3   :  { %7746 = vmatprep.mubr.msk.f32.mxu1 %vm115_vm0, %v2191_v61  ;;  %v8511_v61 = vpack.c.bf16 %v1441_v32, %v1440_v2  ;;  %v2519_v2 = vld [vmem:[#allocation3 + $0x260] sm:$0xff] }
0x15a6   :  { %8478 = vmatpush3.bf16.xpose.msk.msra.mxu1 %vm9157_vm1, %v9316_v6 }
0x15ad   :  { %7747 = vmatmul.mubr.msk.f32.vlgmr.msra.gmra.mrb[22].mxu1 %vm115_vm0, %v2193_v62 }
0x1675   :  { %v7741_v63 = vpop.f32.mrb[20].mxu1 }
0x1676   :  { %v2171_v0 = vpop.f32.mrb[21].mxu1 }
0x1680   :  { %v7748_v1 = vpop.f32.mrb[22].mxu1 }
0x1681   :  { %v2264_v4 = vpop.f32.mrb[23].mxu1  ;;  %v2276_v5 = vsel %vm353_vm2, %v7748_v1, -inf }
0x1682   :  { %2277 = vmax.xlane.f32.xlu1 %v2276_v5  ;;  %v2273_v7 = vsel %vm353_vm2, %v2264_v4, -inf }
0x1683   :  { %2274 = vmax.xlane.f32.xlu0 %v2273_v7 }
0x1693   :  { %8827 = vrot.lane.b32.xlu1 %v9341_v34, %s9077_s4 }
0x1697   :  { %1982 = vrot.lane.b32.xlu1 %v7727_v33, %s9077_s4 }
0x169b   :  { %2182 = vrot.lane.b32.xlu1 %v2171_v0, %s9076_s30 }
0x170f   :  { %v2278_v6 = vpop.xlane.xlu1 %2277 }
0x1710   :  { %v2280_v8 = vsub.f32 %v7748_v1, %v2278_v6  ;;  %v2275_v9 = vpop.xlane.xlu0 %2274 }
0x1711   :  { %v2279_v10 = vsub.f32 %v2264_v4, %v2275_v9 }
0x1712   :  { %v2283_v11 = vmul.f32 1.442695, %v2280_v8 }
0x1713   :  { %v2281_v51 = vmul.f32 1.442695, %v2279_v10  ;;  %v8828_v12 = vpop.permute.xlu1 %8827 }
0x1714   :  { %v8830_v13 = vunpack.i.h.bf16 %v8828_v12  ;;  %v8829_v15 = vunpack.i.l.bf16 %v8828_v12 }
0x1715   :  { %8925 = vpow2.f32 %v2281_v51 }
0x1716   :  { %v8479_v16 = vpack.c.bf16 %v8830_v13, %v8829_v15  ;;  %8927 = vpow2.f32 %v2283_v11 }
0x1717   :  { %v1983_v20 = vpop.permute.xlu1 %1982 }
0x1718   :  { %1987 = vst.msk [vmem:[#allocation2 + $0x8] sm:$0xff] %vm661_vm3, %v1983_v20  ;;  %8480 = vmatprep.subr.bf16.mxu0 %v8479_v16 }
0x1719   :  { %8482 = vmatpush3.bf16.msra.mxu0 %v8479_v16 }
0x171a   :  { %8484 = vmatprep.subr.bf16.mxu0 %v8483_v39 }
0x171b   :  { %v2183_v28 = vpop.permute.xlu1 %2182 }
0x171f   :  { %v8926_v34 = vpop.eup %8925 }
0x1720   :  { %v2285_v22 = vsel %vm353_vm2, %v8926_v34, 0.0  ;;  %v8928_v23 = vpop.eup %8927 }
0x1721   :  { %2286 = vadd.xlane.f32.xlu0 %v2285_v22  ;;  %v2288_v24 = vsel %vm353_vm2, %v8928_v23, 0.0 }
0x1725   :  { %2289 = vadd.xlane.f32.xlu0 %v2288_v24 }
0x173b   :  { %1980 = vrot.lane.b32.xlu0 %v9378_v35, %s9077_s4 }
0x173f   :  { %2184 = vrot.lane.b32.xlu0 %v7741_v63, %s9076_s30 }
0x17ae   :  { %v2287_v53 = vpop.xlane.xlu0 %2286 }
0x17af   :  { %8929 = vrcp.f32 %v2287_v53 }
0x17b2   :  { %v2290_v25 = vpop.xlane.xlu0 %2289 }
0x17b3   :  { %8931 = vrcp.f32 %v2290_v25  ;;  %v2510_v25 = vld [vmem:[#allocation3 + $0x218] sm:$0xff] }
0x17b6   :  { %v1981_v26 = vpop.permute.xlu0 %1980 }
0x17b7   :  { %1986 = vst.msk [vmem:[#allocation2] sm:$0xff] %vm661_vm3, %v1981_v26 }
0x17b8   :  { %2188 = vst.msk [vmem:[#allocation2] sm:$0xff] %vm864_vm4, %v2183_v28  ;;  %v2511_v28 = vld [vmem:[#allocation3 + $0x220] sm:$0xff] }
0x17b9   :  { %v8930_v3 = vpop.eup %8929 }
0x17ba   :  { %v2185_v31 = vpop.permute.xlu0 %2184  ;;  %v2293_v33 = vmul.f32 %v8930_v3, %v8926_v34  ;;  %v2512_v3 = vld [vmem:[#allocation3 + $0x228] sm:$0xff] }
0x17bb   :  { %2189 = vst.msk [vmem:[#allocation2 + $0x8] sm:$0xff] %vm864_vm4, %v2185_v31  ;;  %v8519_v31 = vpack.c.bf16 %v2512_v3, %v2511_v28 }
0x17bc   :  { %7753 = vmatprep.mubr.msk.f32.mxu0 %vm353_vm2, %v2293_v33  ;;  %v2514_v33 = vld [vmem:[#allocation3 + $0x238] sm:$0xff] }
0x17bd   :  { %v8932_v35 = vpop.eup %8931 }
0x17be   :  { %v2294_v50 = vmul.f32 %v8932_v35, %v8928_v23  ;;  %v2515_v35 = vld [vmem:[#allocation3 + $0x240] sm:$0xff] }
0x17c0   :  { %7754 = vmatmul.mubr.msk.f32.vlgmr.msra.gmra.mrb[20].mxu0 %vm353_vm2, %v2294_v50  ;;  %v8523_v50 = vpack.c.bf16 %v2515_v35, %v2514_v33 }
0x17c1   :  { %8486 = vmatpush3.bf16.msra.mxu0 %v8483_v39 }
0x17c2   :  { %8488 = vmatprep.subr.bf16.mxu0 %v8487_v41 }
0x17c5   :  { %8490 = vmatpush3.bf16.msra.mxu0 %v8487_v41 }
0x17c6   :  { %8492 = vmatprep.subr.bf16.mxu0 %v8491_v44 }
0x17c9   :  { %8494 = vmatpush3.bf16.msra.mxu0 %v8491_v44 }
0x17ca   :  { %8496 = vmatprep.subr.bf16.mxu0 %v8495_v52 }
0x17cd   :  { %8498 = vmatpush3.bf16.msra.mxu0 %v8495_v52 }
0x17ce   :  { %8500 = vmatprep.subr.bf16.mxu0 %v8499_v54 }
0x17d1   :  { %8502 = vmatpush3.bf16.msra.mxu0 %v8499_v54 }
0x17d2   :  { %8504 = vmatprep.subr.bf16.mxu0 %v8503_v57 }
0x17d5   :  { %8506 = vmatpush3.bf16.msra.mxu0 %v8503_v57 }
0x17d6   :  { %8508 = vmatprep.subr.bf16.mxu0 %v8507_v60 }
0x17d9   :  { %8510 = vmatpush3.bf16.msra.mxu0 %v8507_v60  ;;  %v2518_v60 = vld [vmem:[#allocation3 + $0x258] sm:$0xff] }
0x17da   :  { %8512 = vmatprep.subr.bf16.mxu0 %v8511_v61  ;;  %v8531_v32 = vpack.c.bf16 %v2519_v2, %v2518_v60 }
0x17dd   :  { %8514 = vmatpush3.bf16.msra.mxu0 %v8511_v61  ;;  %v2520_v61 = vld [vmem:[#allocation3 + $0x268] sm:$0xff] }
0x1893   :  { %v7755_v62 = vpop.f32.mrb[20].mxu0 }
0x1894   :  { %2386 = vrot.lane.b32.xlu0 %v7755_v62, %s9075_s1  ;;  %v2373_v63 = vpop.f32.mrb[21].mxu0  ;;  %v2521_v62 = vld [vmem:[#allocation3 + $0x270] sm:$0xff] }
0x1895   :  { %2384 = vrot.lane.b32.xlu1 %v2373_v63, %s9075_s1  ;;  %v8535_v63 = vpack.c.bf16 %v2521_v62, %v2520_v61 }
0x1906   :  { %v2387_v0 = vpop.permute.xlu0 %2386 }
0x1907   :  { %2391 = vst.msk [vmem:[#allocation2 + $0x8] sm:$0xff] %vm1067_vm5, %v2387_v0  ;;  %v2385_v1 = vpop.permute.xlu1 %2384  ;;  %v9078_v0 = vmov 0.0|0.0  }
0x1908   :  { %2390 = vst.msk [vmem:[#allocation2] sm:$0xff] %vm1067_vm5, %v2385_v1  ;;  %8545 = vmatprep.subr.bf16.mxu0 %v9078_v0  ;;  %v9080_v1 = vmov 0.0  }
0x190e   :  { %v2393_v5 = vld [vmem:[#allocation2 + $0x8] sm:$0xff] }
0x190f   :  { %v2392_v4 = vld [vmem:[#allocation2] sm:$0xff] }
0x1910   :  { %7788 = vmatprep.mubr.f32.mxu0 %v2392_v4  ;;  %v7075_v4 = vld [vmem:[#allocation3 + $0x230] ss:$0 sm:$0xff] }
0x1911   :  { %7789 = vmatmul.mubr.f32.vlgmr.msra.gmra.mrb[22].mxu0 %v2393_v5 }
0x1912   :  { %7840 = vmatprep.mubr.msk.f32.mxu0 %vm9079_vm7, %v9080_v1 }
0x19e4   :  { %v7790_v7 = vpop.f32.mrb[22].mxu0 }
0x19e5   :  { %v2466_v6 = vadd.f32 %v7790_v7, %v9305_v29  ;;  %v2460_v8 = vpop.f32.mrb[23].mxu0 }
0x19e6   :  { %v2461_v9 = vadd.f32 %v2460_v8, %v9308_v30  ;;  %v2736_v8 = vld [vmem:[#allocation3 + $0x288] sm:$0xff] }
0x19e7   :  { %v2470_v10 = vadd.f32 %v2466_v6, %v9305_v29 }
0x19e8   :  { %v2469_v11 = vadd.f32 %v2461_v9, %v9308_v30  ;;  %v2509_v30 = vld [vmem:[#allocation3 + $0x210] sm:$0xff] }
0x19e9   :  { %v2474_v51 = vsel %vm115_vm0, %v2470_v10, 0.0  ;;  %v8515_v26 = vpack.c.bf16 %v2510_v25, %v2509_v30  ;;  %v2737_v9 = vld [vmem:[#allocation3 + $0x290] sm:$0xff] }
0x19ea   :  { %2475 = vadd.xlane.f32.xlu0 %v2474_v51  ;;  %v2471_v12 = vsel %vm115_vm0, %v2469_v11, 0.0  ;;  %v8540_v51 = vpack.c.bf16 %v2737_v9, %v2736_v8 }
0x19eb   :  { %2472 = vadd.xlane.f32.xlu1 %v2471_v12  ;;  %8516 = vmatprep.subr.bf16.mxu1 %v8515_v26 }
0x19ec   :  { %8518 = vmatpush3.bf16.msra.mxu1 %v8515_v26 }
0x19ed   :  { %8520 = vmatprep.subr.bf16.mxu1 %v8519_v31 }
0x19f0   :  { %8522 = vmatpush3.bf16.msra.mxu1 %v8519_v31 }
0x19f1   :  { %8524 = vmatprep.subr.bf16.mxu1 %v8523_v50 }
0x1a77   :  { %v2476_v13 = vpop.xlane.xlu0 %2475 }
0x1a78   :  { %v2478_v15 = vmul.f32 0.03125, %v2476_v13  ;;  %v2473_v16 = vpop.xlane.xlu1 %2472  ;;  %v2738_v13 = vld [vmem:[#allocation3 + $0x298] sm:$0xff] }
0x1a79   :  { %v2477_v20 = vmul.f32 0.03125, %v2473_v16 }
0x1a7a   :  { %v2480_v34 = vsub.f32 %v2470_v10, %v2478_v15  ;;  %v2739_v15 = vld [vmem:[#allocation3 + $0x2a0] sm:$0xff] }
0x1a7b   :  { %v2479_v22 = vsub.f32 %v2469_v11, %v2477_v20  ;;  %v8543_v16 = vpack.c.bf16 %v2739_v15, %v2738_v13  ;;  %v2740_v20 = vld [vmem:[#allocation3 + $0x2a8] sm:$0xff] }
0x1a7c   :  { %v2482_v23 = vmul.f32 %v2480_v34, %v2480_v34 }
0x1a7d   :  { %v2481_v24 = vmul.f32 %v2479_v22, %v2479_v22 }
0x1a7e   :  { %v2486_v53 = vsel %vm115_vm0, %v2482_v23, 0.0 }
0x1a7f   :  { %2487 = vadd.xlane.f32.xlu1 %v2486_v53  ;;  %v2483_v29 = vsel %vm115_vm0, %v2481_v24, 0.0  ;;  %v2743_v24 = vld [vmem:[#allocation3 + $0x2c0] sm:$0xff] }
0x1a80   :  { %2484 = vadd.xlane.f32.xlu0 %v2483_v29 }
0x1b0c   :  { %v2488_v36 = vpop.xlane.xlu1 %2487 }
0x1b0d   :  { %v2490_v37 = vmul.f32 0.03125, %v2488_v36  ;;  %v2485_v38 = vpop.xlane.xlu0 %2484 }
0x1b0e   :  { %v2489_v39 = vmul.f32 0.03125, %v2485_v38 }
0x1b0f   :  { %v2492_v40 = vadd.f32 1e-05, %v2490_v37 }
0x1b10   :  { %v2491_v41 = vadd.f32 1e-05, %v2489_v39 }
0x1b11   :  { %8933 = vrsqrt.f32 %v2492_v40 }
0x1b12   :  { %8935 = vrsqrt.f32 %v2491_v41 }
0x1b1b   :  { %v8934_v44 = vpop.eup %8933 }
0x1b1c   :  { %v8936_v45 = vpop.eup %8935  ;;  %v2496_v46 = vmul.f32 %v8934_v44, %v2480_v34  ;;  %v2741_v34 = vld [vmem:[#allocation3 + $0x2b0] sm:$0xff] }
0x1b1d   :  { %v2495_v52 = vmul.f32 %v8936_v45, %v2479_v22  ;;  %v2742_v22 = vld [vmem:[#allocation3 + $0x2b8] sm:$0xff]  ;;  %v8546_v23 = vpack.c.bf16 %v2741_v34, %v2740_v20 }
0x1b1e   :  { %v2502_v48 = vmul.f32 %v2500_v43, %v2496_v46  ;;  %v8549_v53 = vpack.c.bf16 %v2743_v24, %v2742_v22 }
0x1b1f   :  { %v2501_v54 = vmul.f32 %v2500_v43, %v2495_v52  ;;  %8547 = vmatpush3.bf16.msra.mxu0 %v8546_v23 }
0x1b20   :  { %v9437_v58 = vadd.f32 %v2506_v47, %v2502_v48  ;;  %8548 = vmatprep.subr.bf16.mxu0 %v9078_v0 }
0x1b21   :  { %v9435_v57 = vadd.f32 %v2506_v47, %v2501_v54 }
0x1b23   :  { %7799 = vmatprep.mubr.msk.f32.mxu1 %vm115_vm0, %v9435_v57  ;;  %8550 = vmatpush3.bf16.msra.mxu0 %v8549_v53 }
0x1b24   :  { %7800 = vmatmul.mubr.msk.f32.vlgmr.msra.gmra.mrb[24].mxu1 %vm115_vm0, %v9437_v58  ;;  %7853 = vmatprep.subr.mxu0 %v9080_v1 }
0x1b25   :  { %8526 = vmatpush3.bf16.msra.mxu1 %v8523_v50 }
0x1b26   :  { %8528 = vmatprep.subr.bf16.mxu1 %v8527_v59  ;;  %7841 = vmatmul.mubr.f32.vlgmr.msra.gmra.mrb[24].mxu0 %v9080_v1 }
0x1b27   :  { %7855 = vmatprep.mubr.msk.f32.mxu0 %vm9079_vm7, %v9080_v1 }
0x1b29   :  { %8530 = vmatpush3.bf16.msra.mxu1 %v8527_v59 }
0x1b2a   :  { %8532 = vmatprep.subr.bf16.mxu1 %v8531_v32 }
0x1b2c   :  { %7854 = vmatpush3.xpose.msra.mxu0 %v9080_v1 }
0x1b2d   :  { %8534 = vmatpush3.bf16.msra.mxu1 %v8531_v32  ;;  %7863 = vmatprep.subr.mxu0 %v9080_v1 }
0x1b2e   :  { %8536 = vmatprep.subr.bf16.mxu1 %v8535_v63 }
0x1b31   :  { %8538 = vmatpush3.bf16.msra.mxu1 %v8535_v63 }
0x1b32   :  { %8539 = vmatprep.subr.bf16.mxu1 %v9078_v0 }
0x1bf7   :  { %v7801_v5 = vpop.f32.mrb[24].mxu1 }
0x1bf8   :  { %v2605_v7 = vadd.f32 %v7801_v5, %v7075_v4  ;;  %v2599_v6 = vpop.f32.mrb[25].mxu1 }
0x1bf9   :  { %v2600_v10 = vadd.f32 %v7075_v4, %v2599_v6  ;;  %v9475_v28 = vpop.f32.mrb[24].mxu0 }
0x1bfa   :  { %v2609_v12 = vmax.f32 %v2605_v7, 0.0  ;;  %v7842_v3 = vpop.f32.mrb[25].mxu0 }
0x1bfb   :  { %v2608_v11 = vmax.f32 %v2600_v10, 0.0 }
0x1bfd   :  { %7818 = vmatprep.mubr.msk.f32.mxu1 %vm1293_vm6, %v2608_v11 }
0x1bfe   :  { %7819 = vmatmul.mubr.msk.f32.vlgmr.msra.gmra.mrb[26].mxu1 %vm1293_vm6, %v2609_v12 }
0x1bff   :  { %8541 = vmatpush3.bf16.msra.mxu1 %v8540_v51  ;;  %7829 = vmatprep.mubr.msk.f32.mxu1 %vm9079_vm7, %v9080_v1 }
0x1c00   :  { %8542 = vmatprep.subr.bf16.mxu1 %v9078_v0 }
0x1c03   :  { %8544 = vmatpush3.bf16.msra.mxu1 %v8543_v16 }
0x1c04   :  { %7843 = vmatprep.subr.mxu1 %v9080_v1 }
0x1c06   :  { %7830 = vmatmul.mubr.f32.vlgmr.msra.gmra.mrb[28].mxu1 %v9080_v1 }
0x1c07   :  { %7845 = vmatprep.mubr.msk.f32.mxu1 %vm9079_vm7, %v9080_v1 }
0x1c0c   :  { %7844 = vmatpush3.xpose.msra.mxu1 %v9080_v1 }
0x1c0d   :  { %7848 = vmatprep.subr.mxu1 %v9080_v1 }
0x1cd1   :  { %v9465_v29 = vpop.f32.mrb[26].mxu1 }
0x1cd2   :  { %v9467_v30 = vpop.f32.mrb[27].mxu1 }
0x1cd9   :  { %v2829_v25 = vpop.f32.mrb[28].mxu1 }
0x1cda   :  { %3229 = vrot.lane.b32.xlu1 %v2829_v25, %s9076_s30  ;;  %3062 = vrot.lane.b32.xlu0 %v2829_v25, %s9075_s1  ;;  %v7831_v26 = vpop.f32.mrb[29].mxu1 }
0x1cdb   :  { %7846 = vmatmul.mubr.msk.f32.vlgmr.msra.gmra.mrb[30].mxu1 %vm115_vm0, %v2829_v25 }
0x1cdc   :  { %7850 = vmatprep.mubr.msk.f32.mxu1 %vm9079_vm7, %v9080_v1  ;;  %7849 = vmatpush3.msra.mxu1 %v9475_v28 }
0x1cdd   :  { %7858 = vmatprep.subr.mxu1 %v9080_v1 }
0x1cde   :  { %3395 = vrot.lane.b32.xlu1 %v2829_v25, %s9077_s4 }
0x1d4c   :  { %v3063_v31 = vpop.permute.xlu0 %3062  ;;  %v3230_v33 = vpop.permute.xlu1 %3229 }
0x1d4d   :  { %7856 = vmatmul.mubr.msk.f32.vlgmr.msra.gmra.mrb[26].mxu0 %vm115_vm0, %v3063_v31  ;;  %v2744_v31 = vld [vmem:[#allocation3 + $0x2c8] sm:$0xff] }
0x1d4e   :  { %7864 = vmatpush3.xpose.msra.mxu0 %v9080_v1  ;;  %7865 = vmatprep.mubr.msk.f32.mxu0 %vm9079_vm7, %v9080_v1 }
0x1d4f   :  { %7873 = vmatprep.subr.mxu0 %v9080_v1 }
0x1d50   :  { %v3396_v35 = vpop.permute.xlu1 %3395 }
0x1d51   :  { %7866 = vmatmul.mubr.msk.f32.vlgmr.msra.gmra.mrb[28].mxu0 %vm115_vm0, %v3230_v33  ;;  %v2745_v33 = vld [vmem:[#allocation3 + $0x2d0] sm:$0xff] }
0x1d52   :  { %7874 = vmatpush3.xpose.msra.mxu0 %v9080_v1  ;;  %7875 = vmatprep.mubr.msk.f32.mxu0 %vm9079_vm7, %v9080_v1 }
0x1d53   :  { %8551 = vmatprep.subr.bf16.mxu0 %v9078_v0 }
0x1d55   :  { %7876 = vmatmul.mubr.msk.f32.vlgmr.msra.gmra.mrb[30].mxu0 %vm115_vm0, %v3396_v35  ;;  %v2746_v35 = vld [vmem:[#allocation3 + $0x2d8] sm:$0xff] }
0x1d56   :  { %7915 = vmatprep.mubr.msk.f32.mxu0 %vm9079_vm7, %v9080_v1 }
0x1dae   :  { %v2972_v50 = vpop.f32.mrb[30].mxu1 }
0x1daf   :  { %v7847_v36 = vpop.f32.mrb[31].mxu1  ;;  %v2977_v37 = vsel %vm2976_vm8, %v2972_v50, -inf }
0x1db0   :  { %2978 = vmax.xlane.f32.xlu0 %v2977_v37  ;;  %v2747_v36 = vld [vmem:[#allocation3 + $0x2e0] sm:$0xff] }
0x1db1   :  { %v8555_v37 = vpack.c.bf16 %v2747_v36, %v2746_v35 }
0x1e20   :  { %v3132_v38 = vpop.f32.mrb[26].mxu0 }
0x1e21   :  { %v7857_v39 = vpop.f32.mrb[27].mxu0  ;;  %v3136_v40 = vsel %vm2976_vm8, %v3132_v38, -inf }
0x1e22   :  { %3137 = vmax.xlane.f32.xlu1 %v3136_v40  ;;  %v2749_v39 = vld [vmem:[#allocation3 + $0x2f0] sm:$0xff] }
0x1e24   :  { %v3299_v41 = vpop.f32.mrb[28].mxu0 }
0x1e25   :  { %v7867_v43 = vpop.f32.mrb[29].mxu0  ;;  %v3303_v44 = vsel %vm2976_vm8, %v3299_v41, -inf }
0x1e26   :  { %3304 = vmax.xlane.f32.xlu0 %v3303_v44  ;;  %v2751_v43 = vld [vmem:[#allocation3 + $0x300] sm:$0xff] }
0x1e28   :  { %v3465_v45 = vpop.f32.mrb[30].mxu0 }
0x1e29   :  { %v7877_v46 = vpop.f32.mrb[31].mxu0  ;;  %v3469_v52 = vsel %vm2976_vm8, %v3465_v45, -inf }
0x1e2a   :  { %3470 = vmax.xlane.f32.xlu0 %v3469_v52  ;;  %v2752_v52 = vld [vmem:[#allocation3 + $0x308] sm:$0xff] }
0x1e33   :  { %3148 = vrot.lane.b32.xlu1 %v9475_v28, %s9075_s1 }
0x1e3d   :  { %v2979_v47 = vpop.xlane.xlu0 %2978 }
0x1e3e   :  { %v2980_v48 = vsub.f32 %v2972_v50, %v2979_v47  ;;  %v8552_v50 = vpack.c.bf16 %v2745_v33, %v2744_v31  ;;  %v2753_v47 = vld [vmem:[#allocation3 + $0x310] sm:$0xff] }
0x1e40   :  { %v2981_v54 = vmul.f32 1.442695, %v2980_v48  ;;  %8553 = vmatpush3.bf16.msra.mxu0 %v8552_v50  ;;  %v8564_v48 = vpack.c.bf16 %v2753_v47, %v2752_v52  ;;  %v3662_v52 = vld [vmem:[#allocation3 + $0x370] sm:$0xff] }
0x1e41   :  { %8554 = vmatprep.subr.bf16.mxu0 %v9078_v0 }
0x1e42   :  { %8937 = vpow2.f32 %v2981_v54  ;;  %v2754_v54 = vld [vmem:[#allocation3 + $0x318] sm:$0xff] }
0x1e44   :  { %8556 = vmatpush3.bf16.msra.mxu0 %v8555_v37 }
0x1e45   :  { %8557 = vmatprep.subr.bf16.mxu0 %v9078_v0 }
0x1e4c   :  { %v8938_v56 = vpop.eup %8937 }
0x1e4d   :  { %v2983_v55 = vsel %vm2976_vm8, %v8938_v56, 0.0 }
0x1e57   :  { %2984 = vadd.xlane.f32.xlu1 %v2983_v55 }
0x1eaf   :  { %v3138_v59 = vpop.xlane.xlu1 %3137 }
0x1eb0   :  { %v3139_v60 = vsub.f32 %v3132_v38, %v3138_v59  ;;  %v2748_v38 = vld [vmem:[#allocation3 + $0x2e8] sm:$0xff] }
0x1eb1   :  { %v8558_v40 = vpack.c.bf16 %v2749_v39, %v2748_v38  ;;  %v2756_v59 = vld [vmem:[#allocation3 + $0x328] sm:$0xff] }
0x1eb2   :  { %v3140_v2 = vmul.f32 1.442695, %v3139_v60  ;;  %v2757_v60 = vld [vmem:[#allocation3 + $0x330] sm:$0xff]  ;;  %v3657_v39 = vld [vmem:[#allocation3 + $0x348] sm:$0xff] }
0x1eb3   :  { %v3305_v32 = vpop.xlane.xlu0 %3304  ;;  %v3149_v51 = vpop.permute.xlu1 %3148  ;;  %8559 = vmatpush3.bf16.msra.mxu0 %v8558_v40  ;;  %v3658_v40 = vld [vmem:[#allocation3 + $0x350] sm:$0xff] }
0x1eb4   :  { %8939 = vpow2.f32 %v3140_v2  ;;  %v3306_v61 = vsub.f32 %v3299_v41, %v3305_v32  ;;  %v2750_v41 = vld [vmem:[#allocation3 + $0x2f8] sm:$0xff]  ;;  %8560 = vmatprep.subr.bf16.mxu0 %v9078_v0  ;;  %v8570_v2 = vpack.c.bf16 %v2757_v60, %v2756_v59 }
0x1eb5   :  { %v8561_v44 = vpack.c.bf16 %v2751_v43, %v2750_v41  ;;  %v2758_v32 = vld [vmem:[#allocation3 + $0x338] sm:$0xff]  ;;  %v8576_v41 = vpack.c.bf16 %v3658_v40, %v3657_v39 }
0x1eb6   :  { %v3307_v62 = vmul.f32 1.442695, %v3306_v61  ;;  %v2759_v61 = vld [vmem:[#allocation3 + $0x340] sm:$0xff]  ;;  %v3659_v43 = vld [vmem:[#allocation3 + $0x358] sm:$0xff] }
0x1eb7   :  { %v3471_v63 = vpop.xlane.xlu0 %3470  ;;  %8562 = vmatpush3.bf16.msra.mxu0 %v8561_v44  ;;  %v3660_v44 = vld [vmem:[#allocation3 + $0x360] sm:$0xff] }
0x1eb8   :  { %8941 = vpow2.f32 %v3307_v62  ;;  %v3472_v4 = vsub.f32 %v3465_v45, %v3471_v63  ;;  %8563 = vmatprep.subr.bf16.mxu0 %v9078_v0  ;;  %v8573_v62 = vpack.c.bf16 %v2759_v61, %v2758_v32 }
0x1eba   :  { %v3473_v5 = vmul.f32 1.442695, %v3472_v4 }
0x1ebb   :  { %8565 = vmatpush3.bf16.msra.mxu0 %v8564_v48 }
0x1ebc   :  { %8943 = vpow2.f32 %v3473_v5  ;;  %8566 = vmatprep.subr.bf16.mxu0 %v9078_v0 }
0x1ebe   :  { %v8940_v7 = vpop.eup %8939 }
0x1ebf   :  { %v3142_v6 = vsel %vm2976_vm8, %v8940_v7, 0.0 }
0x1ec0   :  { %3143 = vadd.xlane.f32.xlu0 %v3142_v6 }
0x1ec2   :  { %v8942_v8 = vpop.eup %8941 }
0x1ec3   :  { %v3309_v9 = vsel %vm2976_vm8, %v8942_v8, 0.0 }
0x1ec4   :  { %3310 = vadd.xlane.f32.xlu1 %v3309_v9 }
0x1ec6   :  { %v8944_v10 = vpop.eup %8943 }
0x1ec7   :  { %v3475_v11 = vsel %vm2976_vm8, %v8944_v10, 0.0 }
0x1ec8   :  { %3476 = vadd.xlane.f32.xlu0 %v3475_v11 }
0x1ed5   :  { %3480 = vrot.lane.b32.xlu1 %v9475_v28, %s9077_s4 }
0x1ede   :  { %3314 = vrot.lane.b32.xlu0 %v9475_v28, %s9076_s30 }
0x1ee4   :  { %v2985_v12 = vpop.xlane.xlu1 %2984 }
0x1ee5   :  { %8945 = vrcp.f32 %v2985_v12  ;;  %v7078_v12 = vld [vmem:[#allocation3 + $0x278] ss:$0 sm:$0xff] }
0x1eef   :  { %v8946_v13 = vpop.eup %8945 }
0x1ef0   :  { %v2987_v15 = vmul.f32 %v8946_v13, %v8938_v56  ;;  %v2755_v56 = vld [vmem:[#allocation3 + $0x320] sm:$0xff]  ;;  %v2687_v13 = vadd.f32 %v7078_v12, %v9467_v30 }
0x1ef1   :  { %v8567_v55 = vpack.c.bf16 %v2755_v56, %v2754_v54 }
0x1ef2   :  { %7851 = vmatmul.mubr.msk.f32.vlgmr.msra.gmra.mrb[32].mxu1 %vm2976_vm8, %v2987_v15 }
0x1ef3   :  { %7859 = vmatpush3.msra.mxu1 %v3149_v51  ;;  %7860 = vmatprep.mubr.msk.f32.mxu1 %vm9079_vm7, %v9080_v1 }
0x1ef4   :  { %7868 = vmatprep.subr.mxu1 %v9080_v1  ;;  %8568 = vmatpush3.bf16.msra.mxu0 %v8567_v55 }
0x1ef5   :  { %8569 = vmatprep.subr.bf16.mxu0 %v9078_v0 }
0x1ef8   :  { %8571 = vmatpush3.bf16.msra.mxu0 %v8570_v2 }
0x1ef9   :  { %8572 = vmatprep.subr.bf16.mxu0 %v9078_v0 }
0x1efc   :  { %8574 = vmatpush3.bf16.msra.mxu0 %v8573_v62  ;;  %v9549_v62 = vld [vmem:[#allocation3 + $0x478] sm:$0x3f] }
0x1efd   :  { %8600 = vmatprep.subr.bf16.mxu0 %v9078_v0 }
0x1f4d   :  { %v3144_v16 = vpop.xlane.xlu0 %3143 }
0x1f4e   :  { %8947 = vrcp.f32 %v3144_v16  ;;  %v2692_v16 = vadd.f32 %v9465_v29, %v7078_v12 }
0x1f51   :  { %v3311_v20 = vpop.xlane.xlu1 %3310 }
0x1f52   :  { %8949 = vrcp.f32 %v3311_v20  ;;  %v2695_v20 = vadd.f32 %v2687_v13, %v9435_v57 }
0x1f55   :  { %v3477_v34 = vpop.xlane.xlu0 %3476  ;;  %v3481_v26 = vpop.permute.xlu1 %3480 }
0x1f56   :  { %8951 = vrcp.f32 %v3477_v34 }
0x1f58   :  { %v8948_v22 = vpop.eup %8947 }
0x1f59   :  { %v3146_v23 = vmul.f32 %v8948_v22, %v8940_v7  ;;  %v3315_v24 = vpop.permute.xlu0 %3314 }
0x1f5b   :  { %7861 = vmatmul.mubr.msk.f32.vlgmr.msra.gmra.mrb[34].mxu1 %vm2976_vm8, %v3146_v23  ;;  %v2696_v23 = vadd.f32 %v2692_v16, %v9437_v58 }
0x1f5c   :  { %v8950_v53 = vpop.eup %8949  ;;  %7869 = vmatpush3.msra.mxu1 %v3315_v24  ;;  %7870 = vmatprep.mubr.msk.f32.mxu1 %vm9079_vm7, %v9080_v1  ;;  %v2697_v24 = vsel %vm115_vm0, %v2695_v20, 0.0 }
0x1f5d   :  { %v3313_v25 = vmul.f32 %v8950_v53, %v8942_v8  ;;  %7878 = vmatprep.subr.mxu1 %v9080_v1  ;;  %v2700_v53 = vsel %vm115_vm0, %v2696_v23, 0.0 }
0x1f5f   :  { %7871 = vmatmul.mubr.msk.f32.vlgmr.msra.gmra.mrb[36].mxu1 %vm2976_vm8, %v3313_v25 }
0x1f60   :  { %v8952_v28 = vpop.eup %8951  ;;  %7879 = vmatpush3.msra.mxu1 %v3481_v26  ;;  %7880 = vmatprep.mubr.msk.f32.mxu1 %vm9079_vm7, %v9080_v1 }
0x1f61   :  { %v3479_v3 = vmul.f32 %v8952_v28, %v8944_v10  ;;  %8575 = vmatprep.subr.bf16.mxu1 %v9078_v0 }
0x1f63   :  { %7881 = vmatmul.mubr.msk.f32.vlgmr.msra.gmra.mrb[38].mxu1 %vm2976_vm8, %v3479_v3 }
0x1f64   :  { %7926 = vmatprep.mubr.msk.f32.mxu1 %vm9079_vm7, %v9080_v1  ;;  %8577 = vmatpush3.bf16.msra.mxu1 %v8576_v41 }
0x1f65   :  { %8578 = vmatprep.subr.bf16.mxu1 %v9078_v0 }
0x1fc5   :  { %v3057_v45 = vpop.f32.mrb[32].mxu1 }
0x1fc6   :  { %3061 = vst.msk [vmem:[#allocation2] sm:$0xff] %vm115_vm0, %v3057_v45  ;;  %v7852_v46 = vpop.f32.mrb[33].mxu1  ;;  %v8579_v45 = vpack.c.bf16 %v3660_v44, %v3659_v43 }
0x1fc7   :  { %v3661_v46 = vld [vmem:[#allocation3 + $0x368] sm:$0xff] }
0x1fc8   :  { %8580 = vmatpush3.bf16.msra.mxu1 %v8579_v45  ;;  %v8581_v47 = vpack.c.bf16 %v3662_v52, %v3661_v46 }
0x1fca   :  { %8582 = vmatprep.subr.bf16.mxu1 %v8581_v47 }
0x202e   :  { %v3220_v63 = vpop.f32.mrb[34].mxu1 }
0x202f   :  { %3225 = vrot.lane.b32.xlu1 %v3220_v63, %s9077_s4  ;;  %v7862_v4 = vpop.f32.mrb[35].mxu1  ;;  %v3648_v63 = vrot.slane %v9549_v62, %v9138_v19 }
0x2032   :  { %v3386_v5 = vpop.f32.mrb[36].mxu1 }
0x2033   :  { %3391 = vrot.lane.b32.xlu0 %v3386_v5, %s9076_s30  ;;  %v7872_v7 = vpop.f32.mrb[37].mxu1 }
0x2034   :  { %v3653_v7 = vrot.slane %v9549_v62, %v9141_v21 }
0x2036   :  { %v3552_v6 = vpop.f32.mrb[38].mxu1 }
0x2037   :  { %3557 = vrot.lane.b32.xlu1 %v3552_v6, %s9075_s1  ;;  %v7882_v8 = vpop.f32.mrb[39].mxu1  ;;  %v3663_v6 = vld [vmem:[#allocation3 + $0x378] sm:$0xff] }
0x2038   :  { %v3664_v8 = vld [vmem:[#allocation3 + $0x380] sm:$0xff] }
0x2039   :  { %v8585_v13 = vpack.c.bf16 %v3664_v8, %v3663_v6 }
0x20a1   :  { %v3226_v9 = vpop.permute.xlu1 %3225 }
0x20a2   :  { %3228 = vst.msk [vmem:[#allocation2] sm:$0xff] %vm661_vm3, %v3226_v9 }
0x20a5   :  { %v3392_v10 = vpop.permute.xlu0 %3391 }
0x20a6   :  { %3394 = vst.msk [vmem:[#allocation2] sm:$0xff] %vm864_vm4, %v3392_v10  ;;  %v2726_v10 = vrot.slane %v9429_v42, %v9146_v27 }
0x20a9   :  { %v3558_v11 = vpop.permute.xlu1 %3557 }
0x20aa   :  { %3560 = vst.msk [vmem:[#allocation2] sm:$0xff] %vm1067_vm5, %v3558_v11 }
0x20b1   :  { %v3561_v51 = vld [vmem:[#allocation2] sm:$0xff] }
0x20b2   :  { %7916 = vmatmul.mubr.f32.vlgmr.msra.gmra.mrb[32].mxu0 %v3561_v51 }
0x20b3   :  { %7965 = vmatprep.mubr.msk.f32.mxu0 %vm9079_vm7, %v9080_v1 }
0x2185   :  { %v3628_v15 = vpop.f32.mrb[32].mxu0 }
0x2186   :  { %v7917_v34 = vpop.f32.mrb[33].mxu0  ;;  %v3632_v22 = vsel %vm115_vm0, %v3628_v15, 0.0 }
0x2187   :  { %3633 = vadd.xlane.f32.xlu0 %v3632_v22 }
0x218b   :  { %2698 = vadd.xlane.f32.xlu0 %v2697_v24  ;;  %v9019_v24 = vld [vmem:[%s9966_s0] sm:$0xff] }
0x218f   :  { %2701 = vadd.xlane.f32.xlu0 %v2700_v53 }
0x2214   :  { %v3634_v25 = vpop.xlane.xlu0 %3633 }
0x2215   :  { %v3635_v26 = vmul.f32 0.03125, %v3634_v25 }
0x2217   :  { %v3636_v30 = vsub.f32 %v3628_v15, %v3635_v26  ;;  %v2732_v15 = vrot.slane %v9429_v42, %v9298_v14  ;;  %v9020_v26 = vld [vmem:[%s9966_s0 + $0x8] sm:$0xff]  ;;  %s9082_s0 = smov [#allocation6]  }
0x2218   :  { %v2699_v28 = vpop.xlane.xlu0 %2698  ;;  %s6998_s9 = sshll.u32 %s9082_s0, 4  ;;  %s6999_s9 = int_to_ptr.vmem [resolvable:$true] %s6998_s9 }
0x2219   :  { %v2703_v3 = vmul.f32 0.03125, %v2699_v28  ;;  %v3637_v29 = vmul.f32 %v3636_v30, %v3636_v30  ;;  %s9043_s10 = scalar_lea.vmem %s6999_s9, 256  ;;  %p9048_p9 = scmp.lt.s32.totalorder %s6999_s9, %s6999_s9 }
0x221a   :  { %p9044_p8 = scmp.ne.s32.totalorder %s6999_s9, %s9043_s10  ;;  %p9049_p10 = scmp.lt.s32.totalorder %s9043_s10, %s9043_s10 }
0x221b   :  { %v2705_v31 = vsub.f32 %v2695_v20, %v2703_v3  ;;  %v3638_v57 = vsel %vm115_vm0, %v3637_v29, 0.0 }
0x221c   :  { %3639 = vadd.xlane.f32.xlu1 %v3638_v57  ;;  %v2702_v33 = vpop.xlane.xlu0 %2701  ;;  %p9050_p11 = por %p9049_p10, %p9048_p9 }
0x221d   :  { %v2704_v35 = vmul.f32 0.03125, %v2702_v33  ;;  %v2707_v50 = vmul.f32 %v2705_v31, %v2705_v31 }
0x221e   :  { %p9051_p12 = pnand %p9050_p11, %p9044_p8 }
0x221f   :  { %v2706_v58 = vsub.f32 %v2696_v23, %v2704_v35  ;;  %v2709_v36 = vsel %vm115_vm0, %v2707_v50, 0.0 }
0x2220   :  { %2710 = vadd.xlane.f32.xlu1 %v2709_v36 }
0x2221   :  { %v2708_v37 = vmul.f32 %v2706_v58, %v2706_v58 }
0x2223   :  { %v2712_v38 = vsel %vm115_vm0, %v2708_v37, 0.0 }
0x2224   :  { %2713 = vadd.xlane.f32.xlu0 %v2712_v38 }
0x22a9   :  { %v3640_v48 = vpop.xlane.xlu1 %3639 }
0x22aa   :  { %v3641_v54 = vmul.f32 0.03125, %v3640_v48 }
0x22ac   :  { %v3642_v56 = vadd.f32 1e-05, %v3641_v54 }
0x22ad   :  { %v2711_v55 = vpop.xlane.xlu1 %2710 }
0x22ae   :  { %8953 = vrsqrt.f32 %v3642_v56  ;;  %v2715_v59 = vmul.f32 0.03125, %v2711_v55 }
0x22b0   :  { %v2717_v60 = vadd.f32 1e-05, %v2715_v59 }
0x22b1   :  { %v2714_v2 = vpop.xlane.xlu0 %2713 }
0x22b2   :  { %8955 = vrsqrt.f32 %v2717_v60  ;;  %v2716_v32 = vmul.f32 0.03125, %v2714_v2 }
0x22b4   :  { %v2718_v61 = vadd.f32 1e-05, %v2716_v32 }
0x22b6   :  { %8957 = vrsqrt.f32 %v2718_v61 }
0x22b8   :  { %v8954_v4 = vpop.eup %8953 }
0x22b9   :  { %v3644_v5 = vmul.f32 %v8954_v4, %v3636_v30 }
0x22bb   :  { %v3649_v9 = vmul.f32 %v3648_v63, %v3644_v5 }
0x22bc   :  { %v8956_v11 = vpop.eup %8955 }
0x22bd   :  { %v2721_v51 = vmul.f32 %v8956_v11, %v2705_v31  ;;  %v9557_v12 = vadd.f32 %v3653_v7, %v3649_v9 }
0x22bf   :  { %7927 = vmatmul.mubr.msk.f32.vlgmr.msra.gmra.mrb[40].mxu1 %vm115_vm0, %v9557_v12  ;;  %v2727_v16 = vmul.f32 %v2726_v10, %v2721_v51 }
0x22c0   :  { %v8958_v20 = vpop.eup %8957  ;;  %8584 = vmatpush3.bf16.msra.mxu1 %v8581_v47 }
0x22c1   :  { %v2722_v34 = vmul.f32 %v8958_v20, %v2706_v58  ;;  %8586 = vmatprep.subr.bf16.mxu1 %v8585_v13  ;;  %v2733_v22 = vadd.f32 %v2732_v15, %v2727_v16 }
0x22c3   :  { %v2728_v23 = vmul.f32 %v2726_v10, %v2722_v34  ;;  %v3655_v53 = vadd.f32 %v9019_v24, %v2733_v22 }
0x22c4   :  { %8588 = vmatpush3.bf16.msra.mxu1 %v8585_v13 }
0x22c5   :  { %v2734_v25 = vadd.f32 %v2732_v15, %v2728_v23  ;;  %7937 = vmatprep.mubr.msk.f32.mxu1 %vm115_vm0, %v3655_v53  ;;  %8589 = vmatprep.subr.bf16.mxu1 %v9078_v0  ;;  %v9568_v42 = vadd.f32 %v9019_v24, %v3655_v53 }
0x22c7   :  { %v3656_v30 = vadd.f32 %v9020_v26, %v2734_v25  ;;  %6989 = vst.msk [vmem:[#allocation6] sm:$0xff] %vm115_vm0, %v9568_v42 }
0x22c9   :  { %7938 = vmatmul.mubr.msk.f32.vlgmr.msra.gmra.mrb[42].mxu1 %vm115_vm0, %v3656_v30  ;;  %v9576_v28 = vpack.c.bf16 %v3656_v30, %v3655_v53  ;;  %v9578_v3 = vadd.f32 %v9020_v26, %v3656_v30 }
0x22ca   :  { %7944 = vmatprep.mubr.msk.f32.mxu1 %vm9079_vm7, %v9080_v1 }
0x22cb   :  { %6990 = vst.msk [vmem:[#allocation6 + $0x8] sm:$0xff] %vm115_vm0, %v9578_v3 }
0x22cd   :  { %8592 = vmatpush3.bf16.xpose.msk.msra.mxu1 %vm9157_vm1, %v9576_v28 }
0x22ce   :  { %8593 = vmatprep.subr.bf16.mxu1 %v9078_v0 }
0x2392   :  { %v9588_v29 = vpop.f32.mrb[40].mxu1 }
0x2393   :  { %v7928_v31 = vpop.f32.mrb[41].mxu1  ;;  %7945 = vmatmul.mubr.msk.f32.vlgmr.msra.gmra.mrb[44].mxu1 %vm115_vm0, %v9588_v29 }
0x2394   :  { %7951 = vmatprep.mubr.msk.f32.mxu1 %vm9079_vm7, %v9080_v1 }
0x239c   :  { %v7939_v57 = vpop.f32.mrb[42].mxu1 }
0x239d   :  { %v3826_v33 = vpop.f32.mrb[43].mxu1 }
0x239e   :  { %v9594_v35 = vpack.i.bf16 %v7939_v57, %v3826_v33  ;;  %v8594_v50 = vpack.c.bf16 %v7939_v57, %v3826_v33 }
0x23a0   :  { %8595 = vmatpush3.bf16.msra.mxu1 %v8594_v50 }
0x23a1   :  { %8596 = vmatprep.subr.bf16.mxu1 %v9078_v0 }
0x2466   :  { %v3904_v58 = vpop.f32.mrb[44].mxu1 }
0x2467   :  { %v7946_v36 = vpop.f32.mrb[45].mxu1  ;;  %v3908_v37 = vsel %vm353_vm2, %v3904_v58, -inf }
0x2468   :  { %3909 = vmax.xlane.f32.xlu1 %v3908_v37 }
0x2479   :  { %3993 = vrot.lane.b32.xlu1 %v9588_v29, %s9075_s1 }
0x247d   :  { %4164 = vrot.lane.b32.xlu1 %v9588_v29, %s9076_s30 }
0x24f5   :  { %v3910_v38 = vpop.xlane.xlu1 %3909 }
0x24f6   :  { %v3911_v39 = vsub.f32 %v3904_v58, %v3910_v38 }
0x24f8   :  { %v3912_v40 = vmul.f32 1.442695, %v3911_v39 }
0x24f9   :  { %v3994_v52 = vpop.permute.xlu1 %3993 }
0x24fa   :  { %8959 = vpow2.f32 %v3912_v40 }
0x24fd   :  { %v4165_v10 = vpop.permute.xlu1 %4164 }
0x2504   :  { %v8960_v41 = vpop.eup %8959 }
0x2505   :  { %v3914_v43 = vsel %vm353_vm2, %v8960_v41, 0.0 }
0x2506   :  { %3915 = vadd.xlane.f32.xlu0 %v3914_v43 }
0x2593   :  { %v3916_v44 = vpop.xlane.xlu0 %3915 }
0x2594   :  { %8961 = vrcp.f32 %v3916_v44 }
0x259e   :  { %v8962_v45 = vpop.eup %8961 }
0x259f   :  { %v3918_v46 = vmul.f32 %v8962_v45, %v8960_v41 }
0x25a1   :  { %7952 = vmatmul.mubr.msk.f32.vlgmr.msra.gmra.mrb[46].mxu1 %vm353_vm2, %v3918_v46 }
0x25a2   :  { %8599 = vmatpush3.bf16.xpose.msk.msra.mxu1 %vm9157_vm1, %v9576_v28  ;;  %7958 = vmatprep.mubr.msk.f32.mxu1 %vm9079_vm7, %v9080_v1 }
0x25a3   :  { %8607 = vmatprep.subr.bf16.mxu1 %v9078_v0 }
0x25a9   :  { %7959 = vmatmul.mubr.msk.f32.vlgmr.msra.gmra.mrb[48].mxu1 %vm115_vm0, %v3994_v52 }
0x25aa   :  { %7979 = vmatprep.mubr.msk.f32.mxu1 %vm9079_vm7, %v9080_v1 }
0x2674   :  { %v3988_v47 = vpop.f32.mrb[46].mxu1 }
0x2675   :  { %3992 = vst.msk [vmem:[#allocation2] sm:$0xff] %vm115_vm0, %v3988_v47  ;;  %v7953_v48 = vpop.f32.mrb[47].mxu1 }
0x267c   :  { %v4063_v54 = vpop.f32.mrb[48].mxu1 }
0x267d   :  { %v7960_v56 = vpop.f32.mrb[49].mxu1  ;;  %v4067_v55 = vsel %vm353_vm2, %v4063_v54, -inf }
0x267e   :  { %4068 = vmax.xlane.f32.xlu0 %v4067_v55  ;;  %v3665_v55 = vld [vmem:[#allocation3 + $0x388] sm:$0xff] }
0x270b   :  { %v4069_v59 = vpop.xlane.xlu0 %4068 }
0x270c   :  { %v4070_v60 = vsub.f32 %v4063_v54, %v4069_v59  ;;  %v3666_v59 = vld [vmem:[#allocation3 + $0x390] sm:$0xff] }
0x270e   :  { %v4071_v2 = vmul.f32 1.442695, %v4070_v60  ;;  %v3667_v60 = vld [vmem:[#allocation3 + $0x398] sm:$0xff] }
0x2710   :  { %8963 = vpow2.f32 %v4071_v2  ;;  %v8618_v2 = vpack.c.bf16 %v3666_v59, %v3665_v55  ;;  %v4603_v55 = vld [vmem:[#allocation3 + $0x438] sm:$0xff] }
0x271a   :  { %v8964_v32 = vpop.eup %8963 }
0x271b   :  { %v4073_v61 = vsel %vm353_vm2, %v8964_v32, 0.0 }
0x271c   :  { %4074 = vadd.xlane.f32.xlu0 %v4073_v61 }
0x2732   :  { %8832 = vrot.lane.b32.xlu0 %v9594_v35, %s9075_s1 }
0x27a9   :  { %v4075_v63 = vpop.xlane.xlu0 %4074 }
0x27aa   :  { %8965 = vrcp.f32 %v4075_v63  ;;  %v3669_v63 = vld [vmem:[#allocation3 + $0x3a8] sm:$0xff] }
0x27ad   :  { %v8833_v4 = vpop.permute.xlu0 %8832 }
0x27ae   :  { %v8835_v5 = vunpack.i.h.bf16 %v8833_v4  ;;  %v8834_v7 = vunpack.i.l.bf16 %v8833_v4  ;;  %v3670_v4 = vld [vmem:[#allocation3 + $0x3b0] sm:$0xff] }
0x27b0   :  { %v8601_v6 = vpack.c.bf16 %v8835_v5, %v8834_v7  ;;  %v8624_v5 = vpack.c.bf16 %v3670_v4, %v3669_v63  ;;  %v3671_v7 = vld [vmem:[#allocation3 + $0x3b8] sm:$0xff]  ;;  %v4606_v4 = vld [vmem:[#allocation3 + $0x450] sm:$0xff] }
0x27b2   :  { %8602 = vmatpush3.bf16.msra.mxu0 %v8601_v6  ;;  %v3672_v6 = vld [vmem:[#allocation3 + $0x3c0] sm:$0xff] }
0x27b3   :  { %8603 = vmatprep.subr.bf16.mxu0 %v9078_v0 }
0x27b4   :  { %v8966_v8 = vpop.eup %8965 }
0x27b5   :  { %v4077_v9 = vmul.f32 %v8966_v8, %v8964_v32  ;;  %v3668_v32 = vld [vmem:[#allocation3 + $0x3a0] sm:$0xff]  ;;  %v8627_v8 = vpack.c.bf16 %v3672_v6, %v3671_v7 }
0x27b6   :  { %v8621_v61 = vpack.c.bf16 %v3668_v32, %v3667_v60  ;;  %v4604_v32 = vld [vmem:[#allocation3 + $0x440] sm:$0xff] }
0x27b7   :  { %7966 = vmatmul.mubr.msk.f32.vlgmr.msra.gmra.mrb[34].mxu0 %vm353_vm2, %v4077_v9  ;;  %v3673_v9 = vld [vmem:[#allocation3 + $0x3c8] sm:$0xff]  ;;  %v4608_v6 = vld [vmem:[#allocation3 + $0x460] sm:$0xff] }
0x27b8   :  { %7972 = vmatprep.mubr.msk.f32.mxu0 %vm9079_vm7, %v9080_v1 }
0x27bb   :  { %8606 = vmatpush3.bf16.xpose.msk.msra.mxu0 %vm9157_vm1, %v9576_v28 }
0x27bc   :  { %8614 = vmatprep.subr.bf16.mxu0 %v9078_v0 }
0x27c2   :  { %7973 = vmatmul.mubr.msk.f32.vlgmr.msra.gmra.mrb[36].mxu0 %vm115_vm0, %v4165_v10  ;;  %v3674_v10 = vld [vmem:[#allocation3 + $0x3d0] sm:$0xff] }
0x27c3   :  { %7993 = vmatprep.mubr.msk.f32.mxu0 %vm9079_vm7, %v9080_v1 }
0x288a   :  { %v4155_v11 = vpop.f32.mrb[34].mxu0 }
0x288b   :  { %v7967_v51 = vpop.f32.mrb[35].mxu0 }
0x288c   :  { %v3675_v51 = vld [vmem:[#allocation3 + $0x3d8] sm:$0xff] }
0x2895   :  { %v4234_v13 = vpop.f32.mrb[36].mxu0 }
0x2896   :  { %v7974_v15 = vpop.f32.mrb[37].mxu0  ;;  %v4238_v16 = vsel %vm353_vm2, %v4234_v13, -inf }
0x2897   :  { %4239 = vmax.xlane.f32.xlu1 %v4238_v16  ;;  %v3677_v16 = vld [vmem:[#allocation3 + $0x3e8] sm:$0xff] }
0x28a8   :  { %8837 = vrot.lane.b32.xlu1 %v9594_v35, %s9076_s30 }
0x2924   :  { %v4240_v20 = vpop.xlane.xlu1 %4239 }
0x2925   :  { %v4241_v34 = vsub.f32 %v4234_v13, %v4240_v20  ;;  %v3676_v13 = vld [vmem:[#allocation3 + $0x3e0] sm:$0xff]  ;;  %v3678_v20 = vld [vmem:[#allocation3 + $0x3f0] sm:$0xff] }
0x2926   :  { %v8633_v15 = vpack.c.bf16 %v3676_v13, %v3675_v51 }
0x2927   :  { %v4242_v22 = vmul.f32 1.442695, %v4241_v34  ;;  %v8636_v34 = vpack.c.bf16 %v3678_v20, %v3677_v16  ;;  %v7110_v16 = vld [vmem:[#allocation3 + $0x470] ss:$0 sm:$0xff] }
0x2928   :  { %v8838_v23 = vpop.permute.xlu1 %8837 }
0x2929   :  { %8967 = vpow2.f32 %v4242_v22  ;;  %v8840_v24 = vunpack.i.h.bf16 %v8838_v23  ;;  %v8839_v53 = vunpack.i.l.bf16 %v8838_v23  ;;  %v3679_v22 = vld [vmem:[#allocation3 + $0x3f8] sm:$0xff]  ;;  %v3680_v23 = vld [vmem:[#allocation3 + $0x400] sm:$0xff] }
0x292b   :  { %v8608_v25 = vpack.c.bf16 %v8840_v24, %v8839_v53  ;;  %v8639_v24 = vpack.c.bf16 %v3680_v23, %v3679_v22 }
0x292d   :  { %8609 = vmatpush3.bf16.msra.mxu1 %v8608_v25 }
0x292e   :  { %8610 = vmatprep.subr.bf16.mxu1 %v9078_v0 }
0x2933   :  { %v8968_v26 = vpop.eup %8967 }
0x2934   :  { %v4244_v30 = vsel %vm353_vm2, %v8968_v26, 0.0 }
0x2935   :  { %4245 = vadd.xlane.f32.xlu0 %v4244_v30 }
0x294b   :  { %4333 = vrot.lane.b32.xlu0 %v9588_v29, %s9077_s4 }
0x29c2   :  { %v4246_v31 = vpop.xlane.xlu0 %4245 }
0x29c3   :  { %8969 = vrcp.f32 %v4246_v31 }
0x29c6   :  { %v4334_v50 = vpop.permute.xlu0 %4333 }
0x29cd   :  { %v8970_v57 = vpop.eup %8969 }
0x29ce   :  { %v4248_v33 = vmul.f32 %v8970_v57, %v8968_v26 }
0x29d0   :  { %7980 = vmatmul.mubr.msk.f32.vlgmr.msra.gmra.mrb[50].mxu1 %vm353_vm2, %v4248_v33 }
0x29d1   :  { %8613 = vmatpush3.bf16.xpose.msk.msra.mxu1 %vm9157_vm1, %v9576_v28  ;;  %7986 = vmatprep.mubr.msk.f32.mxu1 %vm9079_vm7, %v9080_v1 }
0x29d2   :  { %8641 = vmatprep.subr.bf16.mxu1 %v9078_v0 }
0x29d8   :  { %7987 = vmatmul.mubr.msk.f32.vlgmr.msra.gmra.mrb[52].mxu1 %vm115_vm0, %v4334_v50 }
0x29d9   :  { %8039 = vmatprep.mubr.msk.f32.mxu1 %vm9079_vm7, %v9080_v1 }
0x2aa3   :  { %v4324_v29 = vpop.f32.mrb[50].mxu1 }
0x2aa4   :  { %v7981_v58 = vpop.f32.mrb[51].mxu1 }
0x2aab   :  { %v4403_v36 = vpop.f32.mrb[52].mxu1 }
0x2aac   :  { %v7988_v37 = vpop.f32.mrb[53].mxu1  ;;  %v4407_v38 = vsel %vm353_vm2, %v4403_v36, -inf }
0x2aad   :  { %4408 = vmax.xlane.f32.xlu1 %v4407_v38 }
0x2abe   :  { %8842 = vrot.lane.b32.xlu1 %v9594_v35, %s9077_s4 }
0x2ac2   :  { %4329 = vrot.lane.b32.xlu1 %v4324_v29, %s9076_s30 }
0x2b3a   :  { %v4409_v28 = vpop.xlane.xlu1 %4408 }
0x2b3b   :  { %v4410_v39 = vsub.f32 %v4403_v36, %v4409_v28 }
0x2b3d   :  { %v4411_v40 = vmul.f32 1.442695, %v4410_v39  ;;  %v4597_v39 = vld [vmem:[#allocation3 + $0x408] sm:$0xff] }
0x2b3e   :  { %v8843_v41 = vpop.permute.xlu1 %8842 }
0x2b3f   :  { %8971 = vpow2.f32 %v4411_v40  ;;  %v8845_v43 = vunpack.i.h.bf16 %v8843_v41  ;;  %v8844_v44 = vunpack.i.l.bf16 %v8843_v41  ;;  %v4598_v40 = vld [vmem:[#allocation3 + $0x410] sm:$0xff] }
0x2b40   :  { %v8642_v41 = vpack.c.bf16 %v4598_v40, %v4597_v39  ;;  %v4798_v40 = vld [vmem:[#allocation3 + $0x4b8] sm:$0xff] }
0x2b41   :  { %v8615_v45 = vpack.c.bf16 %v8845_v43, %v8844_v44  ;;  %v4599_v43 = vld [vmem:[#allocation3 + $0x418] sm:$0xff]  ;;  %v4600_v44 = vld [vmem:[#allocation3 + $0x420] sm:$0xff] }
0x2b42   :  { %v4330_v48 = vpop.permute.xlu1 %4329  ;;  %8643 = vmatpush3.bf16.msra.mxu1 %v8642_v41 }
0x2b43   :  { %8616 = vmatpush3.bf16.msra.mxu0 %v8615_v45  ;;  %8644 = vmatprep.subr.bf16.mxu1 %v9078_v0  ;;  %v8645_v45 = vpack.c.bf16 %v4600_v44, %v4599_v43 }
0x2b44   :  { %8617 = vmatprep.subr.bf16.mxu0 %v9078_v0 }
0x2b46   :  { %8646 = vmatpush3.bf16.msra.mxu1 %v8645_v45 }
0x2b47   :  { %8647 = vmatprep.subr.bf16.mxu1 %v9078_v0 }
0x2b49   :  { %v8972_v46 = vpop.eup %8971 }
0x2b4a   :  { %v4413_v52 = vsel %vm353_vm2, %v8972_v46, 0.0 }
0x2b4b   :  { %4414 = vadd.xlane.f32.xlu0 %v4413_v52 }
0x2b61   :  { %4160 = vrot.lane.b32.xlu0 %v4155_v11, %s9077_s4  ;;  %v8630_v11 = vpack.c.bf16 %v3674_v10, %v3673_v9  ;;  %v7108_v10 = vld [vmem:[#allocation3 + $0x428] ss:$0 sm:$0xff] }
0x2bd8   :  { %v4415_v35 = vpop.xlane.xlu0 %4414 }
0x2bd9   :  { %8973 = vrcp.f32 %v4415_v35  ;;  %v4590_v35 = vrot.slane %v9549_v62, %v9146_v27 }
0x2bdc   :  { %v4161_v47 = vpop.permute.xlu0 %4160 }
0x2bdd   :  { %4163 = vst.msk [vmem:[#allocation2] sm:$0xff] %vm661_vm3, %v4161_v47 }
0x2bde   :  { %4332 = vst.msk [vmem:[#allocation2] sm:$0xff] %vm864_vm4, %v4330_v48 }
0x2be3   :  { %v8974_v54 = vpop.eup %8973 }
0x2be4   :  { %v4417_v56 = vmul.f32 %v8974_v54, %v8972_v46  ;;  %v4595_v54 = vrot.slane %v9549_v62, %v9298_v14 }
0x2be6   :  { %7994 = vmatmul.mubr.msk.f32.vlgmr.msra.gmra.mrb[38].mxu0 %vm353_vm2, %v4417_v56  ;;  %v4602_v56 = vld [vmem:[#allocation3 + $0x430] sm:$0xff] }
0x2be7   :  { %8028 = vmatprep.mubr.msk.f32.mxu0 %vm9079_vm7, %v9080_v1  ;;  %8619 = vmatpush3.bf16.msra.mxu0 %v8618_v2  ;;  %v8648_v60 = vpack.c.bf16 %v4603_v55, %v4602_v56 }
0x2be8   :  { %8620 = vmatprep.subr.bf16.mxu0 %v9078_v0 }
0x2beb   :  { %8622 = vmatpush3.bf16.msra.mxu0 %v8621_v61  ;;  %v4605_v61 = vld [vmem:[#allocation3 + $0x448] sm:$0xff] }
0x2bec   :  { %8623 = vmatprep.subr.bf16.mxu0 %v9078_v0  ;;  %v8651_v63 = vpack.c.bf16 %v4605_v61, %v4604_v32 }
0x2bef   :  { %8625 = vmatpush3.bf16.msra.mxu0 %v8624_v5  ;;  %v4607_v5 = vld [vmem:[#allocation3 + $0x458] sm:$0xff] }
0x2bf0   :  { %8626 = vmatprep.subr.bf16.mxu0 %v9078_v0  ;;  %v8654_v7 = vpack.c.bf16 %v4607_v5, %v4606_v4 }
0x2bf3   :  { %8628 = vmatpush3.bf16.msra.mxu0 %v8627_v8  ;;  %v4609_v8 = vld [vmem:[#allocation3 + $0x468] sm:$0xff] }
0x2bf4   :  { %8629 = vmatprep.subr.bf16.mxu0 %v9078_v0  ;;  %v8657_v9 = vpack.c.bf16 %v4609_v8, %v4608_v6 }
0x2bf7   :  { %8631 = vmatpush3.bf16.msra.mxu0 %v8630_v11 }
0x2bf8   :  { %8632 = vmatprep.subr.bf16.mxu0 %v9078_v0 }
0x2bfb   :  { %8634 = vmatpush3.bf16.msra.mxu0 %v8633_v15 }
0x2bfc   :  { %8635 = vmatprep.subr.bf16.mxu0 %v9078_v0 }
0x2bff   :  { %8637 = vmatpush3.bf16.msra.mxu0 %v8636_v34 }
0x2c00   :  { %8638 = vmatprep.subr.bf16.mxu0 %v9078_v0 }
0x2c03   :  { %8640 = vmatpush3.bf16.msra.mxu0 %v8639_v24 }
0x2c04   :  { %8665 = vmatprep.subr.bf16.mxu0 %v9078_v0 }
0x2cb9   :  { %v4493_v53 = vpop.f32.mrb[38].mxu0 }
0x2cba   :  { %4498 = vrot.lane.b32.xlu1 %v4493_v53, %s9075_s1  ;;  %v7995_v25 = vpop.f32.mrb[39].mxu0 }
0x2d2c   :  { %v4499_v26 = vpop.permute.xlu1 %4498 }
0x2d2d   :  { %4501 = vst.msk [vmem:[#allocation2] sm:$0xff] %vm1067_vm5, %v4499_v26 }
0x2d34   :  { %v4502_v30 = vld [vmem:[#allocation2] sm:$0xff] }
0x2d35   :  { %8029 = vmatmul.mubr.f32.vlgmr.msra.gmra.mrb[40].mxu0 %v4502_v30 }
0x2d36   :  { %8080 = vmatprep.mubr.msk.f32.mxu0 %vm9079_vm7, %v9080_v1 }
0x2e08   :  { %v4569_v31 = vpop.f32.mrb[40].mxu0 }
0x2e09   :  { %v4570_v57 = vadd.f32 %v4569_v31, %v9557_v12  ;;  %v8030_v33 = vpop.f32.mrb[41].mxu0 }
0x2e0a   :  { %v4792_v33 = vld [vmem:[#allocation3 + $0x488] sm:$0xff] }
0x2e0b   :  { %v4573_v50 = vadd.f32 %v4570_v57, %v9557_v12  ;;  %v4791_v57 = vld [vmem:[#allocation3 + $0x480] sm:$0xff] }
0x2e0d   :  { %v4574_v29 = vsel %vm115_vm0, %v4573_v50, 0.0 }
0x2e0e   :  { %4575 = vadd.xlane.f32.xlu1 %v4574_v29  ;;  %v8660_v29 = vpack.c.bf16 %v4792_v33, %v4791_v57 }
0x2e9b   :  { %v4576_v58 = vpop.xlane.xlu1 %4575 }
0x2e9c   :  { %v4577_v36 = vmul.f32 0.03125, %v4576_v58  ;;  %v4796_v58 = vld [vmem:[#allocation3 + $0x4a8] sm:$0xff] }
0x2e9e   :  { %v4578_v37 = vsub.f32 %v4573_v50, %v4577_v36  ;;  %v4795_v50 = vld [vmem:[#allocation3 + $0x4a0] sm:$0xff] }
0x2e9f   :  { %v8666_v36 = vpack.c.bf16 %v4796_v58, %v4795_v50 }
0x2ea0   :  { %v4579_v38 = vmul.f32 %v4578_v37, %v4578_v37 }
0x2ea1   :  { %8667 = vmatpush3.bf16.msra.mxu0 %v8666_v36 }
0x2ea2   :  { %v4580_v28 = vsel %vm115_vm0, %v4579_v38, 0.0  ;;  %v4794_v38 = vld [vmem:[#allocation3 + $0x498] sm:$0xff]  ;;  %8668 = vmatprep.subr.bf16.mxu0 %v9078_v0 }
0x2ea3   :  { %4581 = vadd.xlane.f32.xlu0 %v4580_v28  ;;  %v4797_v28 = vld [vmem:[#allocation3 + $0x4b0] sm:$0xff] }
0x2ea4   :  { %v8669_v41 = vpack.c.bf16 %v4798_v40, %v4797_v28 }
0x2ea6   :  { %8670 = vmatpush3.bf16.msra.mxu0 %v8669_v41 }
0x2ea7   :  { %8093 = vmatprep.subr.mxu0 %v9080_v1 }
0x2f30   :  { %v4582_v12 = vpop.xlane.xlu0 %4581 }
0x2f31   :  { %v4583_v46 = vmul.f32 0.03125, %v4582_v12  ;;  %v4782_v12 = vsub.s32 4, %v9135_v18 }
0x2f33   :  { %v4584_v52 = vadd.f32 1e-05, %v4583_v46  ;;  %v4787_v46 = vsub.s32 5, %v9135_v18 }
0x2f35   :  { %8975 = vrsqrt.f32 %v4584_v52  ;;  %v4783_v52 = vrot.slane %v9549_v62, %v4782_v12 }
0x2f3f   :  { %v8976_v47 = vpop.eup %8975 }
0x2f40   :  { %v4586_v48 = vmul.f32 %v8976_v47, %v4578_v37  ;;  %v4793_v37 = vld [vmem:[#allocation3 + $0x490] sm:$0xff]  ;;  %v4788_v47 = vrot.slane %v9549_v62, %v4787_v46 }
0x2f41   :  { %v8663_v39 = vpack.c.bf16 %v4794_v38, %v4793_v37 }
0x2f42   :  { %v4591_v59 = vmul.f32 %v4590_v35, %v4586_v48 }
0x2f44   :  { %v4596_v2 = vadd.f32 %v4595_v54, %v4591_v59 }
0x2f46   :  { %8040 = vmatmul.mubr.msk.f32.vlgmr.msra.gmra.mrb[54].mxu1 %vm115_vm0, %v4596_v2 }
0x2f47   :  { %8649 = vmatpush3.bf16.msra.mxu1 %v8648_v60  ;;  %8058 = vmatprep.mubr.msk.f32.mxu1 %vm9079_vm7, %v9080_v1 }
0x2f48   :  { %8650 = vmatprep.subr.bf16.mxu1 %v9078_v0 }
0x2f4b   :  { %8652 = vmatpush3.bf16.msra.mxu1 %v8651_v63 }
0x2f4c   :  { %8653 = vmatprep.subr.bf16.mxu1 %v9078_v0 }
0x2f4f   :  { %8655 = vmatpush3.bf16.msra.mxu1 %v8654_v7 }
0x2f50   :  { %8656 = vmatprep.subr.bf16.mxu1 %v9078_v0 }
0x2f53   :  { %8658 = vmatpush3.bf16.msra.mxu1 %v8657_v9 }
0x2f54   :  { %8659 = vmatprep.subr.bf16.mxu1 %v9078_v0 }
0x3019   :  { %v4684_v11 = vpop.f32.mrb[54].mxu1 }
0x301a   :  { %v4685_v51 = vadd.f32 %v7108_v10, %v4684_v11  ;;  %v8041_v13 = vpop.f32.mrb[55].mxu1 }
0x301c   :  { %v4688_v15 = vmax.f32 %v4685_v51, 0.0 }
0x301e   :  { %8059 = vmatmul.mubr.msk.f32.vlgmr.msra.gmra.mrb[56].mxu1 %vm1293_vm6, %v4688_v15 }
0x301f   :  { %8069 = vmatprep.mubr.msk.f32.mxu1 %vm9079_vm7, %v9080_v1  ;;  %8661 = vmatpush3.bf16.msra.mxu1 %v8660_v29 }
0x3020   :  { %8662 = vmatprep.subr.bf16.mxu1 %v9078_v0 }
0x3023   :  { %8664 = vmatpush3.bf16.msra.mxu1 %v8663_v39 }
0x3024   :  { %8083 = vmatprep.subr.mxu1 %v9080_v1 }
0x30f1   :  { %v4762_v20 = vpop.f32.mrb[56].mxu1 }
0x30f2   :  { %v4763_v34 = vadd.f32 %v7110_v16, %v4762_v20  ;;  %v8060_v22 = vpop.f32.mrb[57].mxu1 }
0x30f4   :  { %v4766_v23 = vadd.f32 %v4763_v34, %v4596_v2 }
0x30f6   :  { %v4767_v24 = vsel %vm115_vm0, %v4766_v23, 0.0 }
0x30f7   :  { %4768 = vadd.xlane.f32.xlu0 %v4767_v24 }
0x3184   :  { %v4769_v53 = vpop.xlane.xlu0 %4768 }
0x3185   :  { %v4770_v25 = vmul.f32 0.03125, %v4769_v53 }
0x3187   :  { %v4771_v26 = vsub.f32 %v4766_v23, %v4770_v25 }
0x3189   :  { %v4772_v30 = vmul.f32 %v4771_v26, %v4771_v26 }
0x318b   :  { %v4773_v31 = vsel %vm115_vm0, %v4772_v30, 0.0 }
0x318c   :  { %4774 = vadd.xlane.f32.xlu1 %v4773_v31 }
0x3219   :  { %v4775_v43 = vpop.xlane.xlu1 %4774 }
0x321a   :  { %v4776_v44 = vmul.f32 0.03125, %v4775_v43 }
0x321c   :  { %v4777_v45 = vadd.f32 1e-05, %v4776_v44 }
0x321e   :  { %8977 = vrsqrt.f32 %v4777_v45 }
0x3228   :  { %v8978_v35 = vpop.eup %8977 }
0x3229   :  { %v4779_v48 = vmul.f32 %v8978_v35, %v4771_v26 }
0x322b   :  { %v4784_v54 = vmul.f32 %v4783_v52, %v4779_v48 }
0x322d   :  { %v9704_v56 = vadd.f32 %v4788_v47, %v4784_v54 }
0x322f   :  { %8070 = vmatmul.mubr.msk.f32.vlgmr.msra.gmra.mrb[58].mxu1 %vm115_vm0, %v9704_v56  ;;  %8081 = vmatmul.mubr.msk.f32.vlgmr.msra.gmra.mrb[42].mxu0 %vm115_vm0, %v9704_v56 }
0x3230   :  { %8084 = vmatpush3.xpose.msk.msra.mxu1 %vm115_vm0, %v9704_v56  ;;  %8094 = vmatpush3.xpose.msk.msra.mxu0 %vm115_vm0, %v9704_v56 }
0x3231   :  { %8085 = vmatprep.mubr.msk.f32.mxu1 %vm9079_vm7, %v9080_v1  ;;  %8088 = vmatprep.subr.mxu1 %v9080_v1 }
0x3232   :  { %8095 = vmatprep.mubr.msk.f32.mxu0 %vm9079_vm7, %v9080_v1  ;;  %8103 = vmatprep.subr.mxu0 %v9080_v1 }
0x3302   :  { %v4884_v62 = vpop.f32.mrb[58].mxu1  ;;  %v9720_v55 = vpop.f32.mrb[42].mxu0 }
0x3303   :  { %v8082_v59 = vpop.f32.mrb[43].mxu0  ;;  %5283 = vrot.lane.b32.xlu1 %v4884_v62, %s9076_s30  ;;  %5116 = vrot.lane.b32.xlu0 %v4884_v62, %s9075_s1  ;;  %v8071_v60 = vpop.f32.mrb[59].mxu1 }
0x3304   :  { %8086 = vmatmul.mubr.msk.f32.vlgmr.msra.gmra.mrb[60].mxu1 %vm115_vm0, %v4884_v62 }
0x3305   :  { %8089 = vmatpush3.msra.mxu1 %v9720_v55  ;;  %8090 = vmatprep.mubr.msk.f32.mxu1 %vm9079_vm7, %v9080_v1 }
0x3306   :  { %8098 = vmatprep.subr.mxu1 %v9080_v1 }
0x3307   :  { %5449 = vrot.lane.b32.xlu1 %v4884_v62, %s9077_s4 }
0x3375   :  { %v5117_v2 = vpop.permute.xlu0 %5116  ;;  %v5284_v32 = vpop.permute.xlu1 %5283 }
0x3376   :  { %8096 = vmatmul.mubr.msk.f32.vlgmr.msra.gmra.mrb[44].mxu0 %vm115_vm0, %v5117_v2  ;;  %v4799_v2 = vld [vmem:[#allocation3 + $0x4c0] sm:$0xff] }
0x3377   :  { %8104 = vmatpush3.xpose.msk.msra.mxu0 %vm115_vm0, %v9704_v56  ;;  %8105 = vmatprep.mubr.msk.f32.mxu0 %vm9079_vm7, %v9080_v1 }
0x3378   :  { %8113 = vmatprep.subr.mxu0 %v9080_v1 }
0x3379   :  { %v5450_v61 = vpop.permute.xlu1 %5449 }
0x337a   :  { %8106 = vmatmul.mubr.msk.f32.vlgmr.msra.gmra.mrb[46].mxu0 %vm115_vm0, %v5284_v32  ;;  %v4800_v32 = vld [vmem:[#allocation3 + $0x4c8] sm:$0xff] }
0x337b   :  { %8114 = vmatpush3.xpose.msk.msra.mxu0 %vm115_vm0, %v9704_v56  ;;  %8115 = vmatprep.mubr.msk.f32.mxu0 %vm9079_vm7, %v9080_v1 }
0x337c   :  { %8671 = vmatprep.subr.bf16.mxu0 %v9078_v0 }
0x337e   :  { %8116 = vmatmul.mubr.msk.f32.vlgmr.msra.gmra.mrb[48].mxu0 %vm115_vm0, %v5450_v61  ;;  %v4801_v61 = vld [vmem:[#allocation3 + $0x4d0] sm:$0xff] }
0x337f   :  { %8155 = vmatprep.mubr.msk.f32.mxu0 %vm9079_vm7, %v9080_v1 }
0x33d7   :  { %v5027_v63 = vpop.f32.mrb[60].mxu1 }
0x33d8   :  { %v8087_v4 = vpop.f32.mrb[61].mxu1  ;;  %v5031_v5 = vsel %vm2976_vm8, %v5027_v63, -inf }
0x33d9   :  { %5032 = vmax.xlane.f32.xlu0 %v5031_v5  ;;  %v4802_v4 = vld [vmem:[#allocation3 + $0x4d8] sm:$0xff] }
0x33da   :  { %v8675_v5 = vpack.c.bf16 %v4802_v4, %v4801_v61  ;;  %v5717_v61 = vld [vmem:[#allocation3 + $0x568] sm:$0xff] }
0x3449   :  { %v5186_v7 = vpop.f32.mrb[44].mxu0 }
0x344a   :  { %v8097_v6 = vpop.f32.mrb[45].mxu0  ;;  %v5190_v8 = vsel %vm2976_vm8, %v5186_v7, -inf }
0x344b   :  { %5191 = vmax.xlane.f32.xlu1 %v5190_v8  ;;  %v4804_v6 = vld [vmem:[#allocation3 + $0x4e8] sm:$0xff] }
0x344d   :  { %v5353_v9 = vpop.f32.mrb[46].mxu0 }
0x344e   :  { %v8107_v10 = vpop.f32.mrb[47].mxu0  ;;  %v5357_v11 = vsel %vm2976_vm8, %v5353_v9, -inf }
0x344f   :  { %5358 = vmax.xlane.f32.xlu0 %v5357_v11  ;;  %v4806_v10 = vld [vmem:[#allocation3 + $0x4f8] sm:$0xff] }
0x3451   :  { %v5519_v51 = vpop.f32.mrb[48].mxu0 }
0x3452   :  { %v8117_v13 = vpop.f32.mrb[49].mxu0  ;;  %v5523_v15 = vsel %vm2976_vm8, %v5519_v51, -inf }
0x3453   :  { %5524 = vmax.xlane.f32.xlu0 %v5523_v15  ;;  %v4807_v15 = vld [vmem:[#allocation3 + $0x500] sm:$0xff] }
0x345c   :  { %5202 = vrot.lane.b32.xlu1 %v9720_v55, %s9075_s1 }
0x3466   :  { %v5033_v16 = vpop.xlane.xlu0 %5032 }
0x3467   :  { %v5034_v20 = vsub.f32 %v5027_v63, %v5033_v16  ;;  %v8672_v63 = vpack.c.bf16 %v4800_v32, %v4799_v2  ;;  %v4808_v16 = vld [vmem:[#allocation3 + $0x508] sm:$0xff]  ;;  %v5715_v2 = vld [vmem:[#allocation3 + $0x558] sm:$0xff]  ;;  %v5716_v32 = vld [vmem:[#allocation3 + $0x560] sm:$0xff] }
0x3469   :  { %v5035_v34 = vmul.f32 1.442695, %v5034_v20  ;;  %8673 = vmatpush3.bf16.msra.mxu0 %v8672_v63  ;;  %v8684_v20 = vpack.c.bf16 %v4808_v16, %v4807_v15  ;;  %v8701_v63 = vpack.c.bf16 %v5717_v61, %v5716_v32 }
0x346a   :  { %8674 = vmatprep.subr.bf16.mxu0 %v9078_v0 }
0x346b   :  { %8979 = vpow2.f32 %v5035_v34  ;;  %v4809_v34 = vld [vmem:[#allocation3 + $0x510] sm:$0xff] }
0x346d   :  { %8676 = vmatpush3.bf16.msra.mxu0 %v8675_v5 }
0x346e   :  { %8677 = vmatprep.subr.bf16.mxu0 %v9078_v0 }
0x3475   :  { %v8980_v22 = vpop.eup %8979 }
0x3476   :  { %v5037_v23 = vsel %vm2976_vm8, %v8980_v22, 0.0 }
0x3480   :  { %5038 = vadd.xlane.f32.xlu1 %v5037_v23 }
0x34d8   :  { %v5192_v24 = vpop.xlane.xlu1 %5191 }
0x34d9   :  { %v5193_v53 = vsub.f32 %v5186_v7, %v5192_v24  ;;  %v4803_v7 = vld [vmem:[#allocation3 + $0x4e0] sm:$0xff] }
0x34da   :  { %v8678_v8 = vpack.c.bf16 %v4804_v6, %v4803_v7  ;;  %v4811_v24 = vld [vmem:[#allocation3 + $0x520] sm:$0xff]  ;;  %v9796_v6 = vld [vmem:[#allocation3 + $0x670] sm:$0x3f] }
0x34db   :  { %v5194_v25 = vmul.f32 1.442695, %v5193_v53  ;;  %v4812_v53 = vld [vmem:[#allocation3 + $0x528] sm:$0xff] }
0x34dc   :  { %v5359_v26 = vpop.xlane.xlu0 %5358  ;;  %v5203_v39 = vpop.permute.xlu1 %5202  ;;  %8679 = vmatpush3.bf16.msra.mxu0 %v8678_v8  ;;  %v5703_v8 = vrot.slane %v9796_v6, %v9138_v19 }
0x34dd   :  { %8981 = vpow2.f32 %v5194_v25  ;;  %v5360_v30 = vsub.f32 %v5353_v9, %v5359_v26  ;;  %v4805_v9 = vld [vmem:[#allocation3 + $0x4f0] sm:$0xff]  ;;  %8680 = vmatprep.subr.bf16.mxu0 %v9078_v0  ;;  %v8690_v26 = vpack.c.bf16 %v4812_v53, %v4811_v24 }
0x34de   :  { %v8681_v11 = vpack.c.bf16 %v4806_v10, %v4805_v9  ;;  %v4813_v25 = vld [vmem:[#allocation3 + $0x530] sm:$0xff] }
0x34df   :  { %v5361_v31 = vmul.f32 1.442695, %v5360_v30  ;;  %v4814_v30 = vld [vmem:[#allocation3 + $0x538] sm:$0xff] }
0x34e0   :  { %v5525_v57 = vpop.xlane.xlu0 %5524  ;;  %8682 = vmatpush3.bf16.msra.mxu0 %v8681_v11  ;;  %v5708_v11 = vrot.slane %v9796_v6, %v9141_v21 }
0x34e1   :  { %8983 = vpow2.f32 %v5361_v31  ;;  %v5526_v33 = vsub.f32 %v5519_v51, %v5525_v57  ;;  %8683 = vmatprep.subr.bf16.mxu0 %v9078_v0  ;;  %v8693_v31 = vpack.c.bf16 %v4814_v30, %v4813_v25 }
0x34e3   :  { %v5527_v50 = vmul.f32 1.442695, %v5526_v33 }
0x34e4   :  { %8685 = vmatpush3.bf16.msra.mxu0 %v8684_v20 }
0x34e5   :  { %8985 = vpow2.f32 %v5527_v50  ;;  %8686 = vmatprep.subr.bf16.mxu0 %v9078_v0 }
0x34e7   :  { %v8982_v29 = vpop.eup %8981 }
0x34e8   :  { %v5196_v58 = vsel %vm2976_vm8, %v8982_v29, 0.0 }
0x34e9   :  { %5197 = vadd.xlane.f32.xlu0 %v5196_v58 }
0x34eb   :  { %v8984_v36 = vpop.eup %8983 }
0x34ec   :  { %v5363_v37 = vsel %vm2976_vm8, %v8984_v36, 0.0 }
0x34ed   :  { %5364 = vadd.xlane.f32.xlu1 %v5363_v37 }
0x34ef   :  { %v8986_v38 = vpop.eup %8985 }
0x34f0   :  { %v5529_v28 = vsel %vm2976_vm8, %v8986_v38, 0.0 }
0x34f1   :  { %5530 = vadd.xlane.f32.xlu0 %v5529_v28 }
0x34fe   :  { %5534 = vrot.lane.b32.xlu1 %v9720_v55, %s9077_s4 }
0x3507   :  { %5368 = vrot.lane.b32.xlu0 %v9720_v55, %s9076_s30 }
0x350d   :  { %v5039_v40 = vpop.xlane.xlu1 %5038 }
0x350e   :  { %8987 = vrcp.f32 %v5039_v40 }
0x3518   :  { %v8988_v41 = vpop.eup %8987 }
0x3519   :  { %v5041_v43 = vmul.f32 %v8988_v41, %v8980_v22  ;;  %v4810_v22 = vld [vmem:[#allocation3 + $0x518] sm:$0xff] }
0x351a   :  { %v8687_v23 = vpack.c.bf16 %v4810_v22, %v4809_v34  ;;  %v9815_v34 = vpack.c.bf16 %v9578_v3, %v9568_v42 }
0x351b   :  { %8091 = vmatmul.mubr.msk.f32.vlgmr.msra.gmra.mrb[62].mxu1 %vm2976_vm8, %v5041_v43 }
0x351c   :  { %8099 = vmatpush3.msra.mxu1 %v5203_v39  ;;  %8100 = vmatprep.mubr.msk.f32.mxu1 %vm9079_vm7, %v9080_v1 }
0x351d   :  { %8108 = vmatprep.subr.mxu1 %v9080_v1  ;;  %8688 = vmatpush3.bf16.msra.mxu0 %v8687_v23 }
0x351e   :  { %8689 = vmatprep.subr.bf16.mxu0 %v9078_v0 }
0x3521   :  { %8691 = vmatpush3.bf16.msra.mxu0 %v8690_v26 }
0x3522   :  { %8692 = vmatprep.subr.bf16.mxu0 %v9078_v0 }
0x3525   :  { %8694 = vmatpush3.bf16.msra.mxu0 %v8693_v31 }
0x3526   :  { %8720 = vmatprep.subr.bf16.mxu0 %v9078_v0 }
0x3576   :  { %v5198_v44 = vpop.xlane.xlu0 %5197 }
0x3577   :  { %8989 = vrcp.f32 %v5198_v44 }
0x357a   :  { %v5365_v45 = vpop.xlane.xlu1 %5364 }
0x357b   :  { %8991 = vrcp.f32 %v5365_v45 }
0x357e   :  { %v5531_v52 = vpop.xlane.xlu0 %5530  ;;  %v5535_v55 = vpop.permute.xlu1 %5534 }
0x357f   :  { %8993 = vrcp.f32 %v5531_v52 }
0x3581   :  { %v8990_v35 = vpop.eup %8989 }
0x3582   :  { %v5200_v47 = vmul.f32 %v8990_v35, %v8982_v29  ;;  %v5369_v48 = vpop.permute.xlu0 %5368 }
0x3584   :  { %8101 = vmatmul.mubr.msk.f32.vlgmr.msra.gmra.mrb[64].mxu1 %vm2976_vm8, %v5200_v47 }
0x3585   :  { %v8992_v54 = vpop.eup %8991  ;;  %8109 = vmatpush3.msra.mxu1 %v5369_v48  ;;  %8110 = vmatprep.mubr.msk.f32.mxu1 %vm9079_vm7, %v9080_v1 }
0x3586   :  { %v5367_v62 = vmul.f32 %v8992_v54, %v8984_v36  ;;  %8118 = vmatprep.subr.mxu1 %v9080_v1 }
0x3588   :  { %8111 = vmatmul.mubr.msk.f32.vlgmr.msra.gmra.mrb[66].mxu1 %vm2976_vm8, %v5367_v62  ;;  %v5712_v62 = vld [vmem:[#allocation3 + $0x540] sm:$0xff] }
0x3589   :  { %v8994_v59 = vpop.eup %8993  ;;  %8119 = vmatpush3.msra.mxu1 %v5535_v55  ;;  %8120 = vmatprep.mubr.msk.f32.mxu1 %vm9079_vm7, %v9080_v1  ;;  %v5713_v55 = vld [vmem:[#allocation3 + $0x548] sm:$0xff] }
0x358a   :  { %v5533_v60 = vmul.f32 %v8994_v59, %v8986_v38  ;;  %8695 = vmatprep.subr.bf16.mxu1 %v9078_v0  ;;  %v8696_v59 = vpack.c.bf16 %v5713_v55, %v5712_v62 }
0x358c   :  { %8121 = vmatmul.mubr.msk.f32.vlgmr.msra.gmra.mrb[68].mxu1 %vm2976_vm8, %v5533_v60  ;;  %v5714_v60 = vld [vmem:[#allocation3 + $0x550] sm:$0xff] }
0x358d   :  { %8166 = vmatprep.mubr.msk.f32.mxu1 %vm9079_vm7, %v9080_v1  ;;  %8697 = vmatpush3.bf16.msra.mxu1 %v8696_v59 }
0x358e   :  { %8698 = vmatprep.subr.bf16.mxu1 %v9078_v0 }
0x35ee   :  { %v5111_v51 = vpop.f32.mrb[62].mxu1 }
0x35ef   :  { %5115 = vst.msk [vmem:[#allocation2] sm:$0xff] %vm115_vm0, %v5111_v51  ;;  %v8092_v13 = vpop.f32.mrb[63].mxu1  ;;  %v5718_v51 = vld [vmem:[#allocation3 + $0x570] sm:$0xff] }
0x35f0   :  { %v5719_v13 = vld [vmem:[#allocation3 + $0x578] sm:$0xff] }
0x35f1   :  { %v8705_v20 = vpack.c.bf16 %v5719_v13, %v5718_v51 }
0x3657   :  { %v5274_v57 = vpop.f32.mrb[64].mxu1 }
0x3658   :  { %5279 = vrot.lane.b32.xlu1 %v5274_v57, %s9077_s4  ;;  %v8102_v33 = vpop.f32.mrb[65].mxu1 }
0x365b   :  { %v5440_v50 = vpop.f32.mrb[66].mxu1 }
0x365c   :  { %5445 = vrot.lane.b32.xlu0 %v5440_v50, %s9076_s30  ;;  %v8112_v29 = vpop.f32.mrb[67].mxu1 }
0x365f   :  { %v5606_v58 = vpop.f32.mrb[68].mxu1 }
0x3660   :  { %5611 = vrot.lane.b32.xlu1 %v5606_v58, %s9075_s1  ;;  %v8122_v36 = vpop.f32.mrb[69].mxu1 }
0x36ca   :  { %v5280_v37 = vpop.permute.xlu1 %5279 }
0x36cb   :  { %5282 = vst.msk [vmem:[#allocation2] sm:$0xff] %vm661_vm3, %v5280_v37 }
0x36ce   :  { %v5446_v38 = vpop.permute.xlu0 %5445 }
0x36cf   :  { %5448 = vst.msk [vmem:[#allocation2] sm:$0xff] %vm864_vm4, %v5446_v38 }
0x36d2   :  { %v5612_v28 = vpop.permute.xlu1 %5611 }
0x36d3   :  { %5614 = vst.msk [vmem:[#allocation2] sm:$0xff] %vm1067_vm5, %v5612_v28 }
0x36da   :  { %v5615_v39 = vld [vmem:[#allocation2] sm:$0xff] }
0x36db   :  { %8156 = vmatmul.mubr.f32.vlgmr.msra.gmra.mrb[50].mxu0 %v5615_v39 }
0x36dc   :  { %8205 = vmatprep.mubr.msk.f32.mxu0 %vm9079_vm7, %v9080_v1 }
0x37ae   :  { %v5682_v40 = vpop.f32.mrb[50].mxu0 }
0x37af   :  { %v5683_v41 = vadd.f32 %v5682_v40, %v9704_v56  ;;  %v8157_v43 = vpop.f32.mrb[51].mxu0 }
0x37b1   :  { %v5686_v44 = vadd.f32 %v5683_v41, %v9704_v56  ;;  %v8699_v56 = vpack.c.bf16 %v5715_v2, %v5714_v60 }
0x37b3   :  { %v5687_v45 = vsel %vm115_vm0, %v5686_v44, 0.0  ;;  %8700 = vmatpush3.bf16.msra.mxu1 %v8699_v56 }
0x37b4   :  { %5688 = vadd.xlane.f32.xlu0 %v5687_v45  ;;  %8702 = vmatprep.subr.bf16.mxu1 %v8701_v63 }
0x3841   :  { %v5689_v52 = vpop.xlane.xlu0 %5688 }
0x3842   :  { %v5690_v35 = vmul.f32 0.03125, %v5689_v52 }
0x3844   :  { %v5691_v47 = vsub.f32 %v5686_v44, %v5690_v35 }
0x3846   :  { %v5692_v48 = vmul.f32 %v5691_v47, %v5691_v47 }
0x3848   :  { %v5693_v54 = vsel %vm115_vm0, %v5692_v48, 0.0 }
0x3849   :  { %5694 = vadd.xlane.f32.xlu1 %v5693_v54 }
0x38d6   :  { %v5695_v4 = vpop.xlane.xlu1 %5694 }
0x38d7   :  { %v5696_v5 = vmul.f32 0.03125, %v5695_v4 }
0x38d9   :  { %v5697_v7 = vadd.f32 1e-05, %v5696_v5 }
0x38db   :  { %8995 = vrsqrt.f32 %v5697_v7 }
0x38e5   :  { %v8996_v9 = vpop.eup %8995 }
0x38e6   :  { %v5699_v10 = vmul.f32 %v8996_v9, %v5691_v47 }
0x38e8   :  { %v5704_v15 = vmul.f32 %v5703_v8, %v5699_v10 }
0x38ea   :  { %v9802_v16 = vadd.f32 %v5708_v11, %v5704_v15 }
0x38ec   :  { %8167 = vmatmul.mubr.msk.f32.vlgmr.msra.gmra.mrb[70].mxu1 %vm115_vm0, %v9802_v16 }
0x38ed   :  { %8704 = vmatpush3.bf16.msra.mxu1 %v8701_v63  ;;  %8177 = vmatprep.mubr.msk.f32.mxu1 %vm115_vm0, %v9568_v42 }
0x38ee   :  { %8706 = vmatprep.subr.bf16.mxu1 %v8705_v20 }
0x38f1   :  { %8708 = vmatpush3.bf16.msra.mxu1 %v8705_v20 }
0x38f2   :  { %8709 = vmatprep.subr.bf16.mxu1 %v9078_v0 }
0x38f4   :  { %8178 = vmatmul.mubr.msk.f32.vlgmr.msra.gmra.mrb[72].mxu1 %vm115_vm0, %v9578_v3 }
0x38f5   :  { %8184 = vmatprep.mubr.msk.f32.mxu1 %vm9079_vm7, %v9080_v1 }
0x38fa   :  { %8712 = vmatpush3.bf16.xpose.msk.msra.mxu1 %vm9157_vm1, %v9815_v34 }
0x38fb   :  { %8713 = vmatprep.subr.bf16.mxu1 %v9078_v0 }
0x39bf   :  { %v9821_v22 = vpop.f32.mrb[70].mxu1 }
0x39c0   :  { %6048 = vrot.lane.b32.xlu1 %v9821_v22, %s9075_s1  ;;  %v8168_v23 = vpop.f32.mrb[71].mxu1  ;;  %8185 = vmatmul.mubr.msk.f32.vlgmr.msra.gmra.mrb[74].mxu1 %vm115_vm0, %v9821_v22 }
0x39c1   :  { %8191 = vmatprep.mubr.msk.f32.mxu1 %vm9079_vm7, %v9080_v1 }
0x39c4   :  { %6219 = vrot.lane.b32.xlu1 %v9821_v22, %s9076_s30 }
0x39c7   :  { %v8179_v42 = vpop.f32.mrb[72].mxu1 }
0x39c8   :  { %v5881_v3 = vpop.f32.mrb[73].mxu1 }
0x39c9   :  { %v9831_v24 = vpack.i.bf16 %v8179_v42, %v5881_v3  ;;  %v8714_v53 = vpack.c.bf16 %v8179_v42, %v5881_v3 }
0x39cb   :  { %8715 = vmatpush3.bf16.msra.mxu1 %v8714_v53 }
0x39cc   :  { %8716 = vmatprep.subr.bf16.mxu1 %v9078_v0 }
0x3a32   :  { %v6049_v38 = vpop.permute.xlu1 %6048 }
0x3a36   :  { %v6220_v32 = vpop.permute.xlu1 %6219 }
0x3a93   :  { %v5959_v25 = vpop.f32.mrb[74].mxu1 }
0x3a94   :  { %v8186_v26 = vpop.f32.mrb[75].mxu1  ;;  %v5963_v30 = vsel %vm353_vm2, %v5959_v25, -inf }
0x3a95   :  { %5964 = vmax.xlane.f32.xlu0 %v5963_v30 }
0x3b22   :  { %v5965_v31 = vpop.xlane.xlu0 %5964 }
0x3b23   :  { %v5966_v57 = vsub.f32 %v5959_v25, %v5965_v31 }
0x3b25   :  { %v5967_v33 = vmul.f32 1.442695, %v5966_v57 }
0x3b27   :  { %8997 = vpow2.f32 %v5967_v33 }
0x3b31   :  { %v8998_v50 = vpop.eup %8997 }
0x3b32   :  { %v5969_v29 = vsel %vm353_vm2, %v8998_v50, 0.0 }
0x3b33   :  { %5970 = vadd.xlane.f32.xlu0 %v5969_v29 }
0x3bc0   :  { %v5971_v58 = vpop.xlane.xlu0 %5970 }
0x3bc1   :  { %8999 = vrcp.f32 %v5971_v58 }
0x3bcb   :  { %v9000_v36 = vpop.eup %8999 }
0x3bcc   :  { %v5973_v37 = vmul.f32 %v9000_v36, %v8998_v50 }
0x3bce   :  { %8192 = vmatmul.mubr.msk.f32.vlgmr.msra.gmra.mrb[76].mxu1 %vm353_vm2, %v5973_v37 }
0x3bcf   :  { %8719 = vmatpush3.bf16.xpose.msk.msra.mxu1 %vm9157_vm1, %v9815_v34  ;;  %8198 = vmatprep.mubr.msk.f32.mxu1 %vm9079_vm7, %v9080_v1 }
0x3bd0   :  { %8727 = vmatprep.subr.bf16.mxu1 %v9078_v0 }
0x3bd6   :  { %8199 = vmatmul.mubr.msk.f32.vlgmr.msra.gmra.mrb[78].mxu1 %vm115_vm0, %v6049_v38 }
0x3bd7   :  { %8219 = vmatprep.mubr.msk.f32.mxu1 %vm9079_vm7, %v9080_v1 }
0x3ca1   :  { %v6043_v28 = vpop.f32.mrb[76].mxu1 }
0x3ca2   :  { %6047 = vst.msk [vmem:[#allocation2] sm:$0xff] %vm115_vm0, %v6043_v28  ;;  %v8193_v39 = vpop.f32.mrb[77].mxu1 }
0x3ca9   :  { %v6118_v40 = vpop.f32.mrb[78].mxu1 }
0x3caa   :  { %v8200_v41 = vpop.f32.mrb[79].mxu1  ;;  %v6122_v43 = vsel %vm353_vm2, %v6118_v40, -inf }
0x3cab   :  { %6123 = vmax.xlane.f32.xlu0 %v6122_v43  ;;  %v5720_v41 = vld [vmem:[#allocation3 + $0x580] sm:$0xff]  ;;  %v5721_v43 = vld [vmem:[#allocation3 + $0x588] sm:$0xff] }
0x3d38   :  { %v6124_v44 = vpop.xlane.xlu0 %6123 }
0x3d39   :  { %v6125_v45 = vsub.f32 %v6118_v40, %v6124_v44  ;;  %v5722_v44 = vld [vmem:[#allocation3 + $0x590] sm:$0xff] }
0x3d3b   :  { %v6126_v52 = vmul.f32 1.442695, %v6125_v45  ;;  %v8738_v45 = vpack.c.bf16 %v5721_v43, %v5720_v41 }
0x3d3d   :  { %9001 = vpow2.f32 %v6126_v52  ;;  %v5723_v52 = vld [vmem:[#allocation3 + $0x598] sm:$0xff] }
0x3d47   :  { %v9002_v35 = vpop.eup %9001 }
0x3d48   :  { %v6128_v47 = vsel %vm353_vm2, %v9002_v35, 0.0 }
0x3d49   :  { %6129 = vadd.xlane.f32.xlu0 %v6128_v47  ;;  %v5724_v47 = vld [vmem:[#allocation3 + $0x5a0] sm:$0xff] }
0x3d5f   :  { %8847 = vrot.lane.b32.xlu0 %v9831_v24, %s9075_s1 }
0x3dd6   :  { %v6130_v48 = vpop.xlane.xlu0 %6129 }
0x3dd7   :  { %9003 = vrcp.f32 %v6130_v48  ;;  %v5725_v48 = vld [vmem:[#allocation3 + $0x5a8] sm:$0xff] }
0x3dda   :  { %v8848_v54 = vpop.permute.xlu0 %8847 }
0x3ddb   :  { %v8850_v62 = vunpack.i.h.bf16 %v8848_v54  ;;  %v8849_v55 = vunpack.i.l.bf16 %v8848_v54  ;;  %v8744_v54 = vpack.c.bf16 %v5725_v48, %v5724_v47  ;;  %v6662_v47 = vld [vmem:[#allocation3 + $0x650] sm:$0xff]  ;;  %v6663_v48 = vld [vmem:[#allocation3 + $0x658] sm:$0xff] }
0x3ddd   :  { %v8721_v59 = vpack.c.bf16 %v8850_v62, %v8849_v55  ;;  %v5726_v62 = vld [vmem:[#allocation3 + $0x5b0] sm:$0xff]  ;;  %v5727_v55 = vld [vmem:[#allocation3 + $0x5b8] sm:$0xff] }
0x3ddf   :  { %8722 = vmatpush3.bf16.msra.mxu0 %v8721_v59  ;;  %v8747_v59 = vpack.c.bf16 %v5727_v55, %v5726_v62  ;;  %v7145_v55 = vld [vmem:[#allocation3 + $0x620] ss:$0 sm:$0xff] }
0x3de0   :  { %8723 = vmatprep.subr.bf16.mxu0 %v9078_v0 }
0x3de1   :  { %v9004_v60 = vpop.eup %9003 }
0x3de2   :  { %v6132_v2 = vmul.f32 %v9004_v60, %v9002_v35  ;;  %v8741_v35 = vpack.c.bf16 %v5723_v52, %v5722_v44  ;;  %v5728_v60 = vld [vmem:[#allocation3 + $0x5c0] sm:$0xff] }
0x3de3   :  { %v6660_v52 = vld [vmem:[#allocation3 + $0x640] sm:$0xff] }
0x3de4   :  { %8206 = vmatmul.mubr.msk.f32.vlgmr.msra.gmra.mrb[52].mxu0 %vm353_vm2, %v6132_v2  ;;  %v5729_v2 = vld [vmem:[#allocation3 + $0x5c8] sm:$0xff] }
0x3de5   :  { %8212 = vmatprep.mubr.msk.f32.mxu0 %vm9079_vm7, %v9080_v1 }
0x3de8   :  { %8726 = vmatpush3.bf16.xpose.msk.msra.mxu0 %vm9157_vm1, %v9815_v34 }
0x3de9   :  { %8734 = vmatprep.subr.bf16.mxu0 %v9078_v0 }
0x3def   :  { %8213 = vmatmul.mubr.msk.f32.vlgmr.msra.gmra.mrb[54].mxu0 %vm115_vm0, %v6220_v32  ;;  %v8750_v32 = vpack.c.bf16 %v5729_v2, %v5728_v60 }
0x3df0   :  { %8233 = vmatprep.mubr.msk.f32.mxu0 %vm9079_vm7, %v9080_v1 }
0x3eb7   :  { %v6210_v56 = vpop.f32.mrb[52].mxu0 }
0x3eb8   :  { %v8207_v61 = vpop.f32.mrb[53].mxu0 }
0x3eb9   :  { %v5731_v61 = vld [vmem:[#allocation3 + $0x5d8] sm:$0xff] }
0x3ec2   :  { %v6289_v63 = vpop.f32.mrb[54].mxu0 }
0x3ec3   :  { %v8214_v4 = vpop.f32.mrb[55].mxu0  ;;  %v6293_v5 = vsel %vm353_vm2, %v6289_v63, -inf }
0x3ec4   :  { %6294 = vmax.xlane.f32.xlu1 %v6293_v5  ;;  %v5732_v4 = vld [vmem:[#allocation3 + $0x5e0] sm:$0xff]  ;;  %v5733_v5 = vld [vmem:[#allocation3 + $0x5e8] sm:$0xff] }
0x3ed5   :  { %8852 = vrot.lane.b32.xlu1 %v9831_v24, %s9076_s30 }
0x3f51   :  { %v6295_v7 = vpop.xlane.xlu1 %6294 }
0x3f52   :  { %v6296_v8 = vsub.f32 %v6289_v63, %v6295_v7  ;;  %v8756_v7 = vpack.c.bf16 %v5733_v5, %v5732_v4 }
0x3f54   :  { %v6297_v9 = vmul.f32 1.442695, %v6296_v8  ;;  %v5734_v8 = vld [vmem:[#allocation3 + $0x5f0] sm:$0xff] }
0x3f55   :  { %v8853_v10 = vpop.permute.xlu1 %8852 }
0x3f56   :  { %9005 = vpow2.f32 %v6297_v9  ;;  %v8855_v11 = vunpack.i.h.bf16 %v8853_v10  ;;  %v8854_v51 = vunpack.i.l.bf16 %v8853_v10  ;;  %v5735_v9 = vld [vmem:[#allocation3 + $0x5f8] sm:$0xff] }
0x3f57   :  { %v8759_v10 = vpack.c.bf16 %v5735_v9, %v5734_v8 }
0x3f58   :  { %v8728_v13 = vpack.c.bf16 %v8855_v11, %v8854_v51 }
0x3f5a   :  { %8729 = vmatpush3.bf16.msra.mxu1 %v8728_v13 }
0x3f5b   :  { %8730 = vmatprep.subr.bf16.mxu1 %v9078_v0 }
0x3f60   :  { %v9006_v15 = vpop.eup %9005 }
0x3f61   :  { %v6299_v20 = vsel %vm353_vm2, %v9006_v15, 0.0 }
0x3f62   :  { %6300 = vadd.xlane.f32.xlu0 %v6299_v20 }
0x3f78   :  { %6388 = vrot.lane.b32.xlu0 %v9821_v22, %s9077_s4 }
0x3fef   :  { %v6301_v23 = vpop.xlane.xlu0 %6300 }
0x3ff0   :  { %9007 = vrcp.f32 %v6301_v23 }
0x3ff3   :  { %v6389_v53 = vpop.permute.xlu0 %6388 }
0x3ffa   :  { %v9008_v42 = vpop.eup %9007 }
0x3ffb   :  { %v6303_v3 = vmul.f32 %v9008_v42, %v9006_v15 }
0x3ffd   :  { %8220 = vmatmul.mubr.msk.f32.vlgmr.msra.gmra.mrb[80].mxu1 %vm353_vm2, %v6303_v3 }
0x3ffe   :  { %8733 = vmatpush3.bf16.xpose.msk.msra.mxu1 %vm9157_vm1, %v9815_v34  ;;  %8226 = vmatprep.mubr.msk.f32.mxu1 %vm9079_vm7, %v9080_v1 }
0x3fff   :  { %8761 = vmatprep.subr.bf16.mxu1 %v9078_v0 }
0x4005   :  { %8227 = vmatmul.mubr.msk.f32.vlgmr.msra.gmra.mrb[82].mxu1 %vm115_vm0, %v6389_v53 }
0x4006   :  { %8279 = vmatprep.mubr.msk.f32.mxu1 %vm9079_vm7, %v9080_v1 }
0x40d0   :  { %v6379_v22 = vpop.f32.mrb[80].mxu1 }
0x40d1   :  { %v8221_v25 = vpop.f32.mrb[81].mxu1 }
0x40d8   :  { %v6458_v26 = vpop.f32.mrb[82].mxu1 }
0x40d9   :  { %v8228_v30 = vpop.f32.mrb[83].mxu1  ;;  %v6462_v31 = vsel %vm353_vm2, %v6458_v26, -inf }
0x40da   :  { %6463 = vmax.xlane.f32.xlu1 %v6462_v31 }
0x40eb   :  { %8857 = vrot.lane.b32.xlu1 %v9831_v24, %s9077_s4 }
0x40ef   :  { %6384 = vrot.lane.b32.xlu1 %v6379_v22, %s9076_s30 }
0x4167   :  { %v6464_v49 = vpop.xlane.xlu1 %6463 }
0x4168   :  { %v6465_v34 = vsub.f32 %v6458_v26, %v6464_v49  ;;  %v6652_v49 = vld [vmem:[#allocation3 + $0x600] sm:$0xff] }
0x416a   :  { %v6466_v57 = vmul.f32 1.442695, %v6465_v34  ;;  %v6653_v34 = vld [vmem:[#allocation3 + $0x608] sm:$0xff] }
0x416b   :  { %v8858_v33 = vpop.permute.xlu1 %8857 }
0x416c   :  { %9009 = vpow2.f32 %v6466_v57  ;;  %v8860_v50 = vunpack.i.h.bf16 %v8858_v33  ;;  %v8859_v29 = vunpack.i.l.bf16 %v8858_v33  ;;  %v8762_v57 = vpack.c.bf16 %v6653_v34, %v6652_v49  ;;  %v6654_v33 = vld [vmem:[#allocation3 + $0x610] sm:$0xff] }
0x416d   :  { %v9081_v34 = vmov 1.0|1.0  }
0x416e   :  { %v8735_v58 = vpack.c.bf16 %v8860_v50, %v8859_v29  ;;  %8763 = vmatpush3.bf16.msra.mxu1 %v8762_v57  ;;  %v6655_v50 = vld [vmem:[#allocation3 + $0x618] sm:$0xff] }
0x416f   :  { %v6385_v28 = vpop.permute.xlu1 %6384  ;;  %8764 = vmatprep.subr.bf16.mxu1 %v9078_v0  ;;  %v8765_v29 = vpack.c.bf16 %v6655_v50, %v6654_v33 }
0x4170   :  { %8736 = vmatpush3.bf16.msra.mxu0 %v8735_v58 }
0x4171   :  { %8737 = vmatprep.subr.bf16.mxu0 %v9078_v0 }
0x4172   :  { %8766 = vmatpush3.bf16.msra.mxu1 %v8765_v29 }
0x4173   :  { %8767 = vmatprep.subr.bf16.mxu1 %v9078_v0 }
0x4176   :  { %v9010_v36 = vpop.eup %9009 }
0x4177   :  { %v6468_v37 = vsel %vm353_vm2, %v9010_v36, 0.0 }
0x4178   :  { %6469 = vadd.xlane.f32.xlu0 %v6468_v37  ;;  %v6645_v37 = vrot.slane %v9796_v6, %v9146_v27  ;;  %v6661_v27 = vld [vmem:[#allocation3 + $0x648] sm:$0xff] }
0x418e   :  { %6215 = vrot.lane.b32.xlu0 %v6210_v56, %s9077_s4  ;;  %v5730_v56 = vld [vmem:[#allocation3 + $0x5d0] sm:$0xff] }
0x418f   :  { %v8753_v63 = vpack.c.bf16 %v5731_v61, %v5730_v56 }
0x4205   :  { %v6470_v24 = vpop.xlane.xlu0 %6469 }
0x4206   :  { %9011 = vrcp.f32 %v6470_v24 }
0x4209   :  { %v6216_v38 = vpop.permute.xlu0 %6215 }
0x420a   :  { %6218 = vst.msk [vmem:[#allocation2] sm:$0xff] %vm661_vm3, %v6216_v38 }
0x420b   :  { %6387 = vst.msk [vmem:[#allocation2] sm:$0xff] %vm864_vm4, %v6385_v28  ;;  %v6650_v28 = vrot.slane %v9796_v6, %v9298_v14  ;;  %v8774_v14 = vpack.c.bf16 %v6662_v47, %v6661_v27 }
0x4210   :  { %v9012_v39 = vpop.eup %9011 }
0x4211   :  { %v6472_v40 = vmul.f32 %v9012_v39, %v9010_v36  ;;  %v6657_v39 = vld [vmem:[#allocation3 + $0x628] sm:$0xff] }
0x4213   :  { %8234 = vmatmul.mubr.msk.f32.vlgmr.msra.gmra.mrb[56].mxu0 %vm353_vm2, %v6472_v40  ;;  %v6658_v40 = vld [vmem:[#allocation3 + $0x630] sm:$0xff] }
0x4214   :  { %8268 = vmatprep.mubr.msk.f32.mxu0 %vm9079_vm7, %v9080_v1  ;;  %8739 = vmatpush3.bf16.msra.mxu0 %v8738_v45  ;;  %v8768_v43 = vpack.c.bf16 %v6658_v40, %v6657_v39  ;;  %v6659_v45 = vld [vmem:[#allocation3 + $0x638] sm:$0xff]  ;;  %v6873_v39 = vadd.s32 24, %v9135_v18 }
0x4215   :  { %8740 = vmatprep.subr.bf16.mxu0 %v9078_v0 }
0x4218   :  { %8742 = vmatpush3.bf16.msra.mxu0 %v8741_v35  ;;  %v8771_v35 = vpack.c.bf16 %v6660_v52, %v6659_v45 }
0x4219   :  { %8743 = vmatprep.subr.bf16.mxu0 %v9078_v0 }
0x421c   :  { %8745 = vmatpush3.bf16.msra.mxu0 %v8744_v54  ;;  %v6664_v54 = vld [vmem:[#allocation3 + $0x660] sm:$0xff] }
0x421d   :  { %8746 = vmatprep.subr.bf16.mxu0 %v9078_v0  ;;  %v8777_v62 = vpack.c.bf16 %v6664_v54, %v6663_v48 }
0x4220   :  { %8748 = vmatpush3.bf16.msra.mxu0 %v8747_v59 }
0x4221   :  { %8749 = vmatprep.subr.bf16.mxu0 %v9078_v0 }
0x4224   :  { %8751 = vmatpush3.bf16.msra.mxu0 %v8750_v32  ;;  %v7147_v32 = vld [vmem:[#allocation3 + $0x668] ss:$0 sm:$0xff] }
0x4225   :  { %8752 = vmatprep.subr.bf16.mxu0 %v9078_v0 }
0x4228   :  { %8754 = vmatpush3.bf16.msra.mxu0 %v8753_v63 }
0x4229   :  { %8755 = vmatprep.subr.bf16.mxu0 %v9078_v0 }
0x422c   :  { %8757 = vmatpush3.bf16.msra.mxu0 %v8756_v7 }
0x422d   :  { %8758 = vmatprep.subr.bf16.mxu0 %v9078_v0 }
0x4230   :  { %8760 = vmatpush3.bf16.msra.mxu0 %v8759_v10 }
0x42e6   :  { %v6548_v11 = vpop.f32.mrb[56].mxu0 }
0x42e7   :  { %6553 = vrot.lane.b32.xlu1 %v6548_v11, %s9075_s1  ;;  %v8235_v51 = vpop.f32.mrb[57].mxu0 }
0x4359   :  { %v6554_v13 = vpop.permute.xlu1 %6553 }
0x435a   :  { %6556 = vst.msk [vmem:[#allocation2] sm:$0xff] %vm1067_vm5, %v6554_v13 }
0x4361   :  { %v6557_v15 = vld [vmem:[#allocation2] sm:$0xff] }
0x4362   :  { %8269 = vmatmul.mubr.f32.vlgmr.msra.gmra.mrb[58].mxu0 %v6557_v15  ;;  %v6838_v15 = vrot.slane %v9796_v6, %v4782_v12 }
0x4435   :  { %v6624_v20 = vpop.f32.mrb[58].mxu0 }
0x4436   :  { %v6625_v23 = vadd.f32 %v6624_v20, %v9802_v16  ;;  %v8270_v42 = vpop.f32.mrb[59].mxu0 }
0x4437   :  { %v6843_v42 = vrot.slane %v9796_v6, %v4787_v46  ;;  %v6845_v6 = vld [vmem:[#allocation3 + $0x10] sm:$0x3] }
0x4438   :  { %v6628_v3 = vadd.f32 %v6625_v23, %v9802_v16  ;;  %v6862_v33 = vrot.slane %v6845_v6, %v9138_v19 }
0x443a   :  { %v6629_v53 = vsel %vm115_vm0, %v6628_v3, 0.0 }
0x443b   :  { %6630 = vadd.xlane.f32.xlu1 %v6629_v53 }
0x44c8   :  { %v6631_v22 = vpop.xlane.xlu1 %6630 }
0x44c9   :  { %v6632_v25 = vmul.f32 0.03125, %v6631_v22 }
0x44cb   :  { %v6633_v26 = vsub.f32 %v6628_v3, %v6632_v25 }
0x44cd   :  { %v6634_v30 = vmul.f32 %v6633_v26, %v6633_v26 }
0x44cf   :  { %v6635_v31 = vsel %vm115_vm0, %v6634_v30, 0.0 }
0x44d0   :  { %6636 = vadd.xlane.f32.xlu0 %v6635_v31 }
0x455d   :  { %v6637_v16 = vpop.xlane.xlu0 %6636 }
0x455e   :  { %v6638_v58 = vmul.f32 0.03125, %v6637_v16  ;;  %v6867_v16 = vrot.slane %v6845_v6, %v9141_v21 }
0x4560   :  { %v6639_v36 = vadd.f32 1e-05, %v6638_v58  ;;  %v6875_v58 = vand.u32 127, %v46_v17 }
0x4562   :  { %9013 = vrsqrt.f32 %v6639_v36  ;;  %v6871_v36 = vadd.s32 8, %v9135_v18  ;;  %vm6876_vm9 = vcmp.eq.s32.totalorder %v9135_v18, %v6875_v58  ;;  %vm6879_vm12 = vcmp.eq.s32.totalorder %v6873_v39, %v6875_v58 }
0x4564   :  { %vm6877_vm10 = vcmp.eq.s32.totalorder %v6871_v36, %v6875_v58 }
0x456c   :  { %v9014_v24 = vpop.eup %9013 }
0x456d   :  { %v6641_v38 = vmul.f32 %v9014_v24, %v6633_v26  ;;  %v6872_v24 = vadd.s32 16, %v9135_v18 }
0x456f   :  { %v6646_v41 = vmul.f32 %v6645_v37, %v6641_v38  ;;  %vm6878_vm11 = vcmp.eq.s32.totalorder %v6872_v24, %v6875_v58 }
0x4571   :  { %v6651_v44 = vadd.f32 %v6650_v28, %v6646_v41 }
0x4573   :  { %8280 = vmatmul.mubr.msk.f32.vlgmr.msra.gmra.mrb[84].mxu1 %vm115_vm0, %v6651_v44 }
0x4574   :  { %8769 = vmatpush3.bf16.msra.mxu1 %v8768_v43  ;;  %8298 = vmatprep.mubr.msk.f32.mxu1 %vm9079_vm7, %v9080_v1 }
0x4575   :  { %8770 = vmatprep.subr.bf16.mxu1 %v9078_v0 }
0x4578   :  { %8772 = vmatpush3.bf16.msra.mxu1 %v8771_v35 }
0x4579   :  { %8773 = vmatprep.subr.bf16.mxu1 %v9078_v0 }
0x457c   :  { %8775 = vmatpush3.bf16.msra.mxu1 %v8774_v14 }
0x457d   :  { %8776 = vmatprep.subr.bf16.mxu1 %v9078_v0 }
0x4580   :  { %8778 = vmatpush3.bf16.msra.mxu1 %v8777_v62 }
0x4581   :  { %8779 = vmatprep.subr.bf16.mxu1 %v9081_v34 }
0x4646   :  { %v6739_v59 = vpop.f32.mrb[84].mxu1 }
0x4647   :  { %v6740_v60 = vadd.f32 %v7145_v55, %v6739_v59  ;;  %v8281_v2 = vpop.f32.mrb[85].mxu1 }
0x4649   :  { %v6743_v1 = vmax.f32 %v6740_v60, 0.0 }
0x464b   :  { %8299 = vmatmul.mubr.msk.f32.vlgmr.msra.gmra.mrb[86].mxu1 %vm1293_vm6, %v6743_v1 }
0x464c   :  { %8780 = vmatpush3.bf16.msra.mxu1 %v9081_v34 }
0x464d   :  { %8781 = vmatprep.subr.bf16.mxu1 %v9081_v34 }
0x4650   :  { %8782 = vmatpush3.bf16.msra.mxu1 %v9081_v34 }
0x471e   :  { %v6817_v56 = vpop.f32.mrb[86].mxu1 }
0x471f   :  { %v6818_v61 = vadd.f32 %v7147_v32, %v6817_v56  ;;  %v8300_v63 = vpop.f32.mrb[87].mxu1 }
0x4721   :  { %v6821_v4 = vadd.f32 %v6818_v61, %v6651_v44 }
0x4723   :  { %v6822_v5 = vsel %vm115_vm0, %v6821_v4, 0.0 }
0x4724   :  { %6823 = vadd.xlane.f32.xlu0 %v6822_v5 }
0x47b1   :  { %v6824_v0 = vpop.xlane.xlu0 %6823 }
0x47b2   :  { %v6825_v7 = vmul.f32 0.03125, %v6824_v0 }
0x47b4   :  { %v6826_v8 = vsub.f32 %v6821_v4, %v6825_v7 }
0x47b6   :  { %v6827_v9 = vmul.f32 %v6826_v8, %v6826_v8 }
0x47b8   :  { %v6828_v10 = vsel %vm115_vm0, %v6827_v9, 0.0 }
0x47b9   :  { %6829 = vadd.xlane.f32.xlu1 %v6828_v10 }
0x4846   :  { %v6830_v11 = vpop.xlane.xlu1 %6829 }
0x4847   :  { %v6831_v51 = vmul.f32 0.03125, %v6830_v11 }
0x4849   :  { %v6832_v13 = vadd.f32 1e-05, %v6831_v51 }
0x484b   :  { %9015 = vrsqrt.f32 %v6832_v13 }
0x4855   :  { %v9016_v20 = vpop.eup %9015 }
0x4856   :  { %v6834_v23 = vmul.f32 %v9016_v20, %v6826_v8 }
0x4858   :  { %v6839_v3 = vmul.f32 %v6838_v15, %v6834_v23 }
0x485a   :  { %v6844_v53 = vadd.f32 %v6843_v42, %v6839_v3 }
0x485c   :  { %v6846_v22 = vsel %vm115_vm0, %v6844_v53, 0.0 }
0x485d   :  { %6847 = vadd.xlane.f32.xlu0 %v6846_v22 }
0x48ea   :  { %v6848_v25 = vpop.xlane.xlu0 %6847 }
0x48eb   :  { %v6849_v26 = vmul.f32 0.03125, %v6848_v25 }
0x48ed   :  { %v6850_v30 = vsub.f32 %v6844_v53, %v6849_v26 }
0x48ef   :  { %v6851_v31 = vmul.f32 %v6850_v30, %v6850_v30 }
0x48f1   :  { %v6852_v49 = vsel %vm115_vm0, %v6851_v31, 0.0 }
0x48f2   :  { %6853 = vadd.xlane.f32.xlu1 %v6852_v49 }
0x497f   :  { %v6854_v12 = vpop.xlane.xlu1 %6853 }
0x4980   :  { %v6855_v57 = vmul.f32 0.03125, %v6854_v12 }
0x4982   :  { %v6856_v46 = vadd.f32 1e-05, %v6855_v57 }
0x4984   :  { %9017 = vrsqrt.f32 %v6856_v46 }
0x498e   :  { %v9018_v50 = vpop.eup %9017 }
0x498f   :  { %v6858_v29 = vmul.f32 %v9018_v50, %v6850_v30 }
0x4991   :  { %v6863_v37 = vmul.f32 %v6862_v33, %v6858_v29 }
0x4993   :  { %v6868_v38 = vadd.f32 %v6867_v16, %v6863_v37 }
0x4995   :  { %v6883_v28 = vrot.slane %v6868_v38, %v9138_v19 }
0x4997   :  { %v6884_v40 = vsel %vm6876_vm9, %v6883_v28, 0.0  ;;  %v6885_v41 = vsel %vm6877_vm10, %v6883_v28, 0.0  ;;  %v6886_v17 = vsel %vm6878_vm11, %v6883_v28, 0.0  ;;  %v6887_v21 = vsel %vm6879_vm12, %v6883_v28, 0.0 }
0x4998   :  { %8309 = vmatprep.mubr.msk.f32.mxu1 %vm115_vm0, %v6884_v40 }
0x4999   :  { %8310 = vmatmul.mubr.msk.f32.vlgmr.msra.gmra.mrb[88].mxu1 %vm115_vm0, %v6885_v41 }
0x499a   :  { %8312 = vmatprep.mubr.msk.f32.mxu1 %vm115_vm0, %v6886_v17 }
0x499d   :  { %8313 = vmatmul.mubr.msk.f32.gmra.mrb[90].mxu1 %vm115_vm0, %v6887_v21 }
0x499e   :  { %9054 = shalt.err (!%p9051_p12)
}
0x499f   :  { %s9055_s13 = scalar_lea.hbm %s9969_s3, 256 }
0x49a0   :  { %p9056_p13 = scmp.ne.s32.totalorder %s9969_s3, %s9055_s13  ;;  %p9059_p0 = scmp.lt.u32.totalorder %s9055_s13, %s9969_s3 }
0x49a2   :  { %p9061_p1 = pnand %p9059_p0, %p9056_p13 }
0x49a4   :  { %9064 = shalt.err (!%p9061_p1)
}
0x49a5   :  { %7004 = dma.vmem_to_hbm [thread:$0]  %s6999_s9, 256, %s9969_s3, [#allocation5], %s9070_s22, %s9070_s22, %s9071_s23  }
0x4a6c   :  { %v8311_v18 = vpop.f32.mrb[88].mxu1 }
0x4a6d   :  { %6986 = vst [vmem:[%s9968_s2 + $0x8] sm:$0xff] %v8311_v18  ;;  %v6966_v19 = vpop.f32.mrb[89].mxu1 }
0x4a6e   :  { %6985 = vst [vmem:[%s9968_s2] sm:$0xff] %v6966_v19 }
0x4a70   :  { %v8314_v43 = vpop.f32.mrb[90].mxu1 }
0x4a71   :  { %6988 = vst [vmem:[%s9968_s2 + $0x18] sm:$0xff] %v8314_v43  ;;  %v6976_v44 = vpop.f32.mrb[91].mxu1 }
0x4a72   :  { %6987 = vst [vmem:[%s9968_s2 + $0x10] sm:$0xff] %v6976_v44 }
0x4a73   :  { %9067 = dma.done.wait [#allocation5], 256  }
0x4a74   :  { %9068 = vsyncadd [#allocation5], 4294967040 }
0x4a75   :  { %7010 = vsyncpa [#allocation4], 1 }
0x4a76   :  { %7011 = vsyncpa [#allocation5], 1 }

</bundles_post_ra>
